<compile_context>
chip_gen: v5e
topology: v5e:2x2
jax: 0.10.0
libtpu: 0.0.40
codegen_flags: <defaults>
</compile_context>

<pallas_src>
import math

import jax
import jax.numpy as jnp
import numpy as np
from jax.experimental import pallas as pl
from jax.experimental.pallas import tpu as pltpu


# ----------------------------------------------------------------------------
# Minimal irreps plumbing (plain Python) — mirrors o3.Irreps.simplify() and the
# sorting key used in Sortcut.__init__.  An "irreps" is a list of (mul, (l, p)).
# ----------------------------------------------------------------------------
def simplify(irreps):
    out = []
    for mul, ir in irreps:
        if mul == 0:
            continue
        if out and out[-1][1] == ir:
            out[-1] = (out[-1][0] + mul, ir)
        else:
            out.append((mul, ir))
    return out


def irreps_dim(irreps):
    return sum(mul * (2 * l + 1) for mul, (l, p) in irreps)


def sortcut_plan(irreps_outs):
    """Replicates Sortcut.__init__ + forward index arithmetic statically.

    Returns (irreps_in, dim_in, out_dims, plans) where plans[k] is a list of
    (i_out, i_in, d) segment copies for output k.
    """
    irreps_outs = [simplify(list(ir)) for ir in irreps_outs]
    irreps_in = simplify(
        sorted(
            (x for ir in irreps_outs for x in ir),
            key=lambda mul_ir: (mul_ir[1][0], mul_ir[1][1]),  # (l, p)
        )
    )
    dim_in = irreps_dim(irreps_in)
    out_dims = [irreps_dim(ir) for ir in irreps_outs]

    plans = [[] for _ in irreps_outs]
    i_in = 0
    for _mul, (l_in, p_in) in irreps_in:
        for k, irreps_out in enumerate(irreps_outs):
            i_out = 0
            for mul_out, (l_out, p_out) in irreps_out:
                d = mul_out * (2 * l_out + 1)
                if (l_in, p_in) == (l_out, p_out):
                    plans[k].append((i_out, i_in, d))
                    i_in += d
                i_out += d
    assert i_in == dim_in
    # Every channel of every output is written exactly once -> sorted segments
    # tile each output contiguously.
    for k, segs in enumerate(plans):
        segs.sort()
        cov = 0
        for i_out, _i_in, d in segs:
            assert i_out == cov
            cov += d
        assert cov == out_dims[k]
    # Total output channels == total input channels (pure permutation).
    assert sum(out_dims) == dim_in
    return irreps_in, dim_in, out_dims, plans


def folded_output_segments(plans, out_dims, dim_in, f):
    """Per-output source segments on the FOLDED layout.

    The folded input row holds f original rows side by side along the lane
    axis (replica r occupies channels [r*dim_in, (r+1)*dim_in)).  Output k's
    folded row is [out_k(row 0) | out_k(row 1) | ... | out_k(row f-1)], so its
    segments are the per-replica plan segments shifted by r*dim_in, in
    destination order, coalesced when source ranges are contiguous.
    """
    segs_per_out = []
    for plan, d_out in zip(plans, out_dims):
        plan_sorted = sorted(plan)  # contiguous destination coverage
        segs = []
        for r in range(f):
            for _i_out, i_in, d in plan_sorted:
                s = r * dim_in + i_in
                if segs and segs[-1][0] + segs[-1][1] == s:
                    segs[-1] = (segs[-1][0], segs[-1][1] + d)
                else:
                    segs.append((s, d))
        assert sum(d for _, d in segs) == f * d_out
        segs_per_out.append(segs)
    return segs_per_out


def _cdiv(a, b):
    return -(-a // b)


# ----------------------------------------------------------------------------
# Pallas kernel: gather static channel segments of the folded input tile into
# k lane-dense output tiles (one full-block store per output per grid step).
# ----------------------------------------------------------------------------
def make_sortcut_kernel(folded_segs_per_out):
    def kernel(x_ref, *out_refs):
        for o_ref, segs in zip(out_refs, folded_segs_per_out):
            pieces = [x_ref[:, s:s + d] for (s, d) in segs]
            if len(pieces) == 1:
                o_ref[...] = pieces[0]
            else:
                o_ref[...] = jnp.concatenate(pieces, axis=-1)
    return kernel


def sortcut_apply(x, irreps_outs, tb=512):
    """Apply Sortcut to x of shape (..., dim_in). Returns (outs, plans, out_dims)."""
    irreps_in, dim_in, out_dims, plans = sortcut_plan(irreps_outs)
    assert x.shape[-1] == dim_in, (x.shape, dim_in)
    dtype = x.dtype
    itemsize = jnp.dtype(dtype).itemsize
    sub = max(8, 32 // itemsize)  # sublane multiple: 8 f32 / 16 bf16 / 32 int8-fp8

    lead_shape = x.shape[:-1]
    x2 = x.reshape(-1, dim_in)
    B = x2.shape[0]

    # ---- fold the batch into the lane axis (lane-dense blocks) -------------
    f = 128 // math.gcd(dim_in, 128)  # minimal f with (f*dim_in) % 128 == 0
    Bf = _cdiv(B, f)
    pad = Bf * f - B
    if pad:
        # Only needed when B % f != 0; at most f-1 rows of padding.
        x2 = jnp.pad(x2, ((0, pad), (0, 0)))
    xf = x2.reshape(Bf, f * dim_in)  # free, contiguous view

    # ---- folded-row tile: large, VMEM-budgeted, dtype-aware ----------------
    row_bytes = 2 * f * dim_in * itemsize  # in + out bytes per folded row
    tb_budget = max(sub, ((12 << 20) // row_bytes) // sub * sub)
    tb_cap = min(tb, tb_budget)
    if Bf <= tb_cap:
        tb_eff = Bf  # single block == full array dim (always legal)
    else:
        tb_eff = max(sub, (tb_cap // sub) * sub)
    grid = (_cdiv(Bf, tb_eff),)  # ragged last block handled by Pallas masking

    per_step_bytes = 2 * tb_eff * row_bytes  # double-buffered in+out tiles
    vmem_limit = int(min(48 << 20, max(32 << 20, 2 * per_step_bytes)))
    bytes_accessed = 2 * Bf * f * dim_in * itemsize

    folded_segs = folded_output_segments(plans, out_dims, dim_in, f)
    kernel = make_sortcut_kernel(folded_segs)

    outs_folded = pl.pallas_call(
        kernel,
        out_shape=tuple(
            jax.ShapeDtypeStruct((Bf, f * d), dtype) for d in out_dims
        ),
        grid=grid,
        in_specs=[pl.BlockSpec((tb_eff, f * dim_in), lambda i: (i, 0))],
        out_specs=[pl.BlockSpec((tb_eff, f * d), lambda i: (i, 0)) for d in out_dims],
        compiler_params=pltpu.CompilerParams(
            dimension_semantics=("parallel",),
            vmem_limit_bytes=vmem_limit,
        ),
        cost_estimate=pl.CostEstimate(
            flops=0, transcendentals=0, bytes_accessed=bytes_accessed
        ),
    )(xf)

    # ---- un-fold (free reshape); crop only if we had to pad ----------------
    outs = []
    for of, d in zip(outs_folded, out_dims):
        o = of.reshape(Bf * f, d)
        if pad:
            o = o[:B]
        outs.append(o.reshape(lead_shape + (d,)))
    return tuple(outs), plans, out_dims


# ----------------------------------------------------------------------------
# Reference (pure numpy) reproducing the PyTorch forward exactly.
# ----------------------------------------------------------------------------
def sortcut_reference(x_np, plans, out_dims):
    outs = [np.zeros(x_np.shape[:-1] + (d,), dtype=x_np.dtype) for d in out_dims]
    for out, segs in zip(outs, plans):
        for i_out, i_in, d in segs:
            out[..., i_out:i_out + d] = x_np[..., i_in:i_in + d]
    return outs


if __name__ == "__main__":
    # Deterministic module config:
    #   out1 = "4x0e + 2x1o"          -> dim 10
    #   out2 = "3x0e + 1x1o + 2x2e"   -> dim 16
    #   irreps_in = "7x0e + 3x1o + 2x2e" -> dim 26
    irreps_out1 = [(4, (0, 1)), (2, (1, -1))]
    irreps_out2 = [(3, (0, 1)), (1, (1, -1)), (2, (2, 1))]
    irreps_outs = (irreps_out1, irreps_out2)

    _, dim_in, _, _ = sortcut_plan(irreps_outs)

    key = jax.random.PRNGKey(0)
    k1, k2, k3 = jax.random.split(key, 3)

    # Case 1: batch a multiple of the fold factor (pure free-reshape path).
    x1 = jax.random.normal(k1, (128, dim_in), dtype=jnp.float32)
    outs1, plans, out_dims = sortcut_apply(x1, irreps_outs)
    outs1 = jax.block_until_ready(outs1)
    refs1 = sortcut_reference(np.asarray(x1), plans, out_dims)
    for got, ref in zip(outs1, refs1):
        np.testing.assert_array_equal(np.asarray(got), ref)

    # Case 2: leading dims + batch not a multiple of the fold (pad-to-f path).
    x2 = jax.random.normal(k2, (2, 7, dim_in), dtype=jnp.float32)
    outs2, plans, out_dims = sortcut_apply(x2, irreps_outs)
    outs2 = jax.block_until_ready(outs2)
    refs2 = sortcut_reference(np.asarray(x2), plans, out_dims)
    for got, ref in zip(outs2, refs2):
        np.testing.assert_array_equal(np.asarray(got), ref)

    # Case 3: multi-step grid with a ragged last block (small tile forced).
    x3 = jax.random.normal(k3, (2561, dim_in), dtype=jnp.float32)
    outs3, plans, out_dims = sortcut_apply(x3, irreps_outs, tb=16)
    outs3 = jax.block_until_ready(outs3)
    refs3 = sortcut_reference(np.asarray(x3), plans, out_dims)
    for got, ref in zip(outs3, refs3):
        np.testing.assert_array_equal(np.asarray(got), ref)

    print("KERNEL_OK")
</pallas_src>

<mosaic_0001>
module attributes {stable_mosaic.version = 11 : i64} {
  func.func @kernel(%arg0: i32, %arg1: memref<2x1664xf32, #tpu.memory_space<vmem>>, %arg2: memref<2x640xf32, #tpu.memory_space<vmem>>, %arg3: memref<2x1024xf32, #tpu.memory_space<vmem>>) attributes {dimension_semantics = [#tpu.dimension_semantics<parallel>], iteration_bounds = array<i64: 1>, scalar_prefetch = 0 : i64, scratch_operands = 0 : i64, tpu.core_type = #tpu.core_type<tc>, window_params = [{transform_indices = @transform_0, window_bounds = array<i64: 2, 1664>}, {transform_indices = @transform_1, window_bounds = array<i64: 2, 640>}, {transform_indices = @transform_2, window_bounds = array<i64: 2, 1024>}]} {
    %c0 = arith.constant 0 : index
    %c0_0 = arith.constant 0 : index
    %0 = vector.load %arg1[%c0, %c0_0] : memref<2x1664xf32, #tpu.memory_space<vmem>>, vector<2x4xf32>
    %c0_1 = arith.constant 0 : index
    %c7 = arith.constant 7 : index
    %1 = vector.load %arg1[%c0_1, %c7] : memref<2x1664xf32, #tpu.memory_space<vmem>>, vector<2x6xf32>
    %c0_2 = arith.constant 0 : index
    %c26 = arith.constant 26 : index
    %2 = vector.load %arg1[%c0_2, %c26] : memref<2x1664xf32, #tpu.memory_space<vmem>>, vector<2x4xf32>
    %c0_3 = arith.constant 0 : index
    %c33 = arith.constant 33 : index
    %3 = vector.load %arg1[%c0_3, %c33] : memref<2x1664xf32, #tpu.memory_space<vmem>>, vector<2x6xf32>
    %c0_4 = arith.constant 0 : index
    %c52 = arith.constant 52 : index
    %4 = vector.load %arg1[%c0_4, %c52] : memref<2x1664xf32, #tpu.memory_space<vmem>>, vector<2x4xf32>
    %c0_5 = arith.constant 0 : index
    %c59 = arith.constant 59 : index
    %5 = vector.load %arg1[%c0_5, %c59] : memref<2x1664xf32, #tpu.memory_space<vmem>>, vector<2x6xf32>
    %c0_6 = arith.constant 0 : index
    %c78 = arith.constant 78 : index
    %6 = vector.load %arg1[%c0_6, %c78] : memref<2x1664xf32, #tpu.memory_space<vmem>>, vector<2x4xf32>
    %c0_7 = arith.constant 0 : index
    %c85 = arith.constant 85 : index
    %7 = vector.load %arg1[%c0_7, %c85] : memref<2x1664xf32, #tpu.memory_space<vmem>>, vector<2x6xf32>
    %c0_8 = arith.constant 0 : index
    %c104 = arith.constant 104 : index
    %8 = vector.load %arg1[%c0_8, %c104] : memref<2x1664xf32, #tpu.memory_space<vmem>>, vector<2x4xf32>
    %c0_9 = arith.constant 0 : index
    %c111 = arith.constant 111 : index
    %9 = vector.load %arg1[%c0_9, %c111] : memref<2x1664xf32, #tpu.memory_space<vmem>>, vector<2x6xf32>
    %c0_10 = arith.constant 0 : index
    %c130 = arith.constant 130 : index
    %10 = vector.load %arg1[%c0_10, %c130] : memref<2x1664xf32, #tpu.memory_space<vmem>>, vector<2x4xf32>
    %c0_11 = arith.constant 0 : index
    %c137 = arith.constant 137 : index
    %11 = vector.load %arg1[%c0_11, %c137] : memref<2x1664xf32, #tpu.memory_space<vmem>>, vector<2x6xf32>
    %c0_12 = arith.constant 0 : index
    %c156 = arith.constant 156 : index
    %12 = vector.load %arg1[%c0_12, %c156] : memref<2x1664xf32, #tpu.memory_space<vmem>>, vector<2x4xf32>
    %c0_13 = arith.constant 0 : index
    %c163 = arith.constant 163 : index
    %13 = vector.load %arg1[%c0_13, %c163] : memref<2x1664xf32, #tpu.memory_space<vmem>>, vector<2x6xf32>
    %c0_14 = arith.constant 0 : index
    %c182 = arith.constant 182 : index
    %14 = vector.load %arg1[%c0_14, %c182] : memref<2x1664xf32, #tpu.memory_space<vmem>>, vector<2x4xf32>
    %c0_15 = arith.constant 0 : index
    %c189 = arith.constant 189 : index
    %15 = vector.load %arg1[%c0_15, %c189] : memref<2x1664xf32, #tpu.memory_space<vmem>>, vector<2x6xf32>
    %c0_16 = arith.constant 0 : index
    %c208 = arith.constant 208 : index
    %16 = vector.load %arg1[%c0_16, %c208] : memref<2x1664xf32, #tpu.memory_space<vmem>>, vector<2x4xf32>
    %c0_17 = arith.constant 0 : index
    %c215 = arith.constant 215 : index
    %17 = vector.load %arg1[%c0_17, %c215] : memref<2x1664xf32, #tpu.memory_space<vmem>>, vector<2x6xf32>
    %c0_18 = arith.constant 0 : index
    %c234 = arith.constant 234 : index
    %18 = vector.load %arg1[%c0_18, %c234] : memref<2x1664xf32, #tpu.memory_space<vmem>>, vector<2x4xf32>
    %c0_19 = arith.constant 0 : index
    %c241 = arith.constant 241 : index
    %19 = vector.load %arg1[%c0_19, %c241] : memref<2x1664xf32, #tpu.memory_space<vmem>>, vector<2x6xf32>
    %c0_20 = arith.constant 0 : index
    %c260 = arith.constant 260 : index
    %20 = vector.load %arg1[%c0_20, %c260] : memref<2x1664xf32, #tpu.memory_space<vmem>>, vector<2x4xf32>
    %c0_21 = arith.constant 0 : index
    %c267 = arith.constant 267 : index
    %21 = vector.load %arg1[%c0_21, %c267] : memref<2x1664xf32, #tpu.memory_space<vmem>>, vector<2x6xf32>
    %c0_22 = arith.constant 0 : index
    %c286 = arith.constant 286 : index
    %22 = vector.load %arg1[%c0_22, %c286] : memref<2x1664xf32, #tpu.memory_space<vmem>>, vector<2x4xf32>
    %c0_23 = arith.constant 0 : index
    %c293 = arith.constant 293 : index
    %23 = vector.load %arg1[%c0_23, %c293] : memref<2x1664xf32, #tpu.memory_space<vmem>>, vector<2x6xf32>
    %c0_24 = arith.constant 0 : index
    %c312 = arith.constant 312 : index
    %24 = vector.load %arg1[%c0_24, %c312] : memref<2x1664xf32, #tpu.memory_space<vmem>>, vector<2x4xf32>
    %c0_25 = arith.constant 0 : index
    %c319 = arith.constant 319 : index
    %25 = vector.load %arg1[%c0_25, %c319] : memref<2x1664xf32, #tpu.memory_space<vmem>>, vector<2x6xf32>
    %c0_26 = arith.constant 0 : index
    %c338 = arith.constant 338 : index
    %26 = vector.load %arg1[%c0_26, %c338] : memref<2x1664xf32, #tpu.memory_space<vmem>>, vector<2x4xf32>
    %c0_27 = arith.constant 0 : index
    %c345 = arith.constant 345 : index
    %27 = vector.load %arg1[%c0_27, %c345] : memref<2x1664xf32, #tpu.memory_space<vmem>>, vector<2x6xf32>
    %c0_28 = arith.constant 0 : index
    %c364 = arith.constant 364 : index
    %28 = vector.load %arg1[%c0_28, %c364] : memref<2x1664xf32, #tpu.memory_space<vmem>>, vector<2x4xf32>
    %c0_29 = arith.constant 0 : index
    %c371 = arith.constant 371 : index
    %29 = vector.load %arg1[%c0_29, %c371] : memref<2x1664xf32, #tpu.memory_space<vmem>>, vector<2x6xf32>
    %c0_30 = arith.constant 0 : index
    %c390 = arith.constant 390 : index
    %30 = vector.load %arg1[%c0_30, %c390] : memref<2x1664xf32, #tpu.memory_space<vmem>>, vector<2x4xf32>
    %c0_31 = arith.constant 0 : index
    %c397 = arith.constant 397 : index
    %31 = vector.load %arg1[%c0_31, %c397] : memref<2x1664xf32, #tpu.memory_space<vmem>>, vector<2x6xf32>
    %c0_32 = arith.constant 0 : index
    %c416 = arith.constant 416 : index
    %32 = vector.load %arg1[%c0_32, %c416] : memref<2x1664xf32, #tpu.memory_space<vmem>>, vector<2x4xf32>
    %c0_33 = arith.constant 0 : index
    %c423 = arith.constant 423 : index
    %33 = vector.load %arg1[%c0_33, %c423] : memref<2x1664xf32, #tpu.memory_space<vmem>>, vector<2x6xf32>
    %c0_34 = arith.constant 0 : index
    %c442 = arith.constant 442 : index
    %34 = vector.load %arg1[%c0_34, %c442] : memref<2x1664xf32, #tpu.memory_space<vmem>>, vector<2x4xf32>
    %c0_35 = arith.constant 0 : index
    %c449 = arith.constant 449 : index
    %35 = vector.load %arg1[%c0_35, %c449] : memref<2x1664xf32, #tpu.memory_space<vmem>>, vector<2x6xf32>
    %c0_36 = arith.constant 0 : index
    %c468 = arith.constant 468 : index
    %36 = vector.load %arg1[%c0_36, %c468] : memref<2x1664xf32, #tpu.memory_space<vmem>>, vector<2x4xf32>
    %c0_37 = arith.constant 0 : index
    %c475 = arith.constant 475 : index
    %37 = vector.load %arg1[%c0_37, %c475] : memref<2x1664xf32, #tpu.memory_space<vmem>>, vector<2x6xf32>
    %c0_38 = arith.constant 0 : index
    %c494 = arith.constant 494 : index
    %38 = vector.load %arg1[%c0_38, %c494] : memref<2x1664xf32, #tpu.memory_space<vmem>>, vector<2x4xf32>
    %c0_39 = arith.constant 0 : index
    %c501 = arith.constant 501 : index
    %39 = vector.load %arg1[%c0_39, %c501] : memref<2x1664xf32, #tpu.memory_space<vmem>>, vector<2x6xf32>
    %c0_40 = arith.constant 0 : index
    %c520 = arith.constant 520 : index
    %40 = vector.load %arg1[%c0_40, %c520] : memref<2x1664xf32, #tpu.memory_space<vmem>>, vector<2x4xf32>
    %c0_41 = arith.constant 0 : index
    %c527 = arith.constant 527 : index
    %41 = vector.load %arg1[%c0_41, %c527] : memref<2x1664xf32, #tpu.memory_space<vmem>>, vector<2x6xf32>
    %c0_42 = arith.constant 0 : index
    %c546 = arith.constant 546 : index
    %42 = vector.load %arg1[%c0_42, %c546] : memref<2x1664xf32, #tpu.memory_space<vmem>>, vector<2x4xf32>
    %c0_43 = arith.constant 0 : index
    %c553 = arith.constant 553 : index
    %43 = vector.load %arg1[%c0_43, %c553] : memref<2x1664xf32, #tpu.memory_space<vmem>>, vector<2x6xf32>
    %c0_44 = arith.constant 0 : index
    %c572 = arith.constant 572 : index
    %44 = vector.load %arg1[%c0_44, %c572] : memref<2x1664xf32, #tpu.memory_space<vmem>>, vector<2x4xf32>
    %c0_45 = arith.constant 0 : index
    %c579 = arith.constant 579 : index
    %45 = vector.load %arg1[%c0_45, %c579] : memref<2x1664xf32, #tpu.memory_space<vmem>>, vector<2x6xf32>
    %c0_46 = arith.constant 0 : index
    %c598 = arith.constant 598 : index
    %46 = vector.load %arg1[%c0_46, %c598] : memref<2x1664xf32, #tpu.memory_space<vmem>>, vector<2x4xf32>
    %c0_47 = arith.constant 0 : index
    %c605 = arith.constant 605 : index
    %47 = vector.load %arg1[%c0_47, %c605] : memref<2x1664xf32, #tpu.memory_space<vmem>>, vector<2x6xf32>
    %c0_48 = arith.constant 0 : index
    %c624 = arith.constant 624 : index
    %48 = vector.load %arg1[%c0_48, %c624] : memref<2x1664xf32, #tpu.memory_space<vmem>>, vector<2x4xf32>
    %c0_49 = arith.constant 0 : index
    %c631 = arith.constant 631 : index
    %49 = vector.load %arg1[%c0_49, %c631] : memref<2x1664xf32, #tpu.memory_space<vmem>>, vector<2x6xf32>
    %c0_50 = arith.constant 0 : index
    %c650 = arith.constant 650 : index
    %50 = vector.load %arg1[%c0_50, %c650] : memref<2x1664xf32, #tpu.memory_space<vmem>>, vector<2x4xf32>
    %c0_51 = arith.constant 0 : index
    %c657 = arith.constant 657 : index
    %51 = vector.load %arg1[%c0_51, %c657] : memref<2x1664xf32, #tpu.memory_space<vmem>>, vector<2x6xf32>
    %c0_52 = arith.constant 0 : index
    %c676 = arith.constant 676 : index
    %52 = vector.load %arg1[%c0_52, %c676] : memref<2x1664xf32, #tpu.memory_space<vmem>>, vector<2x4xf32>
    %c0_53 = arith.constant 0 : index
    %c683 = arith.constant 683 : index
    %53 = vector.load %arg1[%c0_53, %c683] : memref<2x1664xf32, #tpu.memory_space<vmem>>, vector<2x6xf32>
    %c0_54 = arith.constant 0 : index
    %c702 = arith.constant 702 : index
    %54 = vector.load %arg1[%c0_54, %c702] : memref<2x1664xf32, #tpu.memory_space<vmem>>, vector<2x4xf32>
    %c0_55 = arith.constant 0 : index
    %c709 = arith.constant 709 : index
    %55 = vector.load %arg1[%c0_55, %c709] : memref<2x1664xf32, #tpu.memory_space<vmem>>, vector<2x6xf32>
    %c0_56 = arith.constant 0 : index
    %c728 = arith.constant 728 : index
    %56 = vector.load %arg1[%c0_56, %c728] : memref<2x1664xf32, #tpu.memory_space<vmem>>, vector<2x4xf32>
    %c0_57 = arith.constant 0 : index
    %c735 = arith.constant 735 : index
    %57 = vector.load %arg1[%c0_57, %c735] : memref<2x1664xf32, #tpu.memory_space<vmem>>, vector<2x6xf32>
    %c0_58 = arith.constant 0 : index
    %c754 = arith.constant 754 : index
    %58 = vector.load %arg1[%c0_58, %c754] : memref<2x1664xf32, #tpu.memory_space<vmem>>, vector<2x4xf32>
    %c0_59 = arith.constant 0 : index
    %c761 = arith.constant 761 : index
    %59 = vector.load %arg1[%c0_59, %c761] : memref<2x1664xf32, #tpu.memory_space<vmem>>, vector<2x6xf32>
    %c0_60 = arith.constant 0 : index
    %c780 = arith.constant 780 : index
    %60 = vector.load %arg1[%c0_60, %c780] : memref<2x1664xf32, #tpu.memory_space<vmem>>, vector<2x4xf32>
    %c0_61 = arith.constant 0 : index
    %c787 = arith.constant 787 : index
    %61 = vector.load %arg1[%c0_61, %c787] : memref<2x1664xf32, #tpu.memory_space<vmem>>, vector<2x6xf32>
    %c0_62 = arith.constant 0 : index
    %c806 = arith.constant 806 : index
    %62 = vector.load %arg1[%c0_62, %c806] : memref<2x1664xf32, #tpu.memory_space<vmem>>, vector<2x4xf32>
    %c0_63 = arith.constant 0 : index
    %c813 = arith.constant 813 : index
    %63 = vector.load %arg1[%c0_63, %c813] : memref<2x1664xf32, #tpu.memory_space<vmem>>, vector<2x6xf32>
    %c0_64 = arith.constant 0 : index
    %c832 = arith.constant 832 : index
    %64 = vector.load %arg1[%c0_64, %c832] : memref<2x1664xf32, #tpu.memory_space<vmem>>, vector<2x4xf32>
    %c0_65 = arith.constant 0 : index
    %c839 = arith.constant 839 : index
    %65 = vector.load %arg1[%c0_65, %c839] : memref<2x1664xf32, #tpu.memory_space<vmem>>, vector<2x6xf32>
    %c0_66 = arith.constant 0 : index
    %c858 = arith.constant 858 : index
    %66 = vector.load %arg1[%c0_66, %c858] : memref<2x1664xf32, #tpu.memory_space<vmem>>, vector<2x4xf32>
    %c0_67 = arith.constant 0 : index
    %c865 = arith.constant 865 : index
    %67 = vector.load %arg1[%c0_67, %c865] : memref<2x1664xf32, #tpu.memory_space<vmem>>, vector<2x6xf32>
    %c0_68 = arith.constant 0 : index
    %c884 = arith.constant 884 : index
    %68 = vector.load %arg1[%c0_68, %c884] : memref<2x1664xf32, #tpu.memory_space<vmem>>, vector<2x4xf32>
    %c0_69 = arith.constant 0 : index
    %c891 = arith.constant 891 : index
    %69 = vector.load %arg1[%c0_69, %c891] : memref<2x1664xf32, #tpu.memory_space<vmem>>, vector<2x6xf32>
    %c0_70 = arith.constant 0 : index
    %c910 = arith.constant 910 : index
    %70 = vector.load %arg1[%c0_70, %c910] : memref<2x1664xf32, #tpu.memory_space<vmem>>, vector<2x4xf32>
    %c0_71 = arith.constant 0 : index
    %c917 = arith.constant 917 : index
    %71 = vector.load %arg1[%c0_71, %c917] : memref<2x1664xf32, #tpu.memory_space<vmem>>, vector<2x6xf32>
    %c0_72 = arith.constant 0 : index
    %c936 = arith.constant 936 : index
    %72 = vector.load %arg1[%c0_72, %c936] : memref<2x1664xf32, #tpu.memory_space<vmem>>, vector<2x4xf32>
    %c0_73 = arith.constant 0 : index
    %c943 = arith.constant 943 : index
    %73 = vector.load %arg1[%c0_73, %c943] : memref<2x1664xf32, #tpu.memory_space<vmem>>, vector<2x6xf32>
    %c0_74 = arith.constant 0 : index
    %c962 = arith.constant 962 : index
    %74 = vector.load %arg1[%c0_74, %c962] : memref<2x1664xf32, #tpu.memory_space<vmem>>, vector<2x4xf32>
    %c0_75 = arith.constant 0 : index
    %c969 = arith.constant 969 : index
    %75 = vector.load %arg1[%c0_75, %c969] : memref<2x1664xf32, #tpu.memory_space<vmem>>, vector<2x6xf32>
    %c0_76 = arith.constant 0 : index
    %c988 = arith.constant 988 : index
    %76 = vector.load %arg1[%c0_76, %c988] : memref<2x1664xf32, #tpu.memory_space<vmem>>, vector<2x4xf32>
    %c0_77 = arith.constant 0 : index
    %c995 = arith.constant 995 : index
    %77 = vector.load %arg1[%c0_77, %c995] : memref<2x1664xf32, #tpu.memory_space<vmem>>, vector<2x6xf32>
    %c0_78 = arith.constant 0 : index
    %c1014 = arith.constant 1014 : index
    %78 = vector.load %arg1[%c0_78, %c1014] : memref<2x1664xf32, #tpu.memory_space<vmem>>, vector<2x4xf32>
    %c0_79 = arith.constant 0 : index
    %c1021 = arith.constant 1021 : index
    %79 = vector.load %arg1[%c0_79, %c1021] : memref<2x1664xf32, #tpu.memory_space<vmem>>, vector<2x6xf32>
    %c0_80 = arith.constant 0 : index
    %c1040 = arith.constant 1040 : index
    %80 = vector.load %arg1[%c0_80, %c1040] : memref<2x1664xf32, #tpu.memory_space<vmem>>, vector<2x4xf32>
    %c0_81 = arith.constant 0 : index
    %c1047 = arith.constant 1047 : index
    %81 = vector.load %arg1[%c0_81, %c1047] : memref<2x1664xf32, #tpu.memory_space<vmem>>, vector<2x6xf32>
    %c0_82 = arith.constant 0 : index
    %c1066 = arith.constant 1066 : index
    %82 = vector.load %arg1[%c0_82, %c1066] : memref<2x1664xf32, #tpu.memory_space<vmem>>, vector<2x4xf32>
    %c0_83 = arith.constant 0 : index
    %c1073 = arith.constant 1073 : index
    %83 = vector.load %arg1[%c0_83, %c1073] : memref<2x1664xf32, #tpu.memory_space<vmem>>, vector<2x6xf32>
    %c0_84 = arith.constant 0 : index
    %c1092 = arith.constant 1092 : index
    %84 = vector.load %arg1[%c0_84, %c1092] : memref<2x1664xf32, #tpu.memory_space<vmem>>, vector<2x4xf32>
    %c0_85 = arith.constant 0 : index
    %c1099 = arith.constant 1099 : index
    %85 = vector.load %arg1[%c0_85, %c1099] : memref<2x1664xf32, #tpu.memory_space<vmem>>, vector<2x6xf32>
    %c0_86 = arith.constant 0 : index
    %c1118 = arith.constant 1118 : index
    %86 = vector.load %arg1[%c0_86, %c1118] : memref<2x1664xf32, #tpu.memory_space<vmem>>, vector<2x4xf32>
    %c0_87 = arith.constant 0 : index
    %c1125 = arith.constant 1125 : index
    %87 = vector.load %arg1[%c0_87, %c1125] : memref<2x1664xf32, #tpu.memory_space<vmem>>, vector<2x6xf32>
    %c0_88 = arith.constant 0 : index
    %c1144 = arith.constant 1144 : index
    %88 = vector.load %arg1[%c0_88, %c1144] : memref<2x1664xf32, #tpu.memory_space<vmem>>, vector<2x4xf32>
    %c0_89 = arith.constant 0 : index
    %c1151 = arith.constant 1151 : index
    %89 = vector.load %arg1[%c0_89, %c1151] : memref<2x1664xf32, #tpu.memory_space<vmem>>, vector<2x6xf32>
    %c0_90 = arith.constant 0 : index
    %c1170 = arith.constant 1170 : index
    %90 = vector.load %arg1[%c0_90, %c1170] : memref<2x1664xf32, #tpu.memory_space<vmem>>, vector<2x4xf32>
    %c0_91 = arith.constant 0 : index
    %c1177 = arith.constant 1177 : index
    %91 = vector.load %arg1[%c0_91, %c1177] : memref<2x1664xf32, #tpu.memory_space<vmem>>, vector<2x6xf32>
    %c0_92 = arith.constant 0 : index
    %c1196 = arith.constant 1196 : index
    %92 = vector.load %arg1[%c0_92, %c1196] : memref<2x1664xf32, #tpu.memory_space<vmem>>, vector<2x4xf32>
    %c0_93 = arith.constant 0 : index
    %c1203 = arith.constant 1203 : index
    %93 = vector.load %arg1[%c0_93, %c1203] : memref<2x1664xf32, #tpu.memory_space<vmem>>, vector<2x6xf32>
    %c0_94 = arith.constant 0 : index
    %c1222 = arith.constant 1222 : index
    %94 = vector.load %arg1[%c0_94, %c1222] : memref<2x1664xf32, #tpu.memory_space<vmem>>, vector<2x4xf32>
    %c0_95 = arith.constant 0 : index
    %c1229 = arith.constant 1229 : index
    %95 = vector.load %arg1[%c0_95, %c1229] : memref<2x1664xf32, #tpu.memory_space<vmem>>, vector<2x6xf32>
    %c0_96 = arith.constant 0 : index
    %c1248 = arith.constant 1248 : index
    %96 = vector.load %arg1[%c0_96, %c1248] : memref<2x1664xf32, #tpu.memory_space<vmem>>, vector<2x4xf32>
    %c0_97 = arith.constant 0 : index
    %c1255 = arith.constant 1255 : index
    %97 = vector.load %arg1[%c0_97, %c1255] : memref<2x1664xf32, #tpu.memory_space<vmem>>, vector<2x6xf32>
    %c0_98 = arith.constant 0 : index
    %c1274 = arith.constant 1274 : index
    %98 = vector.load %arg1[%c0_98, %c1274] : memref<2x1664xf32, #tpu.memory_space<vmem>>, vector<2x4xf32>
    %c0_99 = arith.constant 0 : index
    %c1281 = arith.constant 1281 : index
    %99 = vector.load %arg1[%c0_99, %c1281] : memref<2x1664xf32, #tpu.memory_space<vmem>>, vector<2x6xf32>
    %c0_100 = arith.constant 0 : index
    %c1300 = arith.constant 1300 : index
    %100 = vector.load %arg1[%c0_100, %c1300] : memref<2x1664xf32, #tpu.memory_space<vmem>>, vector<2x4xf32>
    %c0_101 = arith.constant 0 : index
    %c1307 = arith.constant 1307 : index
    %101 = vector.load %arg1[%c0_101, %c1307] : memref<2x1664xf32, #tpu.memory_space<vmem>>, vector<2x6xf32>
    %c0_102 = arith.constant 0 : index
    %c1326 = arith.constant 1326 : index
    %102 = vector.load %arg1[%c0_102, %c1326] : memref<2x1664xf32, #tpu.memory_space<vmem>>, vector<2x4xf32>
    %c0_103 = arith.constant 0 : index
    %c1333 = arith.constant 1333 : index
    %103 = vector.load %arg1[%c0_103, %c1333] : memref<2x1664xf32, #tpu.memory_space<vmem>>, vector<2x6xf32>
    %c0_104 = arith.constant 0 : index
    %c1352 = arith.constant 1352 : index
    %104 = vector.load %arg1[%c0_104, %c1352] : memref<2x1664xf32, #tpu.memory_space<vmem>>, vector<2x4xf32>
    %c0_105 = arith.constant 0 : index
    %c1359 = arith.constant 1359 : index
    %105 = vector.load %arg1[%c0_105, %c1359] : memref<2x1664xf32, #tpu.memory_space<vmem>>, vector<2x6xf32>
    %c0_106 = arith.constant 0 : index
    %c1378 = arith.constant 1378 : index
    %106 = vector.load %arg1[%c0_106, %c1378] : memref<2x1664xf32, #tpu.memory_space<vmem>>, vector<2x4xf32>
    %c0_107 = arith.constant 0 : index
    %c1385 = arith.constant 1385 : index
    %107 = vector.load %arg1[%c0_107, %c1385] : memref<2x1664xf32, #tpu.memory_space<vmem>>, vector<2x6xf32>
    %c0_108 = arith.constant 0 : index
    %c1404 = arith.constant 1404 : index
    %108 = vector.load %arg1[%c0_108, %c1404] : memref<2x1664xf32, #tpu.memory_space<vmem>>, vector<2x4xf32>
    %c0_109 = arith.constant 0 : index
    %c1411 = arith.constant 1411 : index
    %109 = vector.load %arg1[%c0_109, %c1411] : memref<2x1664xf32, #tpu.memory_space<vmem>>, vector<2x6xf32>
    %c0_110 = arith.constant 0 : index
    %c1430 = arith.constant 1430 : index
    %110 = vector.load %arg1[%c0_110, %c1430] : memref<2x1664xf32, #tpu.memory_space<vmem>>, vector<2x4xf32>
    %c0_111 = arith.constant 0 : index
    %c1437 = arith.constant 1437 : index
    %111 = vector.load %arg1[%c0_111, %c1437] : memref<2x1664xf32, #tpu.memory_space<vmem>>, vector<2x6xf32>
    %c0_112 = arith.constant 0 : index
    %c1456 = arith.constant 1456 : index
    %112 = vector.load %arg1[%c0_112, %c1456] : memref<2x1664xf32, #tpu.memory_space<vmem>>, vector<2x4xf32>
    %c0_113 = arith.constant 0 : index
    %c1463 = arith.constant 1463 : index
    %113 = vector.load %arg1[%c0_113, %c1463] : memref<2x1664xf32, #tpu.memory_space<vmem>>, vector<2x6xf32>
    %c0_114 = arith.constant 0 : index
    %c1482 = arith.constant 1482 : index
    %114 = vector.load %arg1[%c0_114, %c1482] : memref<2x1664xf32, #tpu.memory_space<vmem>>, vector<2x4xf32>
    %c0_115 = arith.constant 0 : index
    %c1489 = arith.constant 1489 : index
    %115 = vector.load %arg1[%c0_115, %c1489] : memref<2x1664xf32, #tpu.memory_space<vmem>>, vector<2x6xf32>
    %c0_116 = arith.constant 0 : index
    %c1508 = arith.constant 1508 : index
    %116 = vector.load %arg1[%c0_116, %c1508] : memref<2x1664xf32, #tpu.memory_space<vmem>>, vector<2x4xf32>
    %c0_117 = arith.constant 0 : index
    %c1515 = arith.constant 1515 : index
    %117 = vector.load %arg1[%c0_117, %c1515] : memref<2x1664xf32, #tpu.memory_space<vmem>>, vector<2x6xf32>
    %c0_118 = arith.constant 0 : index
    %c1534 = arith.constant 1534 : index
    %118 = vector.load %arg1[%c0_118, %c1534] : memref<2x1664xf32, #tpu.memory_space<vmem>>, vector<2x4xf32>
    %c0_119 = arith.constant 0 : index
    %c1541 = arith.constant 1541 : index
    %119 = vector.load %arg1[%c0_119, %c1541] : memref<2x1664xf32, #tpu.memory_space<vmem>>, vector<2x6xf32>
    %c0_120 = arith.constant 0 : index
    %c1560 = arith.constant 1560 : index
    %120 = vector.load %arg1[%c0_120, %c1560] : memref<2x1664xf32, #tpu.memory_space<vmem>>, vector<2x4xf32>
    %c0_121 = arith.constant 0 : index
    %c1567 = arith.constant 1567 : index
    %121 = vector.load %arg1[%c0_121, %c1567] : memref<2x1664xf32, #tpu.memory_space<vmem>>, vector<2x6xf32>
    %c0_122 = arith.constant 0 : index
    %c1586 = arith.constant 1586 : index
    %122 = vector.load %arg1[%c0_122, %c1586] : memref<2x1664xf32, #tpu.memory_space<vmem>>, vector<2x4xf32>
    %c0_123 = arith.constant 0 : index
    %c1593 = arith.constant 1593 : index
    %123 = vector.load %arg1[%c0_123, %c1593] : memref<2x1664xf32, #tpu.memory_space<vmem>>, vector<2x6xf32>
    %c0_124 = arith.constant 0 : index
    %c1612 = arith.constant 1612 : index
    %124 = vector.load %arg1[%c0_124, %c1612] : memref<2x1664xf32, #tpu.memory_space<vmem>>, vector<2x4xf32>
    %c0_125 = arith.constant 0 : index
    %c1619 = arith.constant 1619 : index
    %125 = vector.load %arg1[%c0_125, %c1619] : memref<2x1664xf32, #tpu.memory_space<vmem>>, vector<2x6xf32>
    %c0_126 = arith.constant 0 : index
    %c1638 = arith.constant 1638 : index
    %126 = vector.load %arg1[%c0_126, %c1638] : memref<2x1664xf32, #tpu.memory_space<vmem>>, vector<2x4xf32>
    %c0_127 = arith.constant 0 : index
    %c1645 = arith.constant 1645 : index
    %127 = vector.load %arg1[%c0_127, %c1645] : memref<2x1664xf32, #tpu.memory_space<vmem>>, vector<2x6xf32>
    %128 = tpu.concatenate %0, %1, %2, %3, %4, %5, %6, %7, %8, %9, %10, %11, %12, %13, %14, %15 in 1 : vector<2x4xf32>, vector<2x6xf32>, vector<2x4xf32>, vector<2x6xf32>, vector<2x4xf32>, vector<2x6xf32>, vector<2x4xf32>, vector<2x6xf32>, vector<2x4xf32>, vector<2x6xf32>, vector<2x4xf32>, vector<2x6xf32>, vector<2x4xf32>, vector<2x6xf32>, vector<2x4xf32>, vector<2x6xf32> -> vector<2x80xf32>
    %129 = tpu.concatenate %16, %17, %18, %19, %20, %21, %22, %23, %24, %25, %26, %27, %28, %29, %30, %31 in 1 : vector<2x4xf32>, vector<2x6xf32>, vector<2x4xf32>, vector<2x6xf32>, vector<2x4xf32>, vector<2x6xf32>, vector<2x4xf32>, vector<2x6xf32>, vector<2x4xf32>, vector<2x6xf32>, vector<2x4xf32>, vector<2x6xf32>, vector<2x4xf32>, vector<2x6xf32>, vector<2x4xf32>, vector<2x6xf32> -> vector<2x80xf32>
    %130 = tpu.concatenate %32, %33, %34, %35, %36, %37, %38, %39, %40, %41, %42, %43, %44, %45, %46, %47 in 1 : vector<2x4xf32>, vector<2x6xf32>, vector<2x4xf32>, vector<2x6xf32>, vector<2x4xf32>, vector<2x6xf32>, vector<2x4xf32>, vector<2x6xf32>, vector<2x4xf32>, vector<2x6xf32>, vector<2x4xf32>, vector<2x6xf32>, vector<2x4xf32>, vector<2x6xf32>, vector<2x4xf32>, vector<2x6xf32> -> vector<2x80xf32>
    %131 = tpu.concatenate %48, %49, %50, %51, %52, %53, %54, %55, %56, %57, %58, %59, %60, %61, %62, %63 in 1 : vector<2x4xf32>, vector<2x6xf32>, vector<2x4xf32>, vector<2x6xf32>, vector<2x4xf32>, vector<2x6xf32>, vector<2x4xf32>, vector<2x6xf32>, vector<2x4xf32>, vector<2x6xf32>, vector<2x4xf32>, vector<2x6xf32>, vector<2x4xf32>, vector<2x6xf32>, vector<2x4xf32>, vector<2x6xf32> -> vector<2x80xf32>
    %132 = tpu.concatenate %64, %65, %66, %67, %68, %69, %70, %71, %72, %73, %74, %75, %76, %77, %78, %79 in 1 : vector<2x4xf32>, vector<2x6xf32>, vector<2x4xf32>, vector<2x6xf32>, vector<2x4xf32>, vector<2x6xf32>, vector<2x4xf32>, vector<2x6xf32>, vector<2x4xf32>, vector<2x6xf32>, vector<2x4xf32>, vector<2x6xf32>, vector<2x4xf32>, vector<2x6xf32>, vector<2x4xf32>, vector<2x6xf32> -> vector<2x80xf32>
    %133 = tpu.concatenate %80, %81, %82, %83, %84, %85, %86, %87, %88, %89, %90, %91, %92, %93, %94, %95 in 1 : vector<2x4xf32>, vector<2x6xf32>, vector<2x4xf32>, vector<2x6xf32>, vector<2x4xf32>, vector<2x6xf32>, vector<2x4xf32>, vector<2x6xf32>, vector<2x4xf32>, vector<2x6xf32>, vector<2x4xf32>, vector<2x6xf32>, vector<2x4xf32>, vector<2x6xf32>, vector<2x4xf32>, vector<2x6xf32> -> vector<2x80xf32>
    %134 = tpu.concatenate %96, %97, %98, %99, %100, %101, %102, %103, %104, %105, %106, %107, %108, %109, %110, %111 in 1 : vector<2x4xf32>, vector<2x6xf32>, vector<2x4xf32>, vector<2x6xf32>, vector<2x4xf32>, vector<2x6xf32>, vector<2x4xf32>, vector<2x6xf32>, vector<2x4xf32>, vector<2x6xf32>, vector<2x4xf32>, vector<2x6xf32>, vector<2x4xf32>, vector<2x6xf32>, vector<2x4xf32>, vector<2x6xf32> -> vector<2x80xf32>
    %135 = tpu.concatenate %112, %113, %114, %115, %116, %117, %118, %119, %120, %121, %122, %123, %124, %125, %126, %127 in 1 : vector<2x4xf32>, vector<2x6xf32>, vector<2x4xf32>, vector<2x6xf32>, vector<2x4xf32>, vector<2x6xf32>, vector<2x4xf32>, vector<2x6xf32>, vector<2x4xf32>, vector<2x6xf32>, vector<2x4xf32>, vector<2x6xf32>, vector<2x4xf32>, vector<2x6xf32>, vector<2x4xf32>, vector<2x6xf32> -> vector<2x80xf32>
    %136 = tpu.concatenate %128, %129, %130, %131, %132, %133, %134, %135 in 1 : vector<2x80xf32>, vector<2x80xf32>, vector<2x80xf32>, vector<2x80xf32>, vector<2x80xf32>, vector<2x80xf32>, vector<2x80xf32>, vector<2x80xf32> -> vector<2x640xf32>
    %c0_128 = arith.constant 0 : index
    %c0_129 = arith.constant 0 : index
    %137 = vector.load %arg2[%c0_128, %c0_129] : memref<2x640xf32, #tpu.memory_space<vmem>>, vector<2x640xf32>
    tpu.vector_store %arg2[%c0_128, %c0_129], %136 {strides = array<i32>} : memref<2x640xf32, #tpu.memory_space<vmem>>, vector<2x640xf32>,
    %c0_130 = arith.constant 0 : index
    %c4 = arith.constant 4 : index
    %138 = vector.load %arg1[%c0_130, %c4] : memref<2x1664xf32, #tpu.memory_space<vmem>>, vector<2x3xf32>
    %c0_131 = arith.constant 0 : index
    %c13 = arith.constant 13 : index
    %139 = vector.load %arg1[%c0_131, %c13] : memref<2x1664xf32, #tpu.memory_space<vmem>>, vector<2x13xf32>
    %c0_132 = arith.constant 0 : index
    %c30 = arith.constant 30 : index
    %140 = vector.load %arg1[%c0_132, %c30] : memref<2x1664xf32, #tpu.memory_space<vmem>>, vector<2x3xf32>
    %c0_133 = arith.constant 0 : index
    %c39 = arith.constant 39 : index
    %141 = vector.load %arg1[%c0_133, %c39] : memref<2x1664xf32, #tpu.memory_space<vmem>>, vector<2x13xf32>
    %c0_134 = arith.constant 0 : index
    %c56 = arith.constant 56 : index
    %142 = vector.load %arg1[%c0_134, %c56] : memref<2x1664xf32, #tpu.memory_space<vmem>>, vector<2x3xf32>
    %c0_135 = arith.constant 0 : index
    %c65 = arith.constant 65 : index
    %143 = vector.load %arg1[%c0_135, %c65] : memref<2x1664xf32, #tpu.memory_space<vmem>>, vector<2x13xf32>
    %c0_136 = arith.constant 0 : index
    %c82 = arith.constant 82 : index
    %144 = vector.load %arg1[%c0_136, %c82] : memref<2x1664xf32, #tpu.memory_space<vmem>>, vector<2x3xf32>
    %c0_137 = arith.constant 0 : index
    %c91 = arith.constant 91 : index
    %145 = vector.load %arg1[%c0_137, %c91] : memref<2x1664xf32, #tpu.memory_space<vmem>>, vector<2x13xf32>
    %c0_138 = arith.constant 0 : index
    %c108 = arith.constant 108 : index
    %146 = vector.load %arg1[%c0_138, %c108] : memref<2x1664xf32, #tpu.memory_space<vmem>>, vector<2x3xf32>
    %c0_139 = arith.constant 0 : index
    %c117 = arith.constant 117 : index
    %147 = vector.load %arg1[%c0_139, %c117] : memref<2x1664xf32, #tpu.memory_space<vmem>>, vector<2x13xf32>
    %c0_140 = arith.constant 0 : index
    %c134 = arith.constant 134 : index
    %148 = vector.load %arg1[%c0_140, %c134] : memref<2x1664xf32, #tpu.memory_space<vmem>>, vector<2x3xf32>
    %c0_141 = arith.constant 0 : index
    %c143 = arith.constant 143 : index
    %149 = vector.load %arg1[%c0_141, %c143] : memref<2x1664xf32, #tpu.memory_space<vmem>>, vector<2x13xf32>
    %c0_142 = arith.constant 0 : index
    %c160 = arith.constant 160 : index
    %150 = vector.load %arg1[%c0_142, %c160] : memref<2x1664xf32, #tpu.memory_space<vmem>>, vector<2x3xf32>
    %c0_143 = arith.constant 0 : index
    %c169 = arith.constant 169 : index
    %151 = vector.load %arg1[%c0_143, %c169] : memref<2x1664xf32, #tpu.memory_space<vmem>>, vector<2x13xf32>
    %c0_144 = arith.constant 0 : index
    %c186 = arith.constant 186 : index
    %152 = vector.load %arg1[%c0_144, %c186] : memref<2x1664xf32, #tpu.memory_space<vmem>>, vector<2x3xf32>
    %c0_145 = arith.constant 0 : index
    %c195 = arith.constant 195 : index
    %153 = vector.load %arg1[%c0_145, %c195] : memref<2x1664xf32, #tpu.memory_space<vmem>>, vector<2x13xf32>
    %c0_146 = arith.constant 0 : index
    %c212 = arith.constant 212 : index
    %154 = vector.load %arg1[%c0_146, %c212] : memref<2x1664xf32, #tpu.memory_space<vmem>>, vector<2x3xf32>
    %c0_147 = arith.constant 0 : index
    %c221 = arith.constant 221 : index
    %155 = vector.load %arg1[%c0_147, %c221] : memref<2x1664xf32, #tpu.memory_space<vmem>>, vector<2x13xf32>
    %c0_148 = arith.constant 0 : index
    %c238 = arith.constant 238 : index
    %156 = vector.load %arg1[%c0_148, %c238] : memref<2x1664xf32, #tpu.memory_space<vmem>>, vector<2x3xf32>
    %c0_149 = arith.constant 0 : index
    %c247 = arith.constant 247 : index
    %157 = vector.load %arg1[%c0_149, %c247] : memref<2x1664xf32, #tpu.memory_space<vmem>>, vector<2x13xf32>
    %c0_150 = arith.constant 0 : index
    %c264 = arith.constant 264 : index
    %158 = vector.load %arg1[%c0_150, %c264] : memref<2x1664xf32, #tpu.memory_space<vmem>>, vector<2x3xf32>
    %c0_151 = arith.constant 0 : index
    %c273 = arith.constant 273 : index
    %159 = vector.load %arg1[%c0_151, %c273] : memref<2x1664xf32, #tpu.memory_space<vmem>>, vector<2x13xf32>
    %c0_152 = arith.constant 0 : index
    %c290 = arith.constant 290 : index
    %160 = vector.load %arg1[%c0_152, %c290] : memref<2x1664xf32, #tpu.memory_space<vmem>>, vector<2x3xf32>
    %c0_153 = arith.constant 0 : index
    %c299 = arith.constant 299 : index
    %161 = vector.load %arg1[%c0_153, %c299] : memref<2x1664xf32, #tpu.memory_space<vmem>>, vector<2x13xf32>
    %c0_154 = arith.constant 0 : index
    %c316 = arith.constant 316 : index
    %162 = vector.load %arg1[%c0_154, %c316] : memref<2x1664xf32, #tpu.memory_space<vmem>>, vector<2x3xf32>
    %c0_155 = arith.constant 0 : index
    %c325 = arith.constant 325 : index
    %163 = vector.load %arg1[%c0_155, %c325] : memref<2x1664xf32, #tpu.memory_space<vmem>>, vector<2x13xf32>
    %c0_156 = arith.constant 0 : index
    %c342 = arith.constant 342 : index
    %164 = vector.load %arg1[%c0_156, %c342] : memref<2x1664xf32, #tpu.memory_space<vmem>>, vector<2x3xf32>
    %c0_157 = arith.constant 0 : index
    %c351 = arith.constant 351 : index
    %165 = vector.load %arg1[%c0_157, %c351] : memref<2x1664xf32, #tpu.memory_space<vmem>>, vector<2x13xf32>
    %c0_158 = arith.constant 0 : index
    %c368 = arith.constant 368 : index
    %166 = vector.load %arg1[%c0_158, %c368] : memref<2x1664xf32, #tpu.memory_space<vmem>>, vector<2x3xf32>
    %c0_159 = arith.constant 0 : index
    %c377 = arith.constant 377 : index
    %167 = vector.load %arg1[%c0_159, %c377] : memref<2x1664xf32, #tpu.memory_space<vmem>>, vector<2x13xf32>
    %c0_160 = arith.constant 0 : index
    %c394 = arith.constant 394 : index
    %168 = vector.load %arg1[%c0_160, %c394] : memref<2x1664xf32, #tpu.memory_space<vmem>>, vector<2x3xf32>
    %c0_161 = arith.constant 0 : index
    %c403 = arith.constant 403 : index
    %169 = vector.load %arg1[%c0_161, %c403] : memref<2x1664xf32, #tpu.memory_space<vmem>>, vector<2x13xf32>
    %c0_162 = arith.constant 0 : index
    %c420 = arith.constant 420 : index
    %170 = vector.load %arg1[%c0_162, %c420] : memref<2x1664xf32, #tpu.memory_space<vmem>>, vector<2x3xf32>
    %c0_163 = arith.constant 0 : index
    %c429 = arith.constant 429 : index
    %171 = vector.load %arg1[%c0_163, %c429] : memref<2x1664xf32, #tpu.memory_space<vmem>>, vector<2x13xf32>
    %c0_164 = arith.constant 0 : index
    %c446 = arith.constant 446 : index
    %172 = vector.load %arg1[%c0_164, %c446] : memref<2x1664xf32, #tpu.memory_space<vmem>>, vector<2x3xf32>
    %c0_165 = arith.constant 0 : index
    %c455 = arith.constant 455 : index
    %173 = vector.load %arg1[%c0_165, %c455] : memref<2x1664xf32, #tpu.memory_space<vmem>>, vector<2x13xf32>
    %c0_166 = arith.constant 0 : index
    %c472 = arith.constant 472 : index
    %174 = vector.load %arg1[%c0_166, %c472] : memref<2x1664xf32, #tpu.memory_space<vmem>>, vector<2x3xf32>
    %c0_167 = arith.constant 0 : index
    %c481 = arith.constant 481 : index
    %175 = vector.load %arg1[%c0_167, %c481] : memref<2x1664xf32, #tpu.memory_space<vmem>>, vector<2x13xf32>
    %c0_168 = arith.constant 0 : index
    %c498 = arith.constant 498 : index
    %176 = vector.load %arg1[%c0_168, %c498] : memref<2x1664xf32, #tpu.memory_space<vmem>>, vector<2x3xf32>
    %c0_169 = arith.constant 0 : index
    %c507 = arith.constant 507 : index
    %177 = vector.load %arg1[%c0_169, %c507] : memref<2x1664xf32, #tpu.memory_space<vmem>>, vector<2x13xf32>
    %c0_170 = arith.constant 0 : index
    %c524 = arith.constant 524 : index
    %178 = vector.load %arg1[%c0_170, %c524] : memref<2x1664xf32, #tpu.memory_space<vmem>>, vector<2x3xf32>
    %c0_171 = arith.constant 0 : index
    %c533 = arith.constant 533 : index
    %179 = vector.load %arg1[%c0_171, %c533] : memref<2x1664xf32, #tpu.memory_space<vmem>>, vector<2x13xf32>
    %c0_172 = arith.constant 0 : index
    %c550 = arith.constant 550 : index
    %180 = vector.load %arg1[%c0_172, %c550] : memref<2x1664xf32, #tpu.memory_space<vmem>>, vector<2x3xf32>
    %c0_173 = arith.constant 0 : index
    %c559 = arith.constant 559 : index
    %181 = vector.load %arg1[%c0_173, %c559] : memref<2x1664xf32, #tpu.memory_space<vmem>>, vector<2x13xf32>
    %c0_174 = arith.constant 0 : index
    %c576 = arith.constant 576 : index
    %182 = vector.load %arg1[%c0_174, %c576] : memref<2x1664xf32, #tpu.memory_space<vmem>>, vector<2x3xf32>
    %c0_175 = arith.constant 0 : index
    %c585 = arith.constant 585 : index
    %183 = vector.load %arg1[%c0_175, %c585] : memref<2x1664xf32, #tpu.memory_space<vmem>>, vector<2x13xf32>
    %c0_176 = arith.constant 0 : index
    %c602 = arith.constant 602 : index
    %184 = vector.load %arg1[%c0_176, %c602] : memref<2x1664xf32, #tpu.memory_space<vmem>>, vector<2x3xf32>
    %c0_177 = arith.constant 0 : index
    %c611 = arith.constant 611 : index
    %185 = vector.load %arg1[%c0_177, %c611] : memref<2x1664xf32, #tpu.memory_space<vmem>>, vector<2x13xf32>
    %c0_178 = arith.constant 0 : index
    %c628 = arith.constant 628 : index
    %186 = vector.load %arg1[%c0_178, %c628] : memref<2x1664xf32, #tpu.memory_space<vmem>>, vector<2x3xf32>
    %c0_179 = arith.constant 0 : index
    %c637 = arith.constant 637 : index
    %187 = vector.load %arg1[%c0_179, %c637] : memref<2x1664xf32, #tpu.memory_space<vmem>>, vector<2x13xf32>
    %c0_180 = arith.constant 0 : index
    %c654 = arith.constant 654 : index
    %188 = vector.load %arg1[%c0_180, %c654] : memref<2x1664xf32, #tpu.memory_space<vmem>>, vector<2x3xf32>
    %c0_181 = arith.constant 0 : index
    %c663 = arith.constant 663 : index
    %189 = vector.load %arg1[%c0_181, %c663] : memref<2x1664xf32, #tpu.memory_space<vmem>>, vector<2x13xf32>
    %c0_182 = arith.constant 0 : index
    %c680 = arith.constant 680 : index
    %190 = vector.load %arg1[%c0_182, %c680] : memref<2x1664xf32, #tpu.memory_space<vmem>>, vector<2x3xf32>
    %c0_183 = arith.constant 0 : index
    %c689 = arith.constant 689 : index
    %191 = vector.load %arg1[%c0_183, %c689] : memref<2x1664xf32, #tpu.memory_space<vmem>>, vector<2x13xf32>
    %c0_184 = arith.constant 0 : index
    %c706 = arith.constant 706 : index
    %192 = vector.load %arg1[%c0_184, %c706] : memref<2x1664xf32, #tpu.memory_space<vmem>>, vector<2x3xf32>
    %c0_185 = arith.constant 0 : index
    %c715 = arith.constant 715 : index
    %193 = vector.load %arg1[%c0_185, %c715] : memref<2x1664xf32, #tpu.memory_space<vmem>>, vector<2x13xf32>
    %c0_186 = arith.constant 0 : index
    %c732 = arith.constant 732 : index
    %194 = vector.load %arg1[%c0_186, %c732] : memref<2x1664xf32, #tpu.memory_space<vmem>>, vector<2x3xf32>
    %c0_187 = arith.constant 0 : index
    %c741 = arith.constant 741 : index
    %195 = vector.load %arg1[%c0_187, %c741] : memref<2x1664xf32, #tpu.memory_space<vmem>>, vector<2x13xf32>
    %c0_188 = arith.constant 0 : index
    %c758 = arith.constant 758 : index
    %196 = vector.load %arg1[%c0_188, %c758] : memref<2x1664xf32, #tpu.memory_space<vmem>>, vector<2x3xf32>
    %c0_189 = arith.constant 0 : index
    %c767 = arith.constant 767 : index
    %197 = vector.load %arg1[%c0_189, %c767] : memref<2x1664xf32, #tpu.memory_space<vmem>>, vector<2x13xf32>
    %c0_190 = arith.constant 0 : index
    %c784 = arith.constant 784 : index
    %198 = vector.load %arg1[%c0_190, %c784] : memref<2x1664xf32, #tpu.memory_space<vmem>>, vector<2x3xf32>
    %c0_191 = arith.constant 0 : index
    %c793 = arith.constant 793 : index
    %199 = vector.load %arg1[%c0_191, %c793] : memref<2x1664xf32, #tpu.memory_space<vmem>>, vector<2x13xf32>
    %c0_192 = arith.constant 0 : index
    %c810 = arith.constant 810 : index
    %200 = vector.load %arg1[%c0_192, %c810] : memref<2x1664xf32, #tpu.memory_space<vmem>>, vector<2x3xf32>
    %c0_193 = arith.constant 0 : index
    %c819 = arith.constant 819 : index
    %201 = vector.load %arg1[%c0_193, %c819] : memref<2x1664xf32, #tpu.memory_space<vmem>>, vector<2x13xf32>
    %c0_194 = arith.constant 0 : index
    %c836 = arith.constant 836 : index
    %202 = vector.load %arg1[%c0_194, %c836] : memref<2x1664xf32, #tpu.memory_space<vmem>>, vector<2x3xf32>
    %c0_195 = arith.constant 0 : index
    %c845 = arith.constant 845 : index
    %203 = vector.load %arg1[%c0_195, %c845] : memref<2x1664xf32, #tpu.memory_space<vmem>>, vector<2x13xf32>
    %c0_196 = arith.constant 0 : index
    %c862 = arith.constant 862 : index
    %204 = vector.load %arg1[%c0_196, %c862] : memref<2x1664xf32, #tpu.memory_space<vmem>>, vector<2x3xf32>
    %c0_197 = arith.constant 0 : index
    %c871 = arith.constant 871 : index
    %205 = vector.load %arg1[%c0_197, %c871] : memref<2x1664xf32, #tpu.memory_space<vmem>>, vector<2x13xf32>
    %c0_198 = arith.constant 0 : index
    %c888 = arith.constant 888 : index
    %206 = vector.load %arg1[%c0_198, %c888] : memref<2x1664xf32, #tpu.memory_space<vmem>>, vector<2x3xf32>
    %c0_199 = arith.constant 0 : index
    %c897 = arith.constant 897 : index
    %207 = vector.load %arg1[%c0_199, %c897] : memref<2x1664xf32, #tpu.memory_space<vmem>>, vector<2x13xf32>
    %c0_200 = arith.constant 0 : index
    %c914 = arith.constant 914 : index
    %208 = vector.load %arg1[%c0_200, %c914] : memref<2x1664xf32, #tpu.memory_space<vmem>>, vector<2x3xf32>
    %c0_201 = arith.constant 0 : index
    %c923 = arith.constant 923 : index
    %209 = vector.load %arg1[%c0_201, %c923] : memref<2x1664xf32, #tpu.memory_space<vmem>>, vector<2x13xf32>
    %c0_202 = arith.constant 0 : index
    %c940 = arith.constant 940 : index
    %210 = vector.load %arg1[%c0_202, %c940] : memref<2x1664xf32, #tpu.memory_space<vmem>>, vector<2x3xf32>
    %c0_203 = arith.constant 0 : index
    %c949 = arith.constant 949 : index
    %211 = vector.load %arg1[%c0_203, %c949] : memref<2x1664xf32, #tpu.memory_space<vmem>>, vector<2x13xf32>
    %c0_204 = arith.constant 0 : index
    %c966 = arith.constant 966 : index
    %212 = vector.load %arg1[%c0_204, %c966] : memref<2x1664xf32, #tpu.memory_space<vmem>>, vector<2x3xf32>
    %c0_205 = arith.constant 0 : index
    %c975 = arith.constant 975 : index
    %213 = vector.load %arg1[%c0_205, %c975] : memref<2x1664xf32, #tpu.memory_space<vmem>>, vector<2x13xf32>
    %c0_206 = arith.constant 0 : index
    %c992 = arith.constant 992 : index
    %214 = vector.load %arg1[%c0_206, %c992] : memref<2x1664xf32, #tpu.memory_space<vmem>>, vector<2x3xf32>
    %c0_207 = arith.constant 0 : index
    %c1001 = arith.constant 1001 : index
    %215 = vector.load %arg1[%c0_207, %c1001] : memref<2x1664xf32, #tpu.memory_space<vmem>>, vector<2x13xf32>
    %c0_208 = arith.constant 0 : index
    %c1018 = arith.constant 1018 : index
    %216 = vector.load %arg1[%c0_208, %c1018] : memref<2x1664xf32, #tpu.memory_space<vmem>>, vector<2x3xf32>
    %c0_209 = arith.constant 0 : index
    %c1027 = arith.constant 1027 : index
    %217 = vector.load %arg1[%c0_209, %c1027] : memref<2x1664xf32, #tpu.memory_space<vmem>>, vector<2x13xf32>
    %c0_210 = arith.constant 0 : index
    %c1044 = arith.constant 1044 : index
    %218 = vector.load %arg1[%c0_210, %c1044] : memref<2x1664xf32, #tpu.memory_space<vmem>>, vector<2x3xf32>
    %c0_211 = arith.constant 0 : index
    %c1053 = arith.constant 1053 : index
    %219 = vector.load %arg1[%c0_211, %c1053] : memref<2x1664xf32, #tpu.memory_space<vmem>>, vector<2x13xf32>
    %c0_212 = arith.constant 0 : index
    %c1070 = arith.constant 1070 : index
    %220 = vector.load %arg1[%c0_212, %c1070] : memref<2x1664xf32, #tpu.memory_space<vmem>>, vector<2x3xf32>
    %c0_213 = arith.constant 0 : index
    %c1079 = arith.constant 1079 : index
    %221 = vector.load %arg1[%c0_213, %c1079] : memref<2x1664xf32, #tpu.memory_space<vmem>>, vector<2x13xf32>
    %c0_214 = arith.constant 0 : index
    %c1096 = arith.constant 1096 : index
    %222 = vector.load %arg1[%c0_214, %c1096] : memref<2x1664xf32, #tpu.memory_space<vmem>>, vector<2x3xf32>
    %c0_215 = arith.constant 0 : index
    %c1105 = arith.constant 1105 : index
    %223 = vector.load %arg1[%c0_215, %c1105] : memref<2x1664xf32, #tpu.memory_space<vmem>>, vector<2x13xf32>
    %c0_216 = arith.constant 0 : index
    %c1122 = arith.constant 1122 : index
    %224 = vector.load %arg1[%c0_216, %c1122] : memref<2x1664xf32, #tpu.memory_space<vmem>>, vector<2x3xf32>
    %c0_217 = arith.constant 0 : index
    %c1131 = arith.constant 1131 : index
    %225 = vector.load %arg1[%c0_217, %c1131] : memref<2x1664xf32, #tpu.memory_space<vmem>>, vector<2x13xf32>
    %c0_218 = arith.constant 0 : index
    %c1148 = arith.constant 1148 : index
    %226 = vector.load %arg1[%c0_218, %c1148] : memref<2x1664xf32, #tpu.memory_space<vmem>>, vector<2x3xf32>
    %c0_219 = arith.constant 0 : index
    %c1157 = arith.constant 1157 : index
    %227 = vector.load %arg1[%c0_219, %c1157] : memref<2x1664xf32, #tpu.memory_space<vmem>>, vector<2x13xf32>
    %c0_220 = arith.constant 0 : index
    %c1174 = arith.constant 1174 : index
    %228 = vector.load %arg1[%c0_220, %c1174] : memref<2x1664xf32, #tpu.memory_space<vmem>>, vector<2x3xf32>
    %c0_221 = arith.constant 0 : index
    %c1183 = arith.constant 1183 : index
    %229 = vector.load %arg1[%c0_221, %c1183] : memref<2x1664xf32, #tpu.memory_space<vmem>>, vector<2x13xf32>
    %c0_222 = arith.constant 0 : index
    %c1200 = arith.constant 1200 : index
    %230 = vector.load %arg1[%c0_222, %c1200] : memref<2x1664xf32, #tpu.memory_space<vmem>>, vector<2x3xf32>
    %c0_223 = arith.constant 0 : index
    %c1209 = arith.constant 1209 : index
    %231 = vector.load %arg1[%c0_223, %c1209] : memref<2x1664xf32, #tpu.memory_space<vmem>>, vector<2x13xf32>
    %c0_224 = arith.constant 0 : index
    %c1226 = arith.constant 1226 : index
    %232 = vector.load %arg1[%c0_224, %c1226] : memref<2x1664xf32, #tpu.memory_space<vmem>>, vector<2x3xf32>
    %c0_225 = arith.constant 0 : index
    %c1235 = arith.constant 1235 : index
    %233 = vector.load %arg1[%c0_225, %c1235] : memref<2x1664xf32, #tpu.memory_space<vmem>>, vector<2x13xf32>
    %c0_226 = arith.constant 0 : index
    %c1252 = arith.constant 1252 : index
    %234 = vector.load %arg1[%c0_226, %c1252] : memref<2x1664xf32, #tpu.memory_space<vmem>>, vector<2x3xf32>
    %c0_227 = arith.constant 0 : index
    %c1261 = arith.constant 1261 : index
    %235 = vector.load %arg1[%c0_227, %c1261] : memref<2x1664xf32, #tpu.memory_space<vmem>>, vector<2x13xf32>
    %c0_228 = arith.constant 0 : index
    %c1278 = arith.constant 1278 : index
    %236 = vector.load %arg1[%c0_228, %c1278] : memref<2x1664xf32, #tpu.memory_space<vmem>>, vector<2x3xf32>
    %c0_229 = arith.constant 0 : index
    %c1287 = arith.constant 1287 : index
    %237 = vector.load %arg1[%c0_229, %c1287] : memref<2x1664xf32, #tpu.memory_space<vmem>>, vector<2x13xf32>
    %c0_230 = arith.constant 0 : index
    %c1304 = arith.constant 1304 : index
    %238 = vector.load %arg1[%c0_230, %c1304] : memref<2x1664xf32, #tpu.memory_space<vmem>>, vector<2x3xf32>
    %c0_231 = arith.constant 0 : index
    %c1313 = arith.constant 1313 : index
    %239 = vector.load %arg1[%c0_231, %c1313] : memref<2x1664xf32, #tpu.memory_space<vmem>>, vector<2x13xf32>
    %c0_232 = arith.constant 0 : index
    %c1330 = arith.constant 1330 : index
    %240 = vector.load %arg1[%c0_232, %c1330] : memref<2x1664xf32, #tpu.memory_space<vmem>>, vector<2x3xf32>
    %c0_233 = arith.constant 0 : index
    %c1339 = arith.constant 1339 : index
    %241 = vector.load %arg1[%c0_233, %c1339] : memref<2x1664xf32, #tpu.memory_space<vmem>>, vector<2x13xf32>
    %c0_234 = arith.constant 0 : index
    %c1356 = arith.constant 1356 : index
    %242 = vector.load %arg1[%c0_234, %c1356] : memref<2x1664xf32, #tpu.memory_space<vmem>>, vector<2x3xf32>
    %c0_235 = arith.constant 0 : index
    %c1365 = arith.constant 1365 : index
    %243 = vector.load %arg1[%c0_235, %c1365] : memref<2x1664xf32, #tpu.memory_space<vmem>>, vector<2x13xf32>
    %c0_236 = arith.constant 0 : index
    %c1382 = arith.constant 1382 : index
    %244 = vector.load %arg1[%c0_236, %c1382] : memref<2x1664xf32, #tpu.memory_space<vmem>>, vector<2x3xf32>
    %c0_237 = arith.constant 0 : index
    %c1391 = arith.constant 1391 : index
    %245 = vector.load %arg1[%c0_237, %c1391] : memref<2x1664xf32, #tpu.memory_space<vmem>>, vector<2x13xf32>
    %c0_238 = arith.constant 0 : index
    %c1408 = arith.constant 1408 : index
    %246 = vector.load %arg1[%c0_238, %c1408] : memref<2x1664xf32, #tpu.memory_space<vmem>>, vector<2x3xf32>
    %c0_239 = arith.constant 0 : index
    %c1417 = arith.constant 1417 : index
    %247 = vector.load %arg1[%c0_239, %c1417] : memref<2x1664xf32, #tpu.memory_space<vmem>>, vector<2x13xf32>
    %c0_240 = arith.constant 0 : index
    %c1434 = arith.constant 1434 : index
    %248 = vector.load %arg1[%c0_240, %c1434] : memref<2x1664xf32, #tpu.memory_space<vmem>>, vector<2x3xf32>
    %c0_241 = arith.constant 0 : index
    %c1443 = arith.constant 1443 : index
    %249 = vector.load %arg1[%c0_241, %c1443] : memref<2x1664xf32, #tpu.memory_space<vmem>>, vector<2x13xf32>
    %c0_242 = arith.constant 0 : index
    %c1460 = arith.constant 1460 : index
    %250 = vector.load %arg1[%c0_242, %c1460] : memref<2x1664xf32, #tpu.memory_space<vmem>>, vector<2x3xf32>
    %c0_243 = arith.constant 0 : index
    %c1469 = arith.constant 1469 : index
    %251 = vector.load %arg1[%c0_243, %c1469] : memref<2x1664xf32, #tpu.memory_space<vmem>>, vector<2x13xf32>
    %c0_244 = arith.constant 0 : index
    %c1486 = arith.constant 1486 : index
    %252 = vector.load %arg1[%c0_244, %c1486] : memref<2x1664xf32, #tpu.memory_space<vmem>>, vector<2x3xf32>
    %c0_245 = arith.constant 0 : index
    %c1495 = arith.constant 1495 : index
    %253 = vector.load %arg1[%c0_245, %c1495] : memref<2x1664xf32, #tpu.memory_space<vmem>>, vector<2x13xf32>
    %c0_246 = arith.constant 0 : index
    %c1512 = arith.constant 1512 : index
    %254 = vector.load %arg1[%c0_246, %c1512] : memref<2x1664xf32, #tpu.memory_space<vmem>>, vector<2x3xf32>
    %c0_247 = arith.constant 0 : index
    %c1521 = arith.constant 1521 : index
    %255 = vector.load %arg1[%c0_247, %c1521] : memref<2x1664xf32, #tpu.memory_space<vmem>>, vector<2x13xf32>
    %c0_248 = arith.constant 0 : index
    %c1538 = arith.constant 1538 : index
    %256 = vector.load %arg1[%c0_248, %c1538] : memref<2x1664xf32, #tpu.memory_space<vmem>>, vector<2x3xf32>
    %c0_249 = arith.constant 0 : index
    %c1547 = arith.constant 1547 : index
    %257 = vector.load %arg1[%c0_249, %c1547] : memref<2x1664xf32, #tpu.memory_space<vmem>>, vector<2x13xf32>
    %c0_250 = arith.constant 0 : index
    %c1564 = arith.constant 1564 : index
    %258 = vector.load %arg1[%c0_250, %c1564] : memref<2x1664xf32, #tpu.memory_space<vmem>>, vector<2x3xf32>
    %c0_251 = arith.constant 0 : index
    %c1573 = arith.constant 1573 : index
    %259 = vector.load %arg1[%c0_251, %c1573] : memref<2x1664xf32, #tpu.memory_space<vmem>>, vector<2x13xf32>
    %c0_252 = arith.constant 0 : index
    %c1590 = arith.constant 1590 : index
    %260 = vector.load %arg1[%c0_252, %c1590] : memref<2x1664xf32, #tpu.memory_space<vmem>>, vector<2x3xf32>
    %c0_253 = arith.constant 0 : index
    %c1599 = arith.constant 1599 : index
    %261 = vector.load %arg1[%c0_253, %c1599] : memref<2x1664xf32, #tpu.memory_space<vmem>>, vector<2x13xf32>
    %c0_254 = arith.constant 0 : index
    %c1616 = arith.constant 1616 : index
    %262 = vector.load %arg1[%c0_254, %c1616] : memref<2x1664xf32, #tpu.memory_space<vmem>>, vector<2x3xf32>
    %c0_255 = arith.constant 0 : index
    %c1625 = arith.constant 1625 : index
    %263 = vector.load %arg1[%c0_255, %c1625] : memref<2x1664xf32, #tpu.memory_space<vmem>>, vector<2x13xf32>
    %c0_256 = arith.constant 0 : index
    %c1642 = arith.constant 1642 : index
    %264 = vector.load %arg1[%c0_256, %c1642] : memref<2x1664xf32, #tpu.memory_space<vmem>>, vector<2x3xf32>
    %c0_257 = arith.constant 0 : index
    %c1651 = arith.constant 1651 : index
    %265 = vector.load %arg1[%c0_257, %c1651] : memref<2x1664xf32, #tpu.memory_space<vmem>>, vector<2x13xf32>
    %266 = tpu.concatenate %138, %139, %140, %141, %142, %143, %144, %145, %146, %147, %148, %149, %150, %151, %152, %153 in 1 : vector<2x3xf32>, vector<2x13xf32>, vector<2x3xf32>, vector<2x13xf32>, vector<2x3xf32>, vector<2x13xf32>, vector<2x3xf32>, vector<2x13xf32>, vector<2x3xf32>, vector<2x13xf32>, vector<2x3xf32>, vector<2x13xf32>, vector<2x3xf32>, vector<2x13xf32>, vector<2x3xf32>, vector<2x13xf32> -> vector<2x128xf32>
    %267 = tpu.concatenate %154, %155, %156, %157, %158, %159, %160, %161, %162, %163, %164, %165, %166, %167, %168, %169 in 1 : vector<2x3xf32>, vector<2x13xf32>, vector<2x3xf32>, vector<2x13xf32>, vector<2x3xf32>, vector<2x13xf32>, vector<2x3xf32>, vector<2x13xf32>, vector<2x3xf32>, vector<2x13xf32>, vector<2x3xf32>, vector<2x13xf32>, vector<2x3xf32>, vector<2x13xf32>, vector<2x3xf32>, vector<2x13xf32> -> vector<2x128xf32>
    %268 = tpu.concatenate %170, %171, %172, %173, %174, %175, %176, %177, %178, %179, %180, %181, %182, %183, %184, %185 in 1 : vector<2x3xf32>, vector<2x13xf32>, vector<2x3xf32>, vector<2x13xf32>, vector<2x3xf32>, vector<2x13xf32>, vector<2x3xf32>, vector<2x13xf32>, vector<2x3xf32>, vector<2x13xf32>, vector<2x3xf32>, vector<2x13xf32>, vector<2x3xf32>, vector<2x13xf32>, vector<2x3xf32>, vector<2x13xf32> -> vector<2x128xf32>
    %269 = tpu.concatenate %186, %187, %188, %189, %190, %191, %192, %193, %194, %195, %196, %197, %198, %199, %200, %201 in 1 : vector<2x3xf32>, vector<2x13xf32>, vector<2x3xf32>, vector<2x13xf32>, vector<2x3xf32>, vector<2x13xf32>, vector<2x3xf32>, vector<2x13xf32>, vector<2x3xf32>, vector<2x13xf32>, vector<2x3xf32>, vector<2x13xf32>, vector<2x3xf32>, vector<2x13xf32>, vector<2x3xf32>, vector<2x13xf32> -> vector<2x128xf32>
    %270 = tpu.concatenate %202, %203, %204, %205, %206, %207, %208, %209, %210, %211, %212, %213, %214, %215, %216, %217 in 1 : vector<2x3xf32>, vector<2x13xf32>, vector<2x3xf32>, vector<2x13xf32>, vector<2x3xf32>, vector<2x13xf32>, vector<2x3xf32>, vector<2x13xf32>, vector<2x3xf32>, vector<2x13xf32>, vector<2x3xf32>, vector<2x13xf32>, vector<2x3xf32>, vector<2x13xf32>, vector<2x3xf32>, vector<2x13xf32> -> vector<2x128xf32>
    %271 = tpu.concatenate %218, %219, %220, %221, %222, %223, %224, %225, %226, %227, %228, %229, %230, %231, %232, %233 in 1 : vector<2x3xf32>, vector<2x13xf32>, vector<2x3xf32>, vector<2x13xf32>, vector<2x3xf32>, vector<2x13xf32>, vector<2x3xf32>, vector<2x13xf32>, vector<2x3xf32>, vector<2x13xf32>, vector<2x3xf32>, vector<2x13xf32>, vector<2x3xf32>, vector<2x13xf32>, vector<2x3xf32>, vector<2x13xf32> -> vector<2x128xf32>
    %272 = tpu.concatenate %234, %235, %236, %237, %238, %239, %240, %241, %242, %243, %244, %245, %246, %247, %248, %249 in 1 : vector<2x3xf32>, vector<2x13xf32>, vector<2x3xf32>, vector<2x13xf32>, vector<2x3xf32>, vector<2x13xf32>, vector<2x3xf32>, vector<2x13xf32>, vector<2x3xf32>, vector<2x13xf32>, vector<2x3xf32>, vector<2x13xf32>, vector<2x3xf32>, vector<2x13xf32>, vector<2x3xf32>, vector<2x13xf32> -> vector<2x128xf32>
    %273 = tpu.concatenate %250, %251, %252, %253, %254, %255, %256, %257, %258, %259, %260, %261, %262, %263, %264, %265 in 1 : vector<2x3xf32>, vector<2x13xf32>, vector<2x3xf32>, vector<2x13xf32>, vector<2x3xf32>, vector<2x13xf32>, vector<2x3xf32>, vector<2x13xf32>, vector<2x3xf32>, vector<2x13xf32>, vector<2x3xf32>, vector<2x13xf32>, vector<2x3xf32>, vector<2x13xf32>, vector<2x3xf32>, vector<2x13xf32> -> vector<2x128xf32>
    %274 = tpu.concatenate %266, %267, %268, %269, %270, %271, %272, %273 in 1 : vector<2x128xf32>, vector<2x128xf32>, vector<2x128xf32>, vector<2x128xf32>, vector<2x128xf32>, vector<2x128xf32>, vector<2x128xf32>, vector<2x128xf32> -> vector<2x1024xf32>
    %c0_258 = arith.constant 0 : index
    %c0_259 = arith.constant 0 : index
    %275 = vector.load %arg3[%c0_258, %c0_259] : memref<2x1024xf32, #tpu.memory_space<vmem>>, vector<2x1024xf32>
    tpu.vector_store %arg3[%c0_258, %c0_259], %274 {strides = array<i32>} : memref<2x1024xf32, #tpu.memory_space<vmem>>, vector<2x1024xf32>,
    return
  }
  func.func @transform_0(%arg0: i32) -> (i32, i32) {
    %c0_i32 = arith.constant 0 : i32
    %c0_i32_0 = arith.constant 0 : i32
    return %arg0, %c0_i32 : i32, i32
  }
  func.func @transform_1(%arg0: i32) -> (i32, i32) {
    %c0_i32 = arith.constant 0 : i32
    %c0_i32_0 = arith.constant 0 : i32
    return %arg0, %c0_i32 : i32, i32
  }
  func.func @transform_2(%arg0: i32) -> (i32, i32) {
    %c0_i32 = arith.constant 0 : i32
    %c0_i32_0 = arith.constant 0 : i32
    return %arg0, %c0_i32 : i32, i32
  }
}

</mosaic_0001>

<bundles_post_ra>
// kernel: tpu_custom_call.1
= control target key start
LH: loop header
LB: loop body
LE: loop exit
PB: predicated region body
PF: predicated region fallthrough
CT: control target
= control target key end

     0   :  { %8 = vsyncpa [#allocation3], 0  ;;  %s2786_s0 = inlined_call_operand.hbm [shape: f32[2,1664], index: 0, kind: input, shape index: {}]   ;;  %s2787_s1 = inlined_call_operand.hbm [shape: f32[2,640], index: 1, kind: output, shape index: {0}]   ;;  %s2788_s2 = inlined_call_operand.hbm [shape: f32[2,1024], index: 2, kind: output, shape index: {1}]  }
   0x1   :  { %9 = vsyncpa [#allocation4], 0 }
   0x2   :  { %10 = vsyncpa [#allocation7], 0  ;;  %s16_s11 = sshll.u32 %s2786_s0, 4  ;;  %s1913_s12 = smov [#allocation2]   ;;  %s17_s11 = int_to_ptr.hbm [resolvable:$true] %s16_s11 }
   0x3   :  { %s18_s13 = sshll.u32 %s1913_s12, 4  ;;  %s19_s13 = int_to_ptr.vmem [resolvable:$true] %s18_s13 }
   0x4   :  { %21 = dma.hbm_to_vmem [thread:$0]  %s17_s11, 416, %s19_s13, [#allocation3]  }
   0x5   :  { %1907 = dma.done.wait [#allocation3], 416  }
   0x6   :  { %1908 = vsyncadd [#allocation3], 4294966880  ;;  %v2005_v0 = vld [vmem:[#allocation2] sm:$0x3]  ;;  %s1914_s14 = smov 125   ;;  %s1915_s0 = smov 112  }
   0x7   :  { %44 = vst [vmem:[#allocation1] ss:$4 sm:$0xff] %v2005_v0  ;;  %s1916_s15 = smov 109   ;;  %s2800_s16 = smov 96   ;;  %v27_v9 = vld [vmem:[#allocation2 + $0x2] sm:$0x3] }
   0x8   :  { %s1918_s17 = smov 93   ;;  %s1919_s18 = smov 80   ;;  %v2034_v20 = vld [vmem:[#allocation2 + $0x4] sm:$0x3]  ;;  %v29_v30 = vld [vmem:[#allocation2 + $0x6] sm:$0x3] }
   0x9   :  { %s1920_s19 = smov 77   ;;  %s1921_s20 = smov 64   ;;  %v2070_v44 = vld [vmem:[#allocation2 + $0x8] sm:$0x3]  ;;  %vm120_vm0 = vcmask 31744   ;;  %vm122_vm1 = vcmask 80896  }
   0xa   :  { %s1922_s21 = smov 61   ;;  %s2793_s22 = smov 48   ;;  %vm124_vm2 = vcmask 113664   ;;  %vm126_vm3 = vcmask 162816   ;;  %vm128_vm4 = vcmask 195584   ;;  %vm130_vm5 = vcmask 244736  }
   0xb   :  { %s1924_s23 = smov 45   ;;  %s1925_s24 = smov 32   ;;  %vm132_vm6 = vcmask 277504   ;;  %vm134_vm7 = vcmask 326656   ;;  %vm136_vm8 = vcmask 359424   ;;  %vm138_vm9 = vcmask 408576  }
   0xc   :  { %s1926_s25 = smov 29   ;;  %s2812_s26 = smov 16   ;;  %vm140_vm10 = vcmask 441344   ;;  %vm142_vm11 = vcmask 490496   ;;  %vm144_vm12 = vcmask 523264   ;;  %vm146_vm13 = vcmask 572416  }
   0xd   :  { %s1928_s27 = smov 13   ;;  %vm148_vm14 = vcmask 605184   ;;  %vm458_vm15 = vcmask 236544   ;;  %s1929_s28 = smov 124  }
   0xe   :  { %v45_v1 = vld.sshfl [vmem:[#allocation1] sm:$0xff pattern:$0x73625140]  ;;  %s1930_s29 = smov 118   ;;  %s1931_s30 = smov 114  }
   0xf   :  { %46 = vrot.lane.b32.xlu0 %v45_v1, %s1914_s14  ;;  %49 = vst [vmem:[#allocation1] ss:$4 sm:$0xff] %v2005_v0  ;;  %s1932_s3 = smov 108   ;;  %s1933_s4 = smov 104  }
  0x10   :  { %s1934_s5 = smov 98   ;;  %s1935_s6 = smov 94  }
  0x11   :  { %s1936_s7 = smov 88   ;;  %s1937_s8 = smov 84  }
  0x12   :  { %s1938_s9 = smov 78   ;;  %s1939_s10 = smov 74  }
  0x13   :  { %s2799_s11 = smov 68   ;;  %s2797_s12 = smov 58  }
  0x14   :  { %s1942_s13 = smov 54  }
  0x16   :  { %v50_v2 = vld.sshfl [vmem:[#allocation1] sm:$0xff pattern:$0x73625140] }
  0x17   :  { %54 = vst [vmem:[#allocation1] ss:$4 sm:$0xff] %v2005_v0  ;;  %51 = vrot.lane.b32.xlu0 %v50_v2, %s1915_s0 }
  0x1e   :  { %v55_v3 = vld.sshfl [vmem:[#allocation1] sm:$0xff pattern:$0x73625140] }
  0x1f   :  { %56 = vrot.lane.b32.xlu1 %v55_v3, %s1916_s15  ;;  %59 = vst [vmem:[#allocation1] ss:$4 sm:$0xff] %v2005_v0 }
  0x26   :  { %v60_v4 = vld.sshfl [vmem:[#allocation1] sm:$0xff pattern:$0x73625140] }
  0x27   :  { %61 = vrot.lane.b32.xlu1 %v60_v4, %s2800_s16  ;;  %64 = vst [vmem:[#allocation1] ss:$4 sm:$0xff] %v2005_v0 }
  0x2e   :  { %v65_v5 = vld.sshfl [vmem:[#allocation1] sm:$0xff pattern:$0x73625140] }
  0x2f   :  { %69 = vst [vmem:[#allocation1] ss:$4 sm:$0xff] %v2005_v0  ;;  %66 = vrot.lane.b32.xlu2 %v65_v5, %s1918_s17 }
  0x36   :  { %v70_v6 = vld.sshfl [vmem:[#allocation1] sm:$0xff pattern:$0x73625140] }
  0x37   :  { %74 = vst [vmem:[#allocation1] ss:$4 sm:$0xff] %v2005_v0  ;;  %71 = vrot.lane.b32.xlu2 %v70_v6, %s1919_s18 }
  0x3e   :  { %v75_v7 = vld.sshfl [vmem:[#allocation1] sm:$0xff pattern:$0x73625140] }
  0x3f   :  { %76 = vrot.lane.b32.xlu0 %v75_v7, %s1920_s19  ;;  %79 = vst [vmem:[#allocation1] ss:$4 sm:$0xff] %v2005_v0 }
  0x46   :  { %v80_v8 = vld.sshfl [vmem:[#allocation1] sm:$0xff pattern:$0x73625140] }
  0x47   :  { %81 = vrot.lane.b32.xlu1 %v80_v8, %s1921_s20  ;;  %84 = vst [vmem:[#allocation1] ss:$4 sm:$0xff] %v2005_v0 }
  0x4e   :  { %v85_v10 = vld.sshfl [vmem:[#allocation1] sm:$0xff pattern:$0x73625140] }
  0x4f   :  { %90 = vst [vmem:[#allocation1] ss:$4 sm:$0xff] %v27_v9  ;;  %86 = vrot.lane.b32.xlu2 %v85_v10, %s1922_s21 }
  0x56   :  { %v91_v11 = vld.sshfl [vmem:[#allocation1] sm:$0xff pattern:$0x73625140] }
  0x57   :  { %92 = vrot.lane.b32.xlu0 %v91_v11, %s2793_s22  ;;  %95 = vst [vmem:[#allocation1] ss:$4 sm:$0xff] %v27_v9 }
  0x5e   :  { %v96_v12 = vld.sshfl [vmem:[#allocation1] sm:$0xff pattern:$0x73625140] }
  0x5f   :  { %97 = vrot.lane.b32.xlu1 %v96_v12, %s1924_s23  ;;  %100 = vst [vmem:[#allocation1] ss:$4 sm:$0xff] %v27_v9 }
  0x66   :  { %v101_v13 = vld.sshfl [vmem:[#allocation1] sm:$0xff pattern:$0x73625140] }
  0x67   :  { %105 = vst [vmem:[#allocation1] ss:$4 sm:$0xff] %v27_v9  ;;  %102 = vrot.lane.b32.xlu2 %v101_v13, %s1925_s24 }
  0x6e   :  { %v106_v14 = vld.sshfl [vmem:[#allocation1] sm:$0xff pattern:$0x73625140] }
  0x6f   :  { %107 = vrot.lane.b32.xlu0 %v106_v14, %s1926_s25  ;;  %110 = vst [vmem:[#allocation1] ss:$4 sm:$0xff] %v27_v9 }
  0x76   :  { %v111_v15 = vld.sshfl [vmem:[#allocation1] sm:$0xff pattern:$0x73625140] }
  0x77   :  { %112 = vrot.lane.b32.xlu1 %v111_v15, %s2812_s26  ;;  %115 = vst [vmem:[#allocation1] ss:$4 sm:$0xff] %v27_v9 }
  0x7e   :  { %v116_v16 = vld.sshfl [vmem:[#allocation1] sm:$0xff pattern:$0x73625140] }
  0x7f   :  { %150 = vst [vmem:[#allocation1] ss:$4 sm:$0xff] %v27_v9  ;;  %117 = vrot.lane.b32.xlu2 %v116_v16, %s1928_s27 }
  0x81   :  { %v2063_v40 = vpop.permute.xlu0 %46 }
  0x86   :  { %v151_v17 = vld.sshfl [vmem:[#allocation1] sm:$0xff pattern:$0x73625140] }
  0x87   :  { %152 = vrot.lane.b32.xlu0 %v151_v17, %s2793_s22  ;;  %155 = vst [vmem:[#allocation1] ss:$4 sm:$0xff] %v27_v9 }
  0x89   :  { %v2068_v43 = vpop.permute.xlu2 %66  ;;  %v2072_v45 = vpop.permute.xlu0 %51 }
  0x8e   :  { %v156_v18 = vld.sshfl [vmem:[#allocation1] sm:$0xff pattern:$0x73625140] }
  0x8f   :  { %157 = vrot.lane.b32.xlu1 %v156_v18, %s1924_s23  ;;  %160 = vst [vmem:[#allocation1] ss:$4 sm:$0xff] %v27_v9 }
  0x91   :  { %v2066_v42 = vpop.permute.xlu1 %56  ;;  %v2078_v48 = vpop.permute.xlu2 %71 }
  0x96   :  { %v161_v19 = vld.sshfl [vmem:[#allocation1] sm:$0xff pattern:$0x73625140] }
  0x97   :  { %165 = vst [vmem:[#allocation1] ss:$4 sm:$0xff] %v27_v9  ;;  %162 = vrot.lane.b32.xlu2 %v161_v19, %s1925_s24 }
  0x99   :  { %v2076_v47 = vpop.permute.xlu1 %61 }
  0x9e   :  { %v166_v21 = vld.sshfl [vmem:[#allocation1] sm:$0xff pattern:$0x73625140] }
  0x9f   :  { %167 = vrot.lane.b32.xlu0 %v166_v21, %s1926_s25  ;;  %171 = vst [vmem:[#allocation1] ss:$4 sm:$0xff] %v2034_v20 }
  0xa6   :  { %v172_v22 = vld.sshfl [vmem:[#allocation1] sm:$0xff pattern:$0x73625140] }
  0xa7   :  { %173 = vrot.lane.b32.xlu1 %v172_v22, %s2812_s26  ;;  %176 = vst [vmem:[#allocation1] ss:$4 sm:$0xff] %v2034_v20 }
  0xa9   :  { %v2088_v53 = vpop.permute.xlu2 %86 }
  0xae   :  { %v177_v23 = vld.sshfl [vmem:[#allocation1] sm:$0xff pattern:$0x73625140] }
  0xaf   :  { %181 = vst [vmem:[#allocation1] ss:$4 sm:$0xff] %v2034_v20  ;;  %178 = vrot.lane.b32.xlu2 %v177_v23, %s1928_s27 }
  0xb1   :  { %v2081_v50 = vpop.permute.xlu0 %76 }
  0xb6   :  { %v182_v24 = vld.sshfl [vmem:[#allocation1] sm:$0xff pattern:$0x73625140] }
  0xb7   :  { %183 = vrot.lane.b32.xlu0 %v182_v24, %s1914_s14  ;;  %186 = vst [vmem:[#allocation1] ss:$4 sm:$0xff] %v2034_v20 }
  0xb9   :  { %v2086_v52 = vpop.permute.xlu1 %81 }
  0xbe   :  { %v187_v25 = vld.sshfl [vmem:[#allocation1] sm:$0xff pattern:$0x73625140] }
  0xbf   :  { %188 = vrot.lane.b32.xlu1 %v187_v25, %s1915_s0  ;;  %191 = vst [vmem:[#allocation1] ss:$4 sm:$0xff] %v2034_v20 }
  0xc1   :  { %v2096_v57 = vpop.permute.xlu2 %102 }
  0xc6   :  { %v192_v26 = vld.sshfl [vmem:[#allocation1] sm:$0xff pattern:$0x73625140] }
  0xc7   :  { %196 = vst [vmem:[#allocation1] ss:$4 sm:$0xff] %v2034_v20  ;;  %193 = vrot.lane.b32.xlu2 %v192_v26, %s1916_s15 }
  0xc9   :  { %v2090_v54 = vpop.permute.xlu0 %92 }
  0xce   :  { %v197_v27 = vld.sshfl [vmem:[#allocation1] sm:$0xff pattern:$0x73625140] }
  0xcf   :  { %198 = vrot.lane.b32.xlu0 %v197_v27, %s2800_s16  ;;  %201 = vst [vmem:[#allocation1] ss:$4 sm:$0xff] %v2034_v20 }
  0xd1   :  { %v2094_v56 = vpop.permute.xlu1 %97 }
  0xd6   :  { %v202_v28 = vld.sshfl [vmem:[#allocation1] sm:$0xff pattern:$0x73625140] }
  0xd7   :  { %203 = vrot.lane.b32.xlu1 %v202_v28, %s1918_s17  ;;  %206 = vst [vmem:[#allocation1] ss:$4 sm:$0xff] %v2034_v20  ;;  %v2127_v28 = vld [vmem:[#allocation2 + $0xa] sm:$0x3] }
  0xd9   :  { %v2104_v61 = vpop.permute.xlu2 %117 }
  0xde   :  { %v207_v29 = vld.sshfl [vmem:[#allocation1] sm:$0xff pattern:$0x73625140] }
  0xdf   :  { %211 = vst [vmem:[#allocation1] ss:$4 sm:$0xff] %v2034_v20  ;;  %208 = vrot.lane.b32.xlu2 %v207_v29, %s1919_s18 }
  0xe1   :  { %v2098_v58 = vpop.permute.xlu0 %107 }
  0xe6   :  { %v212_v31 = vld.sshfl [vmem:[#allocation1] sm:$0xff pattern:$0x73625140] }
  0xe7   :  { %213 = vrot.lane.b32.xlu0 %v212_v31, %s1920_s19  ;;  %217 = vst [vmem:[#allocation1] ss:$4 sm:$0xff] %v29_v30 }
  0xe9   :  { %v2101_v60 = vpop.permute.xlu1 %112 }
  0xee   :  { %v218_v32 = vld.sshfl [vmem:[#allocation1] sm:$0xff pattern:$0x73625140] }
  0xef   :  { %219 = vrot.lane.b32.xlu1 %v218_v32, %s1921_s20  ;;  %222 = vst [vmem:[#allocation1] ss:$4 sm:$0xff] %v29_v30 }
  0xf1   :  { %v163_v2 = vpop.permute.xlu2 %162 }
  0xf6   :  { %v223_v33 = vld.sshfl [vmem:[#allocation1] sm:$0xff pattern:$0x73625140] }
  0xf7   :  { %242 = vst [vmem:[#allocation1] ss:$4 sm:$0xff] %v29_v30  ;;  %224 = vrot.lane.b32.xlu2 %v223_v33, %s1922_s21 }
  0xf9   :  { %v153_v62 = vpop.permute.xlu0 %152 }
  0xfe   :  { %v243_v34 = vld.sshfl [vmem:[#allocation1] sm:$0xff pattern:$0x73625140] }
  0xff   :  { %244 = vrot.lane.b32.xlu0 %v243_v34, %s2800_s16  ;;  %247 = vst [vmem:[#allocation1] ss:$4 sm:$0xff] %v29_v30 }
 0x101   :  { %v158_v1 = vpop.permute.xlu1 %157 }
 0x102   :  { %v227_v3 = vsel %vm120_vm0, %v153_v62, %v158_v1 }
 0x103   :  { %v228_v5 = vsel %vm122_vm1, %v227_v3, %v163_v2 }
 0x106   :  { %v248_v35 = vld.sshfl [vmem:[#allocation1] sm:$0xff pattern:$0x73625140] }
 0x107   :  { %249 = vrot.lane.b32.xlu1 %v248_v35, %s1918_s17  ;;  %252 = vst [vmem:[#allocation1] ss:$4 sm:$0xff] %v29_v30 }
 0x109   :  { %v179_v9 = vpop.permute.xlu2 %178 }
 0x10e   :  { %v253_v36 = vld.sshfl [vmem:[#allocation1] sm:$0xff pattern:$0x73625140] }
 0x10f   :  { %257 = vst [vmem:[#allocation1] ss:$4 sm:$0xff] %v29_v30  ;;  %254 = vrot.lane.b32.xlu2 %v253_v36, %s1919_s18 }
 0x111   :  { %v168_v4 = vpop.permute.xlu0 %167 }
 0x112   :  { %v229_v6 = vsel %vm124_vm2, %v228_v5, %v168_v4 }
 0x116   :  { %v258_v37 = vld.sshfl [vmem:[#allocation1] sm:$0xff pattern:$0x73625140] }
 0x117   :  { %259 = vrot.lane.b32.xlu0 %v258_v37, %s1920_s19  ;;  %262 = vst [vmem:[#allocation1] ss:$4 sm:$0xff] %v29_v30 }
 0x119   :  { %v174_v8 = vpop.permute.xlu1 %173 }
 0x11a   :  { %v230_v10 = vsel %vm126_vm3, %v229_v6, %v174_v8 }
 0x11b   :  { %v231_v12 = vsel %vm128_vm4, %v230_v10, %v179_v9 }
 0x11c   :  { %v232_v13 = vsel %vm130_vm5, %v231_v12, %v2034_v20 }
 0x11e   :  { %v263_v38 = vld.sshfl [vmem:[#allocation1] sm:$0xff pattern:$0x73625140] }
 0x11f   :  { %264 = vrot.lane.b32.xlu1 %v263_v38, %s1921_s20  ;;  %267 = vst [vmem:[#allocation1] ss:$4 sm:$0xff] %v29_v30 }
 0x121   :  { %v194_v17 = vpop.permute.xlu2 %193 }
 0x126   :  { %v268_v39 = vld.sshfl [vmem:[#allocation1] sm:$0xff pattern:$0x73625140] }
 0x127   :  { %272 = vst [vmem:[#allocation1] ss:$4 sm:$0xff] %v29_v30  ;;  %269 = vrot.lane.b32.xlu2 %v268_v39, %s1922_s21 }
 0x129   :  { %v184_v11 = vpop.permute.xlu0 %183 }
 0x12a   :  { %v233_v14 = vsel %vm132_vm6, %v232_v13, %v184_v11  ;;  %v32_v11 = vld [vmem:[#allocation2 + $0xc] sm:$0x3] }
 0x12e   :  { %v273_v41 = vld.sshfl [vmem:[#allocation1] sm:$0xff pattern:$0x73625140] }
 0x12f   :  { %274 = vrot.lane.b32.xlu0 %v273_v41, %s2793_s22  ;;  %277 = vst [vmem:[#allocation1] ss:$4 sm:$0xff] %v29_v30 }
 0x131   :  { %v189_v16 = vpop.permute.xlu1 %188 }
 0x132   :  { %v234_v18 = vsel %vm134_vm7, %v233_v14, %v189_v16 }
 0x133   :  { %v235_v21 = vsel %vm136_vm8, %v234_v18, %v194_v17 }
 0x136   :  { %v278_v46 = vld.sshfl [vmem:[#allocation1] sm:$0xff pattern:$0x73625140] }
 0x137   :  { %279 = vrot.lane.b32.xlu1 %v278_v46, %s1924_s23  ;;  %283 = vst [vmem:[#allocation1] ss:$4 sm:$0xff] %v2070_v44 }
 0x139   :  { %v209_v24 = vpop.permute.xlu2 %208 }
 0x13e   :  { %v284_v49 = vld.sshfl [vmem:[#allocation1] sm:$0xff pattern:$0x73625140] }
 0x13f   :  { %288 = vst [vmem:[#allocation1] ss:$4 sm:$0xff] %v2070_v44  ;;  %285 = vrot.lane.b32.xlu2 %v284_v49, %s1925_s24 }
 0x141   :  { %v199_v19 = vpop.permute.xlu0 %198 }
 0x142   :  { %v236_v20 = vsel %vm138_vm9, %v235_v21, %v199_v19 }
 0x146   :  { %v289_v51 = vld.sshfl [vmem:[#allocation1] sm:$0xff pattern:$0x73625140] }
 0x147   :  { %290 = vrot.lane.b32.xlu0 %v289_v51, %s1926_s25  ;;  %293 = vst [vmem:[#allocation1] ss:$4 sm:$0xff] %v2070_v44 }
 0x149   :  { %v204_v23 = vpop.permute.xlu1 %203 }
 0x14a   :  { %v237_v25 = vsel %vm140_vm10, %v236_v20, %v204_v23 }
 0x14b   :  { %v238_v26 = vsel %vm142_vm11, %v237_v25, %v209_v24 }
 0x14e   :  { %v294_v55 = vld.sshfl [vmem:[#allocation1] sm:$0xff pattern:$0x73625140] }
 0x14f   :  { %295 = vrot.lane.b32.xlu1 %v294_v55, %s2812_s26  ;;  %298 = vst [vmem:[#allocation1] ss:$4 sm:$0xff] %v2070_v44 }
 0x151   :  { %v225_v32 = vpop.permute.xlu2 %224 }
 0x156   :  { %v299_v59 = vld.sshfl [vmem:[#allocation1] sm:$0xff pattern:$0x73625140] }
 0x157   :  { %303 = vst [vmem:[#allocation1] ss:$4 sm:$0xff] %v2070_v44  ;;  %300 = vrot.lane.b32.xlu2 %v299_v59, %s1928_s27 }
 0x159   :  { %v214_v27 = vpop.permute.xlu0 %213 }
 0x15a   :  { %v239_v29 = vsel %vm144_vm12, %v238_v26, %v214_v27 }
 0x15e   :  { %v304_v63 = vld.sshfl [vmem:[#allocation1] sm:$0xff pattern:$0x73625140] }
 0x15f   :  { %305 = vrot.lane.b32.xlu0 %v304_v63, %s1914_s14  ;;  %308 = vst [vmem:[#allocation1] ss:$4 sm:$0xff] %v2070_v44 }
 0x161   :  { %v220_v31 = vpop.permute.xlu1 %219 }
 0x162   :  { %v240_v33 = vsel %vm146_vm13, %v239_v29, %v220_v31 }
 0x163   :  { %v241_v34 = vsel %vm148_vm14, %v240_v33, %v225_v32 }
 0x166   :  { %v309_v7 = vld.sshfl [vmem:[#allocation1] sm:$0xff pattern:$0x73625140] }
 0x167   :  { %310 = vrot.lane.b32.xlu1 %v309_v7, %s1915_s0  ;;  %313 = vst [vmem:[#allocation1] ss:$4 sm:$0xff] %v2070_v44 }
 0x169   :  { %v255_v51 = vpop.permute.xlu2 %254 }
 0x16e   :  { %v314_v15 = vld.sshfl [vmem:[#allocation1] sm:$0xff pattern:$0x73625140] }
 0x16f   :  { %315 = vrot.lane.b32.xlu2 %v314_v15, %s1916_s15  ;;  %333 = vst [vmem:[#allocation1] ss:$4 sm:$0xff] %v2070_v44  ;;  %816 = vrot.lane.b32.xlu1 %v241_v34, %s1919_s18 }
 0x171   :  { %v245_v41 = vpop.permute.xlu0 %244 }
 0x176   :  { %v334_v22 = vld.sshfl [vmem:[#allocation1] sm:$0xff pattern:$0x73625140] }
 0x177   :  { %335 = vrot.lane.b32.xlu0 %v334_v22, %s2812_s26  ;;  %338 = vst [vmem:[#allocation1] ss:$4 sm:$0xff] %v2070_v44 }
 0x179   :  { %v250_v49 = vpop.permute.xlu1 %249 }
 0x17a   :  { %v318_v55 = vsel %vm120_vm0, %v245_v41, %v250_v49 }
 0x17b   :  { %v319_v59 = vsel %vm122_vm1, %v318_v55, %v255_v51 }
 0x17e   :  { %v339_v30 = vld.sshfl [vmem:[#allocation1] sm:$0xff pattern:$0x73625140] }
 0x17f   :  { %344 = vst [vmem:[#allocation1] ss:$4 sm:$0xff] %v2127_v28  ;;  %340 = vrot.lane.b32.xlu1 %v339_v30, %s1928_s27 }
 0x181   :  { %v270_v3 = vpop.permute.xlu2 %269 }
 0x186   :  { %v345_v35 = vld.sshfl [vmem:[#allocation1] sm:$0xff pattern:$0x73625140] }
 0x187   :  { %349 = vst [vmem:[#allocation1] ss:$4 sm:$0xff] %v2127_v28  ;;  %346 = vrot.lane.b32.xlu2 %v345_v35, %s1914_s14 }
 0x189   :  { %v260_v62 = vpop.permute.xlu0 %259 }
 0x18a   :  { %v320_v1 = vsel %vm124_vm2, %v319_v59, %v260_v62 }
 0x18e   :  { %v350_v36 = vld.sshfl [vmem:[#allocation1] sm:$0xff pattern:$0x73625140] }
 0x18f   :  { %351 = vrot.lane.b32.xlu0 %v350_v36, %s1915_s0  ;;  %354 = vst [vmem:[#allocation1] ss:$4 sm:$0xff] %v2127_v28  ;;  %v33_v36 = vld [vmem:[#allocation2 + $0xc] sm:$0xf] }
 0x191   :  { %v265_v2 = vpop.permute.xlu1 %264 }
 0x192   :  { %v321_v4 = vsel %vm126_vm3, %v320_v1, %v265_v2 }
 0x193   :  { %v322_v6 = vsel %vm128_vm4, %v321_v4, %v270_v3 }
 0x196   :  { %v355_v37 = vld.sshfl [vmem:[#allocation1] sm:$0xff pattern:$0x73625140] }
 0x197   :  { %356 = vrot.lane.b32.xlu1 %v355_v37, %s1916_s15  ;;  %359 = vst [vmem:[#allocation1] ss:$4 sm:$0xff] %v2127_v28 }
 0x199   :  { %v286_v10 = vpop.permute.xlu2 %285 }
 0x19e   :  { %v360_v38 = vld.sshfl [vmem:[#allocation1] sm:$0xff pattern:$0x73625140] }
 0x19f   :  { %364 = vst [vmem:[#allocation1] ss:$4 sm:$0xff] %v2127_v28  ;;  %361 = vrot.lane.b32.xlu2 %v360_v38, %s2800_s16  ;;  %v2178_v38 = vld [vmem:[#allocation2 + $0xe] sm:$0x3] }
 0x1a1   :  { %v275_v7 = vpop.permute.xlu0 %274 }
 0x1a2   :  { %v323_v8 = vsel %vm130_vm5, %v322_v6, %v275_v7 }
 0x1a6   :  { %v365_v39 = vld.sshfl [vmem:[#allocation1] sm:$0xff pattern:$0x73625140] }
 0x1a7   :  { %366 = vrot.lane.b32.xlu0 %v365_v39, %s1918_s17  ;;  %369 = vst [vmem:[#allocation1] ss:$4 sm:$0xff] %v2127_v28 }
 0x1a9   :  { %v280_v9 = vpop.permute.xlu1 %279 }
 0x1aa   :  { %v324_v12 = vsel %vm132_vm6, %v323_v8, %v280_v9 }
 0x1ab   :  { %v325_v14 = vsel %vm134_vm7, %v324_v12, %v286_v10 }
 0x1ae   :  { %v370_v46 = vld.sshfl [vmem:[#allocation1] sm:$0xff pattern:$0x73625140] }
 0x1af   :  { %371 = vrot.lane.b32.xlu1 %v370_v46, %s1919_s18  ;;  %374 = vst [vmem:[#allocation1] ss:$4 sm:$0xff] %v2127_v28 }
 0x1b1   :  { %v301_v21 = vpop.permute.xlu2 %300 }
 0x1b6   :  { %v375_v63 = vld.sshfl [vmem:[#allocation1] sm:$0xff pattern:$0x73625140] }
 0x1b7   :  { %379 = vst [vmem:[#allocation1] ss:$4 sm:$0xff] %v2127_v28  ;;  %376 = vrot.lane.b32.xlu2 %v375_v63, %s1920_s19 }
 0x1b9   :  { %v291_v15 = vpop.permute.xlu0 %290 }
 0x1ba   :  { %v326_v16 = vsel %vm136_vm8, %v325_v14, %v291_v15 }
 0x1be   :  { %v380_v5 = vld.sshfl [vmem:[#allocation1] sm:$0xff pattern:$0x73625140] }
 0x1bf   :  { %381 = vrot.lane.b32.xlu0 %v380_v5, %s1921_s20  ;;  %384 = vst [vmem:[#allocation1] ss:$4 sm:$0xff] %v2127_v28 }
 0x1c1   :  { %v296_v17 = vpop.permute.xlu1 %295 }
 0x1c2   :  { %v327_v19 = vsel %vm138_vm9, %v326_v16, %v296_v17 }
 0x1c3   :  { %v328_v20 = vsel %vm140_vm10, %v327_v19, %v301_v21 }
 0x1c4   :  { %v329_v22 = vsel %vm142_vm11, %v328_v20, %v2070_v44 }
 0x1c6   :  { %v385_v13 = vld.sshfl [vmem:[#allocation1] sm:$0xff pattern:$0x73625140] }
 0x1c7   :  { %386 = vrot.lane.b32.xlu1 %v385_v13, %s1922_s21  ;;  %390 = vst [vmem:[#allocation1] ss:$4 sm:$0xff] %v32_v11 }
 0x1c9   :  { %v316_v26 = vpop.permute.xlu2 %315 }
 0x1ce   :  { %v391_v18 = vld.sshfl [vmem:[#allocation1] sm:$0xff pattern:$0x73625140] }
 0x1cf   :  { %395 = vst [vmem:[#allocation1] ss:$4 sm:$0xff] %v32_v11  ;;  %392 = vrot.lane.b32.xlu2 %v391_v18, %s2793_s22 }
 0x1d1   :  { %v306_v23 = vpop.permute.xlu0 %305 }
 0x1d2   :  { %v330_v25 = vsel %vm144_vm12, %v329_v22, %v306_v23 }
 0x1d6   :  { %v396_v24 = vld.sshfl [vmem:[#allocation1] sm:$0xff pattern:$0x73625140] }
 0x1d7   :  { %397 = vrot.lane.b32.xlu0 %v396_v24, %s1924_s23  ;;  %400 = vst [vmem:[#allocation1] ss:$4 sm:$0xff] %v32_v11 }
 0x1d9   :  { %v311_v27 = vpop.permute.xlu1 %310 }
 0x1da   :  { %v331_v29 = vsel %vm146_vm13, %v330_v25, %v311_v27 }
 0x1db   :  { %v332_v30 = vsel %vm148_vm14, %v331_v29, %v316_v26 }
 0x1dc   :  { %820 = vrot.lane.b32.xlu2 %v332_v30, %s1925_s24 }
 0x1de   :  { %v401_v31 = vld.sshfl [vmem:[#allocation1] sm:$0xff pattern:$0x73625140] }
 0x1df   :  { %402 = vrot.lane.b32.xlu1 %v401_v31, %s1925_s24  ;;  %405 = vst [vmem:[#allocation1] ss:$4 sm:$0xff] %v32_v11 }
 0x1e1   :  { %v347_v46 = vpop.permute.xlu2 %346  ;;  %v2183_v51 = vpop.permute.xlu1 %816 }
 0x1e6   :  { %v406_v44 = vld.sshfl [vmem:[#allocation1] sm:$0xff pattern:$0x73625140] }
 0x1e7   :  { %407 = vrot.lane.b32.xlu2 %v406_v44, %s1926_s25  ;;  %425 = vst [vmem:[#allocation1] ss:$4 sm:$0xff] %v32_v11 }
 0x1e9   :  { %v336_v55 = vpop.permute.xlu0 %335 }
 0x1ee   :  { %v426_v32 = vld.sshfl [vmem:[#allocation1] sm:$0xff pattern:$0x73625140] }
 0x1ef   :  { %427 = vrot.lane.b32.xlu0 %v426_v32, %s1921_s20  ;;  %430 = vst [vmem:[#allocation1] ss:$4 sm:$0xff] %v32_v11  ;;  %v35_v32 = vld [vmem:[#allocation2 + $0xe] sm:$0xf] }
 0x1f1   :  { %v341_v63 = vpop.permute.xlu1 %340 }
 0x1f2   :  { %v410_v1 = vsel %vm120_vm0, %v336_v55, %v341_v63  ;;  %v37_v63 = vld [vmem:[#allocation2 + $0x10] sm:$0xf] }
 0x1f3   :  { %v411_v2 = vsel %vm122_vm1, %v410_v1, %v2127_v28 }
 0x1f4   :  { %v412_v5 = vsel %vm124_vm2, %v411_v2, %v347_v46  ;;  %v2230_v2 = vld [vmem:[#allocation2 + $0x12] sm:$0x3] }
 0x1f6   :  { %v431_v33 = vld.sshfl [vmem:[#allocation1] sm:$0xff pattern:$0x73625140] }
 0x1f7   :  { %432 = vrot.lane.b32.xlu1 %v431_v33, %s1922_s21  ;;  %435 = vst [vmem:[#allocation1] ss:$4 sm:$0xff] %v32_v11 }
 0x1f9   :  { %v362_v62 = vpop.permute.xlu2 %361 }
 0x1fe   :  { %v436_v34 = vld.sshfl [vmem:[#allocation1] sm:$0xff pattern:$0x73625140] }
 0x1ff   :  { %440 = vst [vmem:[#allocation1] ss:$4 sm:$0xff] %v32_v11  ;;  %437 = vrot.lane.b32.xlu2 %v436_v34, %s2793_s22  ;;  %v36_v34 = vld [vmem:[#allocation2 + $0x10] sm:$0x3] }
 0x201   :  { %v352_v3 = vpop.permute.xlu0 %351 }
 0x202   :  { %v413_v8 = vsel %vm126_vm3, %v412_v5, %v352_v3 }
 0x206   :  { %v441_v35 = vld.sshfl [vmem:[#allocation1] sm:$0xff pattern:$0x73625140] }
 0x207   :  { %442 = vrot.lane.b32.xlu0 %v441_v35, %s1924_s23  ;;  %445 = vst [vmem:[#allocation1] ss:$4 sm:$0xff] %v32_v11 }
 0x209   :  { %v357_v7 = vpop.permute.xlu1 %356 }
 0x20a   :  { %v414_v10 = vsel %vm128_vm4, %v413_v8, %v357_v7 }
 0x20b   :  { %v415_v11 = vsel %vm130_vm5, %v414_v10, %v362_v62 }
 0x20e   :  { %v446_v37 = vld.sshfl [vmem:[#allocation1] sm:$0xff pattern:$0x73625140] }
 0x20f   :  { %447 = vrot.lane.b32.xlu1 %v446_v37, %s1925_s24  ;;  %451 = vst [vmem:[#allocation1] ss:$4 sm:$0xff] %v33_v36 }
 0x211   :  { %v377_v6 = vpop.permute.xlu2 %376 }
 0x216   :  { %v453_v39 = vld.sshfl [vmem:[#allocation1 + $0x8] sm:$0xff pattern:$0x73625140]  ;;  %v452_v41 = vld.sshfl [vmem:[#allocation1] sm:$0xff pattern:$0x73625140] }
 0x217   :  { %456 = vrot.lane.b32.xlu0 %v453_v39, %s1926_s25  ;;  %462 = vst [vmem:[#allocation1] ss:$4 sm:$0xff] %v2178_v38  ;;  %454 = vrot.lane.b32.xlu2 %v452_v41, %s1926_s25 }
 0x219   :  { %v367_v28 = vpop.permute.xlu0 %366 }
 0x21a   :  { %v416_v13 = vsel %vm132_vm6, %v415_v11, %v367_v28 }
 0x21e   :  { %v463_v49 = vld.sshfl [vmem:[#allocation1] sm:$0xff pattern:$0x73625140] }
 0x21f   :  { %464 = vrot.lane.b32.xlu1 %v463_v49, %s2812_s26  ;;  %467 = vst [vmem:[#allocation1] ss:$4 sm:$0xff] %v2178_v38 }
 0x221   :  { %v372_v14 = vpop.permute.xlu1 %371 }
 0x222   :  { %v417_v16 = vsel %vm134_vm7, %v416_v13, %v372_v14 }
 0x223   :  { %v418_v18 = vsel %vm136_vm8, %v417_v16, %v377_v6 }
 0x226   :  { %v468_v59 = vld.sshfl [vmem:[#allocation1] sm:$0xff pattern:$0x73625140] }
 0x227   :  { %472 = vst [vmem:[#allocation1] ss:$4 sm:$0xff] %v2178_v38  ;;  %469 = vrot.lane.b32.xlu2 %v468_v59, %s1928_s27 }
 0x229   :  { %v393_v12 = vpop.permute.xlu2 %392 }
 0x22e   :  { %v473_v4 = vld.sshfl [vmem:[#allocation1] sm:$0xff pattern:$0x73625140] }
 0x22f   :  { %474 = vrot.lane.b32.xlu0 %v473_v4, %s1914_s14  ;;  %477 = vst [vmem:[#allocation1] ss:$4 sm:$0xff] %v2178_v38 }
 0x231   :  { %v382_v17 = vpop.permute.xlu0 %381 }
 0x232   :  { %v419_v19 = vsel %vm138_vm9, %v418_v18, %v382_v17 }
 0x236   :  { %v478_v9 = vld.sshfl [vmem:[#allocation1] sm:$0xff pattern:$0x73625140]  ;;  %v2206_v21 = vpop.permute.xlu2 %820 }
 0x237   :  { %479 = vrot.lane.b32.xlu1 %v478_v9, %s1915_s0  ;;  %482 = vst [vmem:[#allocation1] ss:$4 sm:$0xff] %v2178_v38 }
 0x239   :  { %v387_v22 = vpop.permute.xlu1 %386 }
 0x23a   :  { %v420_v23 = vsel %vm140_vm10, %v419_v19, %v387_v22 }
 0x23b   :  { %v421_v24 = vsel %vm142_vm11, %v420_v23, %v393_v12 }
 0x23e   :  { %v483_v15 = vld.sshfl [vmem:[#allocation1] sm:$0xff pattern:$0x73625140] }
 0x23f   :  { %487 = vst [vmem:[#allocation1] ss:$4 sm:$0xff] %v2178_v38  ;;  %484 = vrot.lane.b32.xlu2 %v483_v15, %s1916_s15 }
 0x241   :  { %v408_v29 = vpop.permute.xlu2 %407 }
 0x246   :  { %v488_v20 = vld.sshfl [vmem:[#allocation1] sm:$0xff pattern:$0x73625140] }
 0x247   :  { %489 = vrot.lane.b32.xlu0 %v488_v20, %s2800_s16  ;;  %492 = vst [vmem:[#allocation1] ss:$4 sm:$0xff] %v2178_v38 }
 0x249   :  { %v398_v25 = vpop.permute.xlu0 %397 }
 0x24a   :  { %v422_v27 = vsel %vm144_vm12, %v421_v24, %v398_v25 }
 0x24e   :  { %v493_v26 = vld.sshfl [vmem:[#allocation1] sm:$0xff pattern:$0x73625140] }
 0x24f   :  { %494 = vrot.lane.b32.xlu1 %v493_v26, %s1918_s17  ;;  %497 = vst [vmem:[#allocation1] ss:$4 sm:$0xff] %v2178_v38 }
 0x251   :  { %v403_v30 = vpop.permute.xlu1 %402 }
 0x252   :  { %v423_v31 = vsel %vm146_vm13, %v422_v27, %v403_v30 }
 0x253   :  { %v424_v44 = vsel %vm148_vm14, %v423_v31, %v408_v29 }
 0x254   :  { %824 = vrot.lane.b32.xlu0 %v424_v44, %s1915_s0 }
 0x256   :  { %v498_v33 = vld.sshfl [vmem:[#allocation1] sm:$0xff pattern:$0x73625140] }
 0x257   :  { %503 = vst [vmem:[#allocation1] ss:$4 sm:$0xff] %v35_v32  ;;  %499 = vrot.lane.b32.xlu2 %v498_v33, %s1919_s18 }
 0x259   :  { %v438_v7 = vpop.permute.xlu2 %437 }
 0x25e   :  { %v505_v35 = vld.sshfl [vmem:[#allocation1 + $0x8] sm:$0xff pattern:$0x73625140]  ;;  %v504_v36 = vld.sshfl [vmem:[#allocation1] sm:$0xff pattern:$0x73625140] }
 0x25f   :  { %508 = vrot.lane.b32.xlu1 %v505_v35, %s1920_s19  ;;  %506 = vrot.lane.b32.xlu0 %v504_v36, %s1920_s19  ;;  %529 = vst [vmem:[#allocation1] ss:$4 sm:$0xff] %v36_v34 }
 0x261   :  { %v428_v5 = vpop.permute.xlu0 %427 }
 0x266   :  { %v530_v37 = vld.sshfl [vmem:[#allocation1] sm:$0xff pattern:$0x73625140] }
 0x267   :  { %534 = vst [vmem:[#allocation1] ss:$4 sm:$0xff] %v36_v34  ;;  %531 = vrot.lane.b32.xlu2 %v530_v37, %s1915_s0 }
 0x269   :  { %v433_v6 = vpop.permute.xlu1 %432 }
 0x26a   :  { %v513_v9 = vsel %vm120_vm0, %v428_v5, %v433_v6 }
 0x26b   :  { %v514_v11 = vsel %vm122_vm1, %v513_v9, %v438_v7 }
 0x26e   :  { %v535_v39 = vld.sshfl [vmem:[#allocation1] sm:$0xff pattern:$0x73625140] }
 0x26f   :  { %536 = vrot.lane.b32.xlu0 %v535_v39, %s1916_s15  ;;  %539 = vst [vmem:[#allocation1] ss:$4 sm:$0xff] %v36_v34 }
 0x271   :  { %v455_v13 = vpop.permute.xlu2 %454 }
 0x276   :  { %v540_v41 = vld.sshfl [vmem:[#allocation1] sm:$0xff pattern:$0x73625140] }
 0x277   :  { %541 = vrot.lane.b32.xlu1 %v540_v41, %s2800_s16  ;;  %544 = vst [vmem:[#allocation1] ss:$4 sm:$0xff] %v36_v34 }
 0x279   :  { %v443_v10 = vpop.permute.xlu0 %442 }
 0x27a   :  { %v515_v12 = vsel %vm124_vm2, %v514_v11, %v443_v10 }
 0x27e   :  { %v545_v46 = vld.sshfl [vmem:[#allocation1] sm:$0xff pattern:$0x73625140] }
 0x27f   :  { %549 = vst [vmem:[#allocation1] ss:$4 sm:$0xff] %v36_v34  ;;  %546 = vrot.lane.b32.xlu2 %v545_v46, %s1918_s17 }
 0x281   :  { %v448_v28 = vpop.permute.xlu1 %447  ;;  %v470_v24 = vpop.permute.xlu2 %469 }
 0x282   :  { %v516_v17 = vsel %vm126_vm3, %v515_v12, %v448_v28 }
 0x286   :  { %v550_v49 = vld.sshfl [vmem:[#allocation1] sm:$0xff pattern:$0x73625140] }
 0x287   :  { %551 = vrot.lane.b32.xlu0 %v550_v49, %s1919_s18  ;;  %554 = vst [vmem:[#allocation1] ss:$4 sm:$0xff] %v36_v34 }
 0x289   :  { %v457_v15 = vpop.permute.xlu0 %456 }
 0x28a   :  { %v459_v18 = vsel %vm458_vm15, %v455_v13, %v457_v15  ;;  %vm510_vm15 = vcmask 629760  }
 0x28b   :  { %v517_v19 = vsel %vm128_vm4, %v516_v17, %v459_v18 }
 0x28e   :  { %v555_v55 = vld.sshfl [vmem:[#allocation1] sm:$0xff pattern:$0x73625140] }
 0x28f   :  { %556 = vrot.lane.b32.xlu1 %v555_v55, %s1920_s19  ;;  %559 = vst [vmem:[#allocation1] ss:$4 sm:$0xff] %v36_v34 }
 0x291   :  { %v465_v16 = vpop.permute.xlu1 %464 }
 0x292   :  { %v518_v22 = vsel %vm130_vm5, %v517_v19, %v465_v16 }
 0x293   :  { %v519_v25 = vsel %vm132_vm6, %v518_v22, %v470_v24 }
 0x294   :  { %v520_v27 = vsel %vm134_vm7, %v519_v25, %v2178_v38 }
 0x296   :  { %v560_v59 = vld.sshfl [vmem:[#allocation1] sm:$0xff pattern:$0x73625140] }
 0x297   :  { %564 = vst [vmem:[#allocation1] ss:$4 sm:$0xff] %v36_v34  ;;  %561 = vrot.lane.b32.xlu2 %v560_v59, %s1921_s20 }
 0x299   :  { %v485_v44 = vpop.permute.xlu2 %484 }
 0x29e   :  { %v565_v62 = vld.sshfl [vmem:[#allocation1] sm:$0xff pattern:$0x73625140] }
 0x29f   :  { %566 = vrot.lane.b32.xlu0 %v565_v62, %s1922_s21  ;;  %569 = vst [vmem:[#allocation1] ss:$4 sm:$0xff] %v36_v34 }
 0x2a1   :  { %v475_v23 = vpop.permute.xlu0 %474 }
 0x2a2   :  { %v521_v30 = vsel %vm136_vm8, %v520_v27, %v475_v23 }
 0x2a6   :  { %v570_v1 = vld.sshfl [vmem:[#allocation1] sm:$0xff pattern:$0x73625140] }
 0x2a7   :  { %571 = vrot.lane.b32.xlu1 %v570_v1, %s2793_s22  ;;  %575 = vst [vmem:[#allocation1] ss:$4 sm:$0xff] %v37_v63  ;;  %v2268_v1 = vld [vmem:[#allocation2 + $0x14] sm:$0x3] }
 0x2a9   :  { %v480_v26 = vpop.permute.xlu1 %479 }
 0x2aa   :  { %v522_v32 = vsel %vm138_vm9, %v521_v30, %v480_v26 }
 0x2ab   :  { %v523_v34 = vsel %vm140_vm10, %v522_v32, %v485_v44  ;;  %v40_v32 = vld [vmem:[#allocation2 + $0x16] sm:$0x3] }
 0x2ae   :  { %v577_v3 = vld.sshfl [vmem:[#allocation1 + $0x8] sm:$0xff pattern:$0x73625140]  ;;  %v576_v4 = vld.sshfl [vmem:[#allocation1] sm:$0xff pattern:$0x73625140] }
 0x2af   :  { %580 = vrot.lane.b32.xlu0 %v577_v3, %s1924_s23  ;;  %586 = vst [vmem:[#allocation1] ss:$4 sm:$0xff] %v2230_v2  ;;  %578 = vrot.lane.b32.xlu2 %v576_v4, %s1924_s23 }
 0x2b1   :  { %v500_v39 = vpop.permute.xlu2 %499 }
 0x2b6   :  { %v587_v8 = vld.sshfl [vmem:[#allocation1] sm:$0xff pattern:$0x73625140] }
 0x2b7   :  { %588 = vrot.lane.b32.xlu1 %v587_v8, %s1925_s24  ;;  %591 = vst [vmem:[#allocation1] ss:$4 sm:$0xff] %v2230_v2 }
 0x2b9   :  { %v490_v31 = vpop.permute.xlu0 %489 }
 0x2ba   :  { %v524_v36 = vsel %vm142_vm11, %v523_v34, %v490_v31 }
 0x2be   :  { %v592_v14 = vld.sshfl [vmem:[#allocation1] sm:$0xff pattern:$0x73625140] }
 0x2bf   :  { %596 = vst [vmem:[#allocation1] ss:$4 sm:$0xff] %v2230_v2  ;;  %593 = vrot.lane.b32.xlu2 %v592_v14, %s1926_s25 }
 0x2c1   :  { %v495_v33 = vpop.permute.xlu1 %494  ;;  %v532_v8 = vpop.permute.xlu2 %531 }
 0x2c2   :  { %v525_v37 = vsel %vm144_vm12, %v524_v36, %v495_v33 }
 0x2c3   :  { %v526_v46 = vsel %vm146_vm13, %v525_v37, %v500_v39 }
 0x2c6   :  { %v597_v20 = vld.sshfl [vmem:[#allocation1] sm:$0xff pattern:$0x73625140]  ;;  %v2257_v38 = vpop.permute.xlu0 %824 }
 0x2c7   :  { %598 = vrot.lane.b32.xlu0 %v597_v20, %s2812_s26  ;;  %601 = vst [vmem:[#allocation1] ss:$4 sm:$0xff] %v2230_v2 }
 0x2ce   :  { %v602_v29 = vld.sshfl [vmem:[#allocation1] sm:$0xff pattern:$0x73625140] }
 0x2cf   :  { %603 = vrot.lane.b32.xlu1 %v602_v29, %s1928_s27  ;;  %606 = vst [vmem:[#allocation1] ss:$4 sm:$0xff] %v2230_v2 }
 0x2d1   :  { %v509_v41 = vpop.permute.xlu1 %508  ;;  %v507_v55 = vpop.permute.xlu0 %506 }
 0x2d2   :  { %v511_v59 = vsel %vm510_vm15, %v507_v55, %v509_v41  ;;  %vm582_vm15 = vcmask 367616  }
 0x2d3   :  { %v527_v62 = vsel %vm148_vm14, %v526_v46, %v511_v59 }
 0x2d6   :  { %v607_v35 = vld.sshfl [vmem:[#allocation1] sm:$0xff pattern:$0x73625140] }
 0x2d7   :  { %608 = vrot.lane.b32.xlu2 %v607_v35, %s1914_s14  ;;  %626 = vst [vmem:[#allocation1] ss:$4 sm:$0xff] %v2230_v2  ;;  %828 = vrot.lane.b32.xlu1 %v527_v62, %s1921_s20 }
 0x2d9   :  { %v547_v11 = vpop.permute.xlu2 %546 }
 0x2de   :  { %v627_v49 = vld.sshfl [vmem:[#allocation1] sm:$0xff pattern:$0x73625140] }
 0x2df   :  { %628 = vrot.lane.b32.xlu0 %v627_v49, %s1925_s24  ;;  %631 = vst [vmem:[#allocation1] ss:$4 sm:$0xff] %v2230_v2 }
 0x2e1   :  { %v537_v9 = vpop.permute.xlu0 %536 }
 0x2e2   :  { %v611_v12 = vsel %vm120_vm0, %v532_v8, %v537_v9 }
 0x2e6   :  { %v632_v63 = vld.sshfl [vmem:[#allocation1] sm:$0xff pattern:$0x73625140] }
 0x2e7   :  { %636 = vst [vmem:[#allocation1] ss:$4 sm:$0xff] %v2230_v2  ;;  %633 = vrot.lane.b32.xlu1 %v632_v63, %s1926_s25 }
 0x2e9   :  { %v542_v28 = vpop.permute.xlu1 %541 }
 0x2ea   :  { %v612_v15 = vsel %vm122_vm1, %v611_v12, %v542_v28 }
 0x2eb   :  { %v613_v18 = vsel %vm124_vm2, %v612_v15, %v547_v11  ;;  %v2315_v11 = vld [vmem:[#allocation2 + $0x18] sm:$0x3] }
 0x2ee   :  { %v637_v3 = vld.sshfl [vmem:[#allocation1] sm:$0xff pattern:$0x73625140] }
 0x2ef   :  { %642 = vst [vmem:[#allocation1] ss:$4 sm:$0xff] %v2268_v1  ;;  %638 = vrot.lane.b32.xlu2 %v637_v3, %s2812_s26 }
 0x2f1   :  { %v562_v17 = vpop.permute.xlu2 %561 }
 0x2f6   :  { %v643_v4 = vld.sshfl [vmem:[#allocation1] sm:$0xff pattern:$0x73625140] }
 0x2f7   :  { %644 = vrot.lane.b32.xlu0 %v643_v4, %s1928_s27  ;;  %647 = vst [vmem:[#allocation1] ss:$4 sm:$0xff] %v2268_v1 }
 0x2f9   :  { %v552_v13 = vpop.permute.xlu0 %551 }
 0x2fa   :  { %v614_v20 = vsel %vm126_vm3, %v613_v18, %v552_v13 }
 0x2fe   :  { %v648_v5 = vld.sshfl [vmem:[#allocation1] sm:$0xff pattern:$0x73625140] }
 0x2ff   :  { %649 = vrot.lane.b32.xlu1 %v648_v5, %s1914_s14  ;;  %652 = vst [vmem:[#allocation1] ss:$4 sm:$0xff] %v2268_v1 }
 0x301   :  { %v557_v16 = vpop.permute.xlu1 %556 }
 0x302   :  { %v615_v23 = vsel %vm128_vm4, %v614_v20, %v557_v16 }
 0x303   :  { %v616_v24 = vsel %vm130_vm5, %v615_v23, %v562_v17 }
 0x306   :  { %v653_v6 = vld.sshfl [vmem:[#allocation1] sm:$0xff pattern:$0x73625140] }
 0x307   :  { %657 = vst [vmem:[#allocation1] ss:$4 sm:$0xff] %v2268_v1  ;;  %654 = vrot.lane.b32.xlu2 %v653_v6, %s1915_s0 }
 0x309   :  { %v579_v26 = vpop.permute.xlu2 %578 }
 0x30e   :  { %v658_v7 = vld.sshfl [vmem:[#allocation1] sm:$0xff pattern:$0x73625140] }
 0x30f   :  { %659 = vrot.lane.b32.xlu0 %v658_v7, %s1916_s15  ;;  %662 = vst [vmem:[#allocation1] ss:$4 sm:$0xff] %v2268_v1 }
 0x311   :  { %v567_v22 = vpop.permute.xlu0 %566 }
 0x312   :  { %v617_v29 = vsel %vm132_vm6, %v616_v24, %v567_v22 }
 0x316   :  { %v663_v10 = vld.sshfl [vmem:[#allocation1] sm:$0xff pattern:$0x73625140] }
 0x317   :  { %664 = vrot.lane.b32.xlu1 %v663_v10, %s2800_s16  ;;  %667 = vst [vmem:[#allocation1] ss:$4 sm:$0xff] %v2268_v1  ;;  %v41_v10 = vld [vmem:[#allocation2 + $0x16] sm:$0xf] }
 0x319   :  { %v572_v25 = vpop.permute.xlu1 %571  ;;  %v594_v36 = vpop.permute.xlu2 %593 }
 0x31a   :  { %v618_v31 = vsel %vm134_vm7, %v617_v29, %v572_v25 }
 0x31e   :  { %v668_v14 = vld.sshfl [vmem:[#allocation1] sm:$0xff pattern:$0x73625140] }
 0x31f   :  { %672 = vst [vmem:[#allocation1] ss:$4 sm:$0xff] %v2268_v1  ;;  %669 = vrot.lane.b32.xlu2 %v668_v14, %s1918_s17 }
 0x321   :  { %v581_v30 = vpop.permute.xlu0 %580 }
 0x322   :  { %v583_v44 = vsel %vm582_vm15, %v579_v26, %v581_v30  ;;  %vm2819_vm15 = vcmask 547840  }
 0x323   :  { %v619_v34 = vsel %vm136_vm8, %v618_v31, %v583_v44 }
 0x326   :  { %v673_v19 = vld.sshfl [vmem:[#allocation1] sm:$0xff pattern:$0x73625140] }
 0x327   :  { %674 = vrot.lane.b32.xlu0 %v673_v19, %s1919_s18  ;;  %677 = vst [vmem:[#allocation1] ss:$4 sm:$0xff] %v2268_v1 }
 0x329   :  { %v589_v35 = vpop.permute.xlu1 %588 }
 0x32a   :  { %v620_v37 = vsel %vm138_vm9, %v619_v34, %v589_v35 }
 0x32b   :  { %v621_v39 = vsel %vm140_vm10, %v620_v37, %v594_v36 }
 0x32e   :  { %v678_v27 = vld.sshfl [vmem:[#allocation1] sm:$0xff pattern:$0x73625140] }
 0x32f   :  { %679 = vrot.lane.b32.xlu1 %v678_v27, %s1920_s19  ;;  %682 = vst [vmem:[#allocation1] ss:$4 sm:$0xff] %v2268_v1 }
 0x331   :  { %v609_v59 = vpop.permute.xlu2 %608 }
 0x336   :  { %v683_v33 = vld.sshfl [vmem:[#allocation1] sm:$0xff pattern:$0x73625140] }
 0x337   :  { %688 = vst [vmem:[#allocation1] ss:$4 sm:$0xff] %v40_v32  ;;  %684 = vrot.lane.b32.xlu2 %v683_v33, %s1921_s20 }
 0x339   :  { %v599_v41 = vpop.permute.xlu0 %598 }
 0x33a   :  { %v622_v49 = vsel %vm142_vm11, %v621_v39, %v599_v41 }
 0x33e   :  { %v689_v46 = vld.sshfl [vmem:[#allocation1] sm:$0xff pattern:$0x73625140] }
 0x33f   :  { %690 = vrot.lane.b32.xlu0 %v689_v46, %s1922_s21  ;;  %693 = vst [vmem:[#allocation1] ss:$4 sm:$0xff] %v40_v32 }
 0x341   :  { %v604_v55 = vpop.permute.xlu1 %603 }
 0x342   :  { %v623_v62 = vsel %vm144_vm12, %v622_v49, %v604_v55 }
 0x343   :  { %v624_v63 = vsel %vm146_vm13, %v623_v62, %v2230_v2 }
 0x344   :  { %v625_v3 = vsel %vm148_vm14, %v624_v63, %v609_v59 }
 0x345   :  { %832 = vrot.lane.b32.xlu2 %v625_v3, %s2812_s26 }
 0x346   :  { %v694_v4 = vld.sshfl [vmem:[#allocation1] sm:$0xff pattern:$0x73625140] }
 0x347   :  { %695 = vrot.lane.b32.xlu1 %v694_v4, %s2793_s22  ;;  %698 = vst [vmem:[#allocation1] ss:$4 sm:$0xff] %v40_v32 }
 0x349   :  { %v639_v12 = vpop.permute.xlu2 %638  ;;  %v2317_v15 = vpop.permute.xlu1 %828 }
 0x34e   :  { %v699_v5 = vld.sshfl [vmem:[#allocation1] sm:$0xff pattern:$0x73625140] }
 0x34f   :  { %700 = vrot.lane.b32.xlu2 %v699_v5, %s1924_s23  ;;  %718 = vst [vmem:[#allocation1] ss:$4 sm:$0xff] %v40_v32 }
 0x351   :  { %v629_v16 = vpop.permute.xlu0 %628 }
 0x356   :  { %v719_v6 = vld.sshfl [vmem:[#allocation1] sm:$0xff pattern:$0x73625140] }
 0x357   :  { %720 = vrot.lane.b32.xlu0 %v719_v6, %s1919_s18  ;;  %723 = vst [vmem:[#allocation1] ss:$4 sm:$0xff] %v40_v32 }
 0x359   :  { %v634_v19 = vpop.permute.xlu1 %633 }
 0x35a   :  { %v703_v20 = vsel %vm120_vm0, %v629_v16, %v634_v19 }
 0x35b   :  { %v704_v22 = vsel %vm122_vm1, %v703_v20, %v639_v12  ;;  %v121_v20 = vsel %vm120_vm0, %v2005_v0, %v2063_v40 }
 0x35e   :  { %v724_v7 = vld.sshfl [vmem:[#allocation1] sm:$0xff pattern:$0x73625140] }
 0x35f   :  { %728 = vst [vmem:[#allocation1] ss:$4 sm:$0xff] %v40_v32  ;;  %725 = vrot.lane.b32.xlu1 %v724_v7, %s1920_s19  ;;  %s2789_s19 = smov 28  }
 0x361   :  { %v655_v18 = vpop.permute.xlu2 %654 }
 0x366   :  { %v729_v2 = vld.sshfl [vmem:[#allocation1] sm:$0xff pattern:$0x73625140] }
 0x367   :  { %733 = vst [vmem:[#allocation1] ss:$4 sm:$0xff] %v40_v32  ;;  %730 = vrot.lane.b32.xlu2 %v729_v2, %s1921_s20 }
 0x369   :  { %v645_v23 = vpop.permute.xlu0 %644 }
 0x36a   :  { %v705_v25 = vsel %vm124_vm2, %v704_v22, %v645_v23  ;;  %v123_v22 = vsel %vm122_vm1, %v121_v20, %v2072_v45 }
 0x36b   :  { %v706_v29 = vsel %vm126_vm3, %v705_v25, %v2268_v1  ;;  %v125_v25 = vsel %vm124_vm2, %v123_v22, %v2066_v42 }
 0x36e   :  { %v734_v8 = vld.sshfl [vmem:[#allocation1] sm:$0xff pattern:$0x73625140] }
 0x36f   :  { %735 = vrot.lane.b32.xlu0 %v734_v8, %s1922_s21  ;;  %738 = vst [vmem:[#allocation1] ss:$4 sm:$0xff] %v40_v32  ;;  %s1947_s21 = smov 24  }
 0x371   :  { %v650_v27 = vpop.permute.xlu1 %649 }
 0x372   :  { %v707_v31 = vsel %vm128_vm4, %v706_v29, %v650_v27  ;;  %v872_v27 = vld [vmem:[#allocation2] sm:$0xf] }
 0x376   :  { %v739_v9 = vld.sshfl [vmem:[#allocation1] sm:$0xff pattern:$0x73625140] }
 0x377   :  { %743 = vst [vmem:[#allocation1] ss:$4 sm:$0xff] %v40_v32  ;;  %740 = vrot.lane.b32.xlu1 %v739_v9, %s2793_s22  ;;  %v708_v32 = vsel %vm130_vm5, %v707_v31, %v655_v18  ;;  %v871_v9 = vld [vmem:[#allocation2] sm:$0x3] }
 0x379   :  { %v670_v26 = vpop.permute.xlu2 %669 }
 0x37e   :  { %v744_v28 = vld.sshfl [vmem:[#allocation1] sm:$0xff pattern:$0x73625140] }
 0x37f   :  { %749 = vst [vmem:[#allocation1] ss:$4 sm:$0xff] %v41_v10  ;;  %745 = vrot.lane.b32.xlu2 %v744_v28, %s1924_s23  ;;  %s2791_s23 = smov 18  }
 0x381   :  { %v660_v44 = vpop.permute.xlu0 %659 }
 0x382   :  { %v709_v34 = vsel %vm132_vm6, %v708_v32, %v660_v44  ;;  %v2380_v44 = vld [vmem:[#allocation2 + $0x2] sm:$0x3] }
 0x386   :  { %v750_v13 = vld.sshfl [vmem:[#allocation1] sm:$0xff pattern:$0x73625140]  ;;  %v751_v14 = vld.sshfl [vmem:[#allocation1 + $0x8] sm:$0xff pattern:$0x73625140] }
 0x387   :  { %752 = vrot.lane.b32.xlu0 %v750_v13, %s1925_s24  ;;  %760 = vst [vmem:[#allocation1] ss:$4 sm:$0xff] %v2315_v11  ;;  %754 = vrot.lane.b32.xlu1 %v751_v14, %s1925_s24 }
 0x389   :  { %v665_v35 = vpop.permute.xlu1 %664 }
 0x38a   :  { %v710_v1 = vsel %vm134_vm7, %v709_v34, %v665_v35 }
 0x38b   :  { %v711_v39 = vsel %vm136_vm8, %v710_v1, %v670_v26  ;;  %v127_v26 = vsel %vm126_vm3, %v125_v25, %v2076_v47 }
 0x38c   :  { %v129_v29 = vsel %vm128_vm4, %v127_v26, %v2068_v43 }
 0x38d   :  { %v131_v45 = vsel %vm130_vm5, %v129_v29, %v2078_v48 }
 0x38e   :  { %v761_v17 = vld.sshfl [vmem:[#allocation1] sm:$0xff pattern:$0x73625140]  ;;  %v133_v42 = vsel %vm132_vm6, %v131_v45, %v2081_v50 }
 0x38f   :  { %765 = vst [vmem:[#allocation1] ss:$4 sm:$0xff] %v2315_v11  ;;  %762 = vrot.lane.b32.xlu2 %v761_v17, %s1926_s25  ;;  %s1949_s25 = smov 14  }
 0x391   :  { %v685_v33 = vpop.permute.xlu2 %684 }
 0x396   :  { %v766_v24 = vld.sshfl [vmem:[#allocation1] sm:$0xff pattern:$0x73625140] }
 0x397   :  { %767 = vrot.lane.b32.xlu0 %v766_v24, %s2812_s26  ;;  %770 = vst [vmem:[#allocation1] ss:$4 sm:$0xff] %v2315_v11 }
 0x399   :  { %v675_v37 = vpop.permute.xlu0 %674 }
 0x39a   :  { %v712_v41 = vsel %vm138_vm9, %v711_v39, %v675_v37 }
 0x39e   :  { %v771_v30 = vld.sshfl [vmem:[#allocation1] sm:$0xff pattern:$0x73625140] }
 0x39f   :  { %775 = vst [vmem:[#allocation1] ss:$4 sm:$0xff] %v2315_v11  ;;  %772 = vrot.lane.b32.xlu1 %v771_v30, %s1928_s27  ;;  %v2341_v46 = vpop.permute.xlu2 %832  ;;  %s2794_s27 = smov 8  }
 0x3a1   :  { %v680_v55 = vpop.permute.xlu1 %679 }
 0x3a2   :  { %v713_v59 = vsel %vm140_vm10, %v712_v41, %v680_v55 }
 0x3a3   :  { %v714_v62 = vsel %vm142_vm11, %v713_v59, %v685_v33  ;;  %v135_v33 = vsel %vm134_vm7, %v133_v42, %v2086_v52 }
 0x3a4   :  { %v137_v50 = vsel %vm136_vm8, %v135_v33, %v2088_v53 }
 0x3a5   :  { %v139_v52 = vsel %vm138_vm9, %v137_v50, %v2090_v54 }
 0x3a6   :  { %v776_v36 = vld.sshfl [vmem:[#allocation1] sm:$0xff pattern:$0x73625140]  ;;  %v141_v41 = vsel %vm140_vm10, %v139_v52, %v2094_v56 }
 0x3a7   :  { %780 = vst [vmem:[#allocation1] ss:$4 sm:$0xff] %v2315_v11  ;;  %777 = vrot.lane.b32.xlu2 %v776_v36, %s1914_s14  ;;  %v143_v59 = vsel %vm142_vm11, %v141_v41, %v2096_v57  ;;  %s1943_s14 = smov 44  }
 0x3a9   :  { %v701_v5 = vpop.permute.xlu2 %700 }
 0x3ae   :  { %v781_v49 = vld.sshfl [vmem:[#allocation1] sm:$0xff pattern:$0x73625140] }
 0x3af   :  { %782 = vrot.lane.b32.xlu0 %v781_v49, %s1915_s0  ;;  %785 = vst [vmem:[#allocation1] ss:$4 sm:$0xff] %v2315_v11 }
 0x3b1   :  { %v691_v63 = vpop.permute.xlu0 %690 }
 0x3b2   :  { %v715_v4 = vsel %vm144_vm12, %v714_v62, %v691_v63 }
 0x3b6   :  { %v786_v3 = vld.sshfl [vmem:[#allocation1] sm:$0xff pattern:$0x73625140] }
 0x3b7   :  { %787 = vrot.lane.b32.xlu1 %v786_v3, %s1916_s15  ;;  %790 = vst [vmem:[#allocation1] ss:$4 sm:$0xff] %v2315_v11  ;;  %s2790_s15 = smov 38  }
 0x3b9   :  { %v696_v6 = vpop.permute.xlu1 %695 }
 0x3ba   :  { %v716_v7 = vsel %vm146_vm13, %v715_v4, %v696_v6  ;;  %v145_v4 = vsel %vm144_vm12, %v143_v59, %v2098_v58 }
 0x3bb   :  { %v717_v2 = vsel %vm148_vm14, %v716_v7, %v701_v5  ;;  %v147_v6 = vsel %vm146_vm13, %v145_v4, %v2101_v60 }
 0x3bc   :  { %836 = vrot.lane.b32.xlu0 %v717_v2, %s2800_s16  ;;  %v848_v2 = vsel %vm144_vm12, %v2257_v38, %v2317_v15 }
 0x3be   :  { %v791_v8 = vld.sshfl [vmem:[#allocation1] sm:$0xff pattern:$0x73625140] }
 0x3bf   :  { %795 = vst [vmem:[#allocation1] ss:$4 sm:$0xff] %v2315_v11  ;;  %792 = vrot.lane.b32.xlu2 %v791_v8, %s2800_s16 }
 0x3c1   :  { %v731_v31 = vpop.permute.xlu2 %730 }
 0x3c6   :  { %v796_v10 = vld.sshfl [vmem:[#allocation1] sm:$0xff pattern:$0x73625140] }
 0x3c7   :  { %797 = vrot.lane.b32.xlu0 %v796_v10, %s1918_s17  ;;  %892 = vst [vmem:[#allocation1] ss:$4 sm:$0xff] %v871_v9  ;;  %s1945_s17 = smov 34  }
 0x3c9   :  { %v721_v18 = vpop.permute.xlu0 %720 }
 0x3ce   :  { %v893_v28 = vld.sshfl [vmem:[#allocation1] sm:$0xff pattern:$0x73625140] }
 0x3cf   :  { %897 = vst [vmem:[#allocation1] ss:$4 sm:$0xff] %v871_v9  ;;  %894 = vrot.lane.b32.xlu2 %v893_v28, %s1929_s28 }
 0x3d1   :  { %v726_v30 = vpop.permute.xlu1 %725 }
 0x3d2   :  { %v800_v47 = vsel %vm120_vm0, %v721_v18, %v726_v30  ;;  %vm756_vm0 = vcmask 261120   ;;  %v875_v30 = vld [vmem:[#allocation2 + $0x4] sm:$0x3] }
 0x3d3   :  { %v801_v48 = vsel %vm122_vm1, %v800_v47, %v731_v31  ;;  %v845_v56 = vsel %vm756_vm0, %v2183_v51, %v2206_v21  ;;  %vm846_vm1 = vcmask 916480   ;;  %v149_v21 = vsel %vm148_vm14, %v147_v6, %v2104_v61 }
 0x3d4   :  { %v847_v58 = vsel %vm846_vm1, %v845_v56, %v2257_v38 }
 0x3d5   :  { %v859_v28 = vrot.slane %v847_v58, 6 }
 0x3d6   :  { %v898_v12 = vld.sshfl [vmem:[#allocation1] sm:$0xff pattern:$0x73625140] }
 0x3d7   :  { %902 = vst [vmem:[#allocation1] ss:$4 sm:$0xff] %v871_v9  ;;  %899 = vrot.lane.b32.xlu0 %v898_v12, %s1930_s29  ;;  %v860_v12 = vrot.slane %v848_v2, 4  ;;  %v879_v2 = vld [vmem:[#allocation2 + $0x8] sm:$0x3] }
 0x3d9   :  { %v746_v36 = vpop.permute.xlu2 %745 }
 0x3de   :  { %v903_v13 = vld.sshfl [vmem:[#allocation1] sm:$0xff pattern:$0x73625140] }
 0x3df   :  { %904 = vrot.lane.b32.xlu1 %v903_v13, %s1931_s30  ;;  %907 = vst [vmem:[#allocation1] ss:$4 sm:$0xff] %v871_v9 }
 0x3e1   :  { %v736_v23 = vpop.permute.xlu0 %735 }
 0x3e2   :  { %v802_v1 = vsel %vm124_vm2, %v801_v48, %v736_v23  ;;  %vm849_vm2 = vcmask 130048  }
 0x3e6   :  { %v908_v14 = vld.sshfl [vmem:[#allocation1] sm:$0xff pattern:$0x73625140] }
 0x3e7   :  { %912 = vst [vmem:[#allocation1] ss:$4 sm:$0xff] %v871_v9  ;;  %909 = vrot.lane.b32.xlu2 %v908_v14, %s1932_s3 }
 0x3e9   :  { %v741_v35 = vpop.permute.xlu1 %740  ;;  %v763_v55 = vpop.permute.xlu2 %762 }
 0x3ea   :  { %v803_v37 = vsel %vm126_vm3, %v802_v1, %v741_v35  ;;  %vm843_vm3 = vcmask 654336   ;;  %v876_v35 = vld [vmem:[#allocation2 + $0x4] sm:$0xf] }
 0x3eb   :  { %v804_v53 = vsel %vm128_vm4, %v803_v37, %v746_v36  ;;  %vm2818_vm4 = vcmask 785408   ;;  %v844_v14 = vsel %vm843_vm3, %v149_v21, %v2183_v51  ;;  %v877_v1 = vld [vmem:[#allocation2 + $0x6] sm:$0x3] }
 0x3ee   :  { %v913_v16 = vld.sshfl [vmem:[#allocation1] sm:$0xff pattern:$0x73625140] }
 0x3ef   :  { %917 = vst [vmem:[#allocation1] ss:$4 sm:$0xff] %v871_v9  ;;  %914 = vrot.lane.b32.xlu0 %v913_v16, %s1933_s4 }
 0x3f6   :  { %v918_v17 = vld.sshfl [vmem:[#allocation1] sm:$0xff pattern:$0x73625140] }
 0x3f7   :  { %919 = vrot.lane.b32.xlu1 %v918_v17, %s1934_s5  ;;  %922 = vst [vmem:[#allocation1] ss:$4 sm:$0xff] %v871_v9 }
 0x3f9   :  { %v753_v40 = vpop.permute.xlu0 %752  ;;  %v755_v49 = vpop.permute.xlu1 %754 }
 0x3fa   :  { %v757_v54 = vsel %vm756_vm0, %v753_v40, %v755_v49  ;;  %v874_v40 = vld [vmem:[#allocation2 + $0x2] sm:$0xf] }
 0x3fb   :  { %v805_v63 = vsel %vm130_vm5, %v804_v53, %v757_v54  ;;  %vm2816_vm5 = vcmask 1041408  }
 0x3fc   :  { %v806_v3 = vsel %vm132_vm6, %v805_v63, %v763_v55  ;;  %vm2814_vm6 = vcmask 1045508  }
 0x3fe   :  { %v923_v19 = vld.sshfl [vmem:[#allocation1] sm:$0xff pattern:$0x73625140] }
 0x3ff   :  { %927 = vst [vmem:[#allocation1] ss:$4 sm:$0xff] %v871_v9  ;;  %924 = vrot.lane.b32.xlu2 %v923_v19, %s1935_s6 }
 0x401   :  { %v778_v60 = vpop.permute.xlu2 %777 }
 0x406   :  { %v928_v24 = vld.sshfl [vmem:[#allocation1] sm:$0xff pattern:$0x73625140] }
 0x407   :  { %932 = vst [vmem:[#allocation1] ss:$4 sm:$0xff] %v871_v9  ;;  %929 = vrot.lane.b32.xlu0 %v928_v24, %s1936_s7  ;;  %v850_v9 = vsel %vm849_vm2, %v2317_v15, %v2341_v46  ;;  %v863_v46 = vsel %vm2816_vm5, %v844_v14, %v859_v28  ;;  %vm1025_vm5 = vcmask 228352  }
 0x409   :  { %v768_v34 = vpop.permute.xlu0 %767 }
 0x40a   :  { %v807_v57 = vsel %vm134_vm7, %v806_v3, %v768_v34  ;;  %vm2809_vm7 = vcmask 1043456  }
 0x40e   :  { %v933_v0 = vld.sshfl [vmem:[#allocation1] sm:$0xff pattern:$0x73625140] }
 0x40f   :  { %934 = vrot.lane.b32.xlu1 %v933_v0, %s1937_s8  ;;  %938 = vst [vmem:[#allocation1] ss:$4 sm:$0xff] %v872_v27 }
 0x411   :  { %v773_v7 = vpop.permute.xlu1 %772 }
 0x412   :  { %v808_v8 = vsel %vm136_vm8, %v807_v57, %v773_v7  ;;  %vm979_vm8 = vcmask 23552   ;;  %v878_v7 = vld [vmem:[#allocation2 + $0x6] sm:$0xf] }
 0x413   :  { %v809_v10 = vsel %vm138_vm9, %v808_v8, %v2315_v11  ;;  %vm982_vm9 = vcmask 154624  }
 0x414   :  { %v810_v11 = vsel %vm140_vm10, %v809_v10, %v778_v60  ;;  %vm985_vm10 = vcmask 285696  }
 0x416   :  { %v939_v32 = vld.sshfl [vmem:[#allocation1] sm:$0xff pattern:$0x73625140]  ;;  %v940_v43 = vld.sshfl [vmem:[#allocation1 + $0x8] sm:$0xff pattern:$0x73625140] }
 0x417   :  { %949 = vst [vmem:[#allocation1] ss:$4 sm:$0xff] %v2380_v44  ;;  %943 = vrot.lane.b32.xlu0 %v940_v43, %s1938_s9  ;;  %941 = vrot.lane.b32.xlu2 %v939_v32, %s1938_s9 }
 0x419   :  { %v793_v22 = vpop.permute.xlu2 %792 }
 0x41e   :  { %v950_v39 = vld.sshfl [vmem:[#allocation1] sm:$0xff pattern:$0x73625140] }
 0x41f   :  { %951 = vrot.lane.b32.xlu1 %v950_v39, %s1939_s10  ;;  %954 = vst [vmem:[#allocation1] ss:$4 sm:$0xff] %v2380_v44 }
 0x421   :  { %v783_v62 = vpop.permute.xlu0 %782 }
 0x422   :  { %v811_v17 = vsel %vm142_vm11, %v810_v11, %v783_v62  ;;  %vm853_vm11 = vcmask 392192  }
 0x426   :  { %v955_v5 = vld.sshfl [vmem:[#allocation1] sm:$0xff pattern:$0x73625140] }
 0x427   :  { %959 = vst [vmem:[#allocation1] ss:$4 sm:$0xff] %v2380_v44  ;;  %956 = vrot.lane.b32.xlu2 %v955_v5, %s2799_s11  ;;  %s2802_s11 = smov 76  }
 0x429   :  { %v788_v51 = vpop.permute.xlu1 %787  ;;  %v895_v54 = vpop.permute.xlu2 %894 }
 0x42a   :  { %v812_v20 = vsel %vm144_vm12, %v811_v17, %v788_v51 }
 0x42b   :  { %v813_v23 = vsel %vm146_vm13, %v812_v20, %v793_v22  ;;  %vm988_vm13 = vcmask 416768  }
 0x42e   :  { %v2428_v13 = vpop.permute.xlu0 %836  ;;  %v960_v38 = vld.sshfl [vmem:[#allocation1] sm:$0xff pattern:$0x73625140] }
 0x42f   :  { %v852_v61 = vsel %vm2818_vm4, %v850_v9, %v2428_v13  ;;  %964 = vst [vmem:[#allocation1] ss:$4 sm:$0xff] %v2380_v44  ;;  %961 = vrot.lane.b32.xlu0 %v960_v38, %s1921_s20 }
 0x430   :  { %v861_v15 = vrot.slane %v852_v61, 2 }
 0x432   :  { %v865_v16 = vsel %vm2814_vm6, %v860_v12, %v861_v15  ;;  %vm1000_vm6 = vcmask 941056  }
 0x433   :  { %v867_v18 = vsel %vm2809_vm7, %v863_v46, %v865_v16  ;;  %vm994_vm7 = vcmask 678912  }
 0x434   :  { %869 = vst [vmem:[#allocation5] sm:$0xff] %v867_v18 }
 0x436   :  { %v965_v19 = vld.sshfl [vmem:[#allocation1] sm:$0xff pattern:$0x73625140] }
 0x437   :  { %966 = vrot.lane.b32.xlu1 %v965_v19, %s2797_s12  ;;  %969 = vst [vmem:[#allocation1] ss:$4 sm:$0xff] %v2380_v44  ;;  %s2801_s12 = smov 86  }
 0x439   :  { %v798_v24 = vpop.permute.xlu0 %797 }
 0x43a   :  { %v814_v25 = vsel %vm148_vm14, %v813_v23, %v798_v24  ;;  %vm945_vm14 = vcmask 637952  }
 0x43e   :  { %v970_v26 = vld.sshfl [vmem:[#allocation1] sm:$0xff pattern:$0x73625140] }
 0x43f   :  { %840 = vrot.lane.b32.xlu1 %v814_v25, %s2793_s22  ;;  %974 = vst [vmem:[#allocation1] ss:$4 sm:$0xff] %v2380_v44  ;;  %971 = vrot.lane.b32.xlu2 %v970_v26, %s1942_s13 }
 0x441   :  { %v910_v56 = vpop.permute.xlu2 %909 }
 0x446   :  { %v975_v27 = vld.sshfl [vmem:[#allocation1] sm:$0xff pattern:$0x73625140] }
 0x447   :  { %976 = vrot.lane.b32.xlu0 %v975_v27, %s2793_s22  ;;  %1002 = vst [vmem:[#allocation1] ss:$4 sm:$0xff] %v2380_v44  ;;  %s2796_s22 = smov 116  }
 0x449   :  { %v900_v63 = vpop.permute.xlu0 %899 }
 0x44a   :  { %v980_v4 = vsel %vm979_vm8, %v895_v54, %v900_v63 }
 0x44e   :  { %v1003_v29 = vld.sshfl [vmem:[#allocation1] sm:$0xff pattern:$0x73625140] }
 0x44f   :  { %1004 = vrot.lane.b32.xlu1 %v1003_v29, %s1943_s14  ;;  %1007 = vst [vmem:[#allocation1] ss:$4 sm:$0xff] %v2380_v44 }
 0x451   :  { %v905_v3 = vpop.permute.xlu1 %904 }
 0x452   :  { %v981_v5 = vsel %vm849_vm2, %v980_v4, %v905_v3 }
 0x453   :  { %v983_v57 = vsel %vm982_vm9, %v981_v5, %v910_v56 }
 0x456   :  { %v1008_v0 = vld.sshfl [vmem:[#allocation1] sm:$0xff pattern:$0x73625140] }
 0x457   :  { %1012 = vst [vmem:[#allocation1] ss:$4 sm:$0xff] %v2380_v44  ;;  %1009 = vrot.lane.b32.xlu2 %v1008_v0, %s2790_s15  ;;  %s2795_s15 = smov 126  }
 0x459   :  { %v925_v12 = vpop.permute.xlu2 %924 }
 0x45e   :  { %v1013_v45 = vld.sshfl [vmem:[#allocation1] sm:$0xff pattern:$0x73625140] }
 0x45f   :  { %1014 = vrot.lane.b32.xlu0 %v1013_v45, %s1945_s17  ;;  %1018 = vst [vmem:[#allocation1] ss:$4 sm:$0xff] %v874_v40 }
 0x461   :  { %v915_v9 = vpop.permute.xlu0 %914 }
 0x462   :  { %v984_v10 = vsel %vm756_vm0, %v983_v57, %v915_v9  ;;  %v882_v9 = vld [vmem:[#allocation2 + $0xa] sm:$0xf] }
 0x466   :  { %v1019_v31 = vld.sshfl [vmem:[#allocation1] sm:$0xff pattern:$0x73625140]  ;;  %v1020_v42 = vld.sshfl [vmem:[#allocation1 + $0x8] sm:$0xff pattern:$0x73625140] }
 0x467   :  { %1021 = vrot.lane.b32.xlu1 %v1019_v31, %s2789_s19  ;;  %1029 = vst [vmem:[#allocation1] ss:$4 sm:$0xff] %v875_v30  ;;  %1023 = vrot.lane.b32.xlu2 %v1020_v42, %s2789_s19  ;;  %s1951_s19 = smov 4  }
 0x469   :  { %v920_v60 = vpop.permute.xlu1 %919 }
 0x46a   :  { %v986_v28 = vsel %vm985_vm10, %v984_v10, %v920_v60 }
 0x46b   :  { %v987_v38 = vsel %vm853_vm11, %v986_v28, %v925_v12 }
 0x46e   :  { %v1030_v47 = vld.sshfl [vmem:[#allocation1] sm:$0xff pattern:$0x73625140] }
 0x46f   :  { %1031 = vrot.lane.b32.xlu0 %v1030_v47, %s1947_s21  ;;  %1034 = vst [vmem:[#allocation1] ss:$4 sm:$0xff] %v875_v30 }
 0x471   :  { %v942_v19 = vpop.permute.xlu2 %941 }
 0x476   :  { %v1035_v44 = vld.sshfl [vmem:[#allocation1] sm:$0xff pattern:$0x73625140] }
 0x477   :  { %1036 = vrot.lane.b32.xlu1 %v1035_v44, %s2791_s23  ;;  %1039 = vst [vmem:[#allocation1] ss:$4 sm:$0xff] %v875_v30  ;;  %s1953_s23 = smov 122  }
 0x479   :  { %v930_v11 = vpop.permute.xlu0 %929 }
 0x47a   :  { %v989_v16 = vsel %vm988_vm13, %v987_v38, %v930_v11 }
 0x47e   :  { %v1040_v32 = vld.sshfl [vmem:[#allocation1] sm:$0xff pattern:$0x73625140] }
 0x47f   :  { %1044 = vst [vmem:[#allocation1] ss:$4 sm:$0xff] %v875_v30  ;;  %1041 = vrot.lane.b32.xlu2 %v1040_v32, %s1949_s25 }
 0x481   :  { %v935_v46 = vpop.permute.xlu1 %934  ;;  %v957_v27 = vpop.permute.xlu2 %956 }
 0x482   :  { %v990_v17 = vsel %vm144_vm12, %v989_v16, %v935_v46 }
 0x486   :  { %v1045_v43 = vld.sshfl [vmem:[#allocation1] sm:$0xff pattern:$0x73625140] }
 0x487   :  { %1046 = vrot.lane.b32.xlu0 %v1045_v43, %s2794_s27  ;;  %1049 = vst [vmem:[#allocation1] ss:$4 sm:$0xff] %v875_v30  ;;  %s2798_s27 = smov 106  }
 0x489   :  { %v944_v23 = vpop.permute.xlu0 %943 }
 0x48a   :  { %v946_v24 = vsel %vm945_vm14, %v942_v19, %v944_v23  ;;  %vm997_vm14 = vcmask 809984  }
 0x48b   :  { %v992_v25 = vsel %vm2819_vm15, %v990_v17, %v946_v24 }
 0x48e   :  { %v1050_v33 = vld.sshfl [vmem:[#allocation1] sm:$0xff pattern:$0x73625140] }
 0x48f   :  { %1051 = vrot.lane.b32.xlu1 %v1050_v33, %s1951_s19  ;;  %1054 = vst [vmem:[#allocation1] ss:$4 sm:$0xff] %v875_v30  ;;  %v880_v33 = vld [vmem:[#allocation2 + $0x8] sm:$0xf] }
 0x491   :  { %v952_v20 = vpop.permute.xlu1 %951 }
 0x492   :  { %v993_v26 = vsel %vm843_vm3, %v992_v25, %v952_v20 }
 0x493   :  { %v995_v29 = vsel %vm994_vm7, %v993_v26, %v957_v27 }
 0x496   :  { %v1055_v48 = vld.sshfl [vmem:[#allocation1] sm:$0xff pattern:$0x73625140] }
 0x497   :  { %1059 = vst [vmem:[#allocation1] ss:$4 sm:$0xff] %v875_v30  ;;  %1056 = vrot.lane.b32.xlu2 %v1055_v48, %s2795_s15  ;;  %s1956_s15 = smov 102  }
 0x499   :  { %v972_v32 = vpop.permute.xlu2 %971 }
 0x49e   :  { %v1060_v34 = vld.sshfl [vmem:[#allocation1] sm:$0xff pattern:$0x73625140] }
 0x49f   :  { %1061 = vrot.lane.b32.xlu0 %v1060_v34, %s1953_s23  ;;  %1064 = vst [vmem:[#allocation1] ss:$4 sm:$0xff] %v875_v30  ;;  %v881_v34 = vld [vmem:[#allocation2 + $0xa] sm:$0x3] }
 0x4a6   :  { %v1065_v50 = vld.sshfl [vmem:[#allocation1] sm:$0xff pattern:$0x73625140] }
 0x4a7   :  { %1066 = vrot.lane.b32.xlu1 %v1065_v50, %s2796_s22  ;;  %1069 = vst [vmem:[#allocation1] ss:$4 sm:$0xff] %v875_v30  ;;  %s1957_s22 = smov 92   ;;  %v962_v30 = vpop.permute.xlu0 %961 }
 0x4a8   :  { %v996_v42 = vsel %vm2818_vm4, %v995_v29, %v962_v30 }
 0x4a9   :  { %v967_v0 = vpop.permute.xlu1 %966 }
 0x4aa   :  { %v998_v44 = vsel %vm997_vm14, %v996_v42, %v967_v0 }
 0x4ab   :  { %v999_v43 = vsel %vm846_vm1, %v998_v44, %v972_v32 }
 0x4ae   :  { %v1070_v36 = vld.sshfl [vmem:[#allocation1] sm:$0xff pattern:$0x73625140] }
 0x4af   :  { %1075 = vst [vmem:[#allocation1] ss:$4 sm:$0xff] %v876_v35  ;;  %1071 = vrot.lane.b32.xlu2 %v1070_v36, %s1915_s0 }
 0x4b1   :  { %v841_v31 = vpop.permute.xlu1 %840 }
 0x4b2   :  { %v854_v47 = vsel %vm853_vm11, %v2428_v13, %v841_v31 }
 0x4b3   :  { %870 = vst [vmem:[#allocation5 + $0x8] sm:$0x3] %v854_v47 }
 0x4b6   :  { %v1076_v52 = vld.sshfl [vmem:[#allocation1] sm:$0xff pattern:$0x73625140]  ;;  %v1077_v37 = vld.sshfl [vmem:[#allocation1 + $0x8] sm:$0xff pattern:$0x73625140] }
 0x4b7   :  { %1078 = vrot.lane.b32.xlu0 %v1076_v52, %s2798_s27  ;;  %1080 = vrot.lane.b32.xlu1 %v1077_v37, %s2798_s27  ;;  %1086 = vst [vmem:[#allocation1] ss:$4 sm:$0xff] %v877_v1  ;;  %s1959_s27 = smov 82   ;;  %v1010_v37 = vpop.permute.xlu2 %1009 }
 0x4b9   :  { %v977_v36 = vpop.permute.xlu0 %976 }
 0x4be   :  { %v1087_v39 = vld.sshfl [vmem:[#allocation1] sm:$0xff pattern:$0x73625140] }
 0x4bf   :  { %1091 = vst [vmem:[#allocation1] ss:$4 sm:$0xff] %v877_v1  ;;  %1088 = vrot.lane.b32.xlu2 %v1087_v39, %s1956_s15 }
 0x4c1   :  { %v1005_v52 = vpop.permute.xlu1 %1004 }
 0x4c2   :  { %v1096_v39 = vsel %vm979_vm8, %v1005_v52, %v1010_v37 }
 0x4c6   :  { %v1092_v41 = vld.sshfl [vmem:[#allocation1] sm:$0xff pattern:$0x73625140] }
 0x4c7   :  { %1093 = vrot.lane.b32.xlu0 %v1092_v41, %s2800_s16  ;;  %1111 = vst [vmem:[#allocation1] ss:$4 sm:$0xff] %v877_v1  ;;  %s2803_s16 = smov 72  }
 0x4ce   :  { %v1112_v53 = vld.sshfl [vmem:[#allocation1] sm:$0xff pattern:$0x73625140] }
 0x4cf   :  { %1113 = vrot.lane.b32.xlu1 %v1112_v53, %s1957_s22  ;;  %1116 = vst [vmem:[#allocation1] ss:$4 sm:$0xff] %v877_v1 }
 0x4d6   :  { %v1117_v49 = vld.sshfl [vmem:[#allocation1] sm:$0xff pattern:$0x73625140] }
 0x4d7   :  { %1121 = vst [vmem:[#allocation1] ss:$4 sm:$0xff] %v877_v1  ;;  %1118 = vrot.lane.b32.xlu2 %v1117_v49, %s2801_s12  ;;  %s2804_s12 = smov 66  }
 0x4d9   :  { %v1022_v54 = vpop.permute.xlu1 %1021 }
 0x4de   :  { %v1122_v55 = vld.sshfl [vmem:[#allocation1] sm:$0xff pattern:$0x73625140] }
 0x4df   :  { %1123 = vrot.lane.b32.xlu0 %v1122_v55, %s1959_s27  ;;  %1126 = vst [vmem:[#allocation1] ss:$4 sm:$0xff] %v877_v1  ;;  %v1015_v55 = vpop.permute.xlu0 %1014 }
 0x4e6   :  { %v1127_v59 = vld.sshfl [vmem:[#allocation1] sm:$0xff pattern:$0x73625140] }
 0x4e7   :  { %1128 = vrot.lane.b32.xlu1 %v1127_v59, %s2802_s11  ;;  %1131 = vst [vmem:[#allocation1] ss:$4 sm:$0xff] %v877_v1  ;;  %s2805_s11 = smov 62   ;;  %v1097_v59 = vsel %vm849_vm2, %v1096_v39, %v1015_v55  ;;  %v1032_v56 = vpop.permute.xlu0 %1031  ;;  %v2556_v55 = vld [vmem:[#allocation2 + $0xe] sm:$0x3] }
 0x4ee   :  { %v1132_v62 = vld.sshfl [vmem:[#allocation1] sm:$0xff pattern:$0x73625140] }
 0x4ef   :  { %1136 = vst [vmem:[#allocation1] ss:$4 sm:$0xff] %v877_v1  ;;  %1133 = vrot.lane.b32.xlu2 %v1132_v62, %s2803_s16  ;;  %s2806_s16 = smov 56   ;;  %v1024_v62 = vpop.permute.xlu2 %1023 }
 0x4f0   :  { %v1026_v63 = vsel %vm1025_vm5, %v1022_v54, %v1024_v62  ;;  %vm1082_vm5 = vcmask 867328  }
 0x4f1   :  { %v1098_v5 = vsel %vm982_vm9, %v1097_v59, %v1026_v63 }
 0x4f2   :  { %v1099_v57 = vsel %vm756_vm0, %v1098_v5, %v1032_v56 }
 0x4f6   :  { %v1137_v6 = vld.sshfl [vmem:[#allocation1] sm:$0xff pattern:$0x73625140] }
 0x4f7   :  { %1138 = vrot.lane.b32.xlu0 %v1137_v6, %s2804_s12  ;;  %1141 = vst [vmem:[#allocation1] ss:$4 sm:$0xff] %v877_v1  ;;  %s2807_s12 = smov 52   ;;  %v2509_v1 = vsel %vm1000_vm6, %v999_v43, %v977_v36  ;;  %v1037_v6 = vpop.permute.xlu1 %1036 }
 0x4f9   :  { %v1047_v10 = vpop.permute.xlu0 %1046 }
 0x4fe   :  { %v1142_v58 = vld.sshfl [vmem:[#allocation1] sm:$0xff pattern:$0x73625140] }
 0x4ff   :  { %1143 = vrot.lane.b32.xlu1 %v1142_v58, %s2805_s11  ;;  %1147 = vst [vmem:[#allocation1] ss:$4 sm:$0xff] %v878_v7  ;;  %s2808_s11 = smov 46   ;;  %v1100_v7 = vsel %vm985_vm10, %v1099_v57, %v1037_v6  ;;  %v1042_v58 = vpop.permute.xlu2 %1041  ;;  %v885_v6 = vld [vmem:[#allocation2 + $0x10] sm:$0x3] }
 0x501   :  { %v1052_v28 = vpop.permute.xlu1 %1051 }
 0x506   :  { %v1149_v8 = vld.sshfl [vmem:[#allocation1 + $0x8] sm:$0xff pattern:$0x73625140]  ;;  %v1148_v21 = vld.sshfl [vmem:[#allocation1] sm:$0xff pattern:$0x73625140] }
 0x507   :  { %1152 = vrot.lane.b32.xlu0 %v1149_v8, %s2806_s16  ;;  %1158 = vst [vmem:[#allocation1] ss:$4 sm:$0xff] %v879_v2  ;;  %1150 = vrot.lane.b32.xlu2 %v1148_v21, %s2806_s16  ;;  %s1967_s16 = smov 42   ;;  %v1057_v38 = vpop.permute.xlu2 %1056 }
 0x50e   :  { %v1159_v14 = vld.sshfl [vmem:[#allocation1] sm:$0xff pattern:$0x73625140] }
 0x50f   :  { %1160 = vrot.lane.b32.xlu1 %v1159_v14, %s2807_s12  ;;  %1163 = vst [vmem:[#allocation1] ss:$4 sm:$0xff] %v879_v2  ;;  %s2810_s12 = smov 36  }
 0x511   :  { %v1062_v16 = vpop.permute.xlu0 %1061 }
 0x516   :  { %v1164_v61 = vld.sshfl [vmem:[#allocation1] sm:$0xff pattern:$0x73625140] }
 0x517   :  { %1168 = vst [vmem:[#allocation1] ss:$4 sm:$0xff] %v879_v2  ;;  %1165 = vrot.lane.b32.xlu2 %v1164_v61, %s2808_s11  ;;  %s2811_s11 = smov 26  }
 0x519   :  { %v1067_v17 = vpop.permute.xlu1 %1066 }
 0x51e   :  { %v1169_v15 = vld.sshfl [vmem:[#allocation1] sm:$0xff pattern:$0x73625140] }
 0x51f   :  { %1170 = vrot.lane.b32.xlu0 %v1169_v15, %s1967_s16  ;;  %1173 = vst [vmem:[#allocation1] ss:$4 sm:$0xff] %v879_v2  ;;  %v883_v15 = vld [vmem:[#allocation2 + $0xc] sm:$0x3] }
 0x526   :  { %v1174_v51 = vld.sshfl [vmem:[#allocation1] sm:$0xff pattern:$0x73625140] }
 0x527   :  { %1175 = vrot.lane.b32.xlu1 %v1174_v51, %s2810_s12  ;;  %1178 = vst [vmem:[#allocation1] ss:$4 sm:$0xff] %v879_v2  ;;  %s2813_s12 = smov 22  }
 0x529   :  { %v1079_v23 = vpop.permute.xlu0 %1078  ;;  %v1081_v24 = vpop.permute.xlu1 %1080 }
 0x52a   :  { %v1083_v25 = vsel %vm1082_vm5, %v1079_v23, %v1081_v24  ;;  %vm1154_vm5 = vcmask 457728  }
 0x52e   :  { %v1179_v18 = vld.sshfl [vmem:[#allocation1] sm:$0xff pattern:$0x73625140] }
 0x52f   :  { %1183 = vst [vmem:[#allocation1] ss:$4 sm:$0xff] %v879_v2  ;;  %1180 = vrot.lane.b32.xlu2 %v1179_v18, %s1925_s24  ;;  %v1072_v18 = vpop.permute.xlu2 %1071 }
 0x536   :  { %v1184_v22 = vld.sshfl [vmem:[#allocation1] sm:$0xff pattern:$0x73625140] }
 0x537   :  { %1185 = vrot.lane.b32.xlu0 %v1184_v22, %s2811_s11  ;;  %1188 = vst [vmem:[#allocation1] ss:$4 sm:$0xff] %v879_v2  ;;  %s1971_s11 = smov 12   ;;  %v1089_v26 = vpop.permute.xlu2 %1088 }
 0x53e   :  { %v1189_v40 = vld.sshfl [vmem:[#allocation1] sm:$0xff pattern:$0x73625140] }
 0x53f   :  { %1190 = vrot.lane.b32.xlu1 %v1189_v40, %s2813_s12  ;;  %1193 = vst [vmem:[#allocation1] ss:$4 sm:$0xff] %v879_v2  ;;  %s2817_s12 = smov 2   ;;  %v1094_v40 = vpop.permute.xlu0 %1093  ;;  %v1119_v31 = vpop.permute.xlu2 %1118 }
 0x546   :  { %v1194_v45 = vld.sshfl [vmem:[#allocation1] sm:$0xff pattern:$0x73625140] }
 0x547   :  { %1213 = vst [vmem:[#allocation1] ss:$4 sm:$0xff] %v879_v2  ;;  %1195 = vrot.lane.b32.xlu2 %v1194_v45, %s2812_s26  ;;  %s2815_s26 = smov 6   ;;  %v1101_v2 = vsel %vm853_vm11, %v1100_v7, %v1042_v58  ;;  %v1114_v45 = vpop.permute.xlu1 %1113 }
 0x548   :  { %v1102_v12 = vsel %vm988_vm13, %v1101_v2, %v1047_v10  ;;  %v1198_v47 = vsel %vm979_vm8, %v1114_v45, %v1119_v31  ;;  %v2604_v45 = vld [vmem:[#allocation2 + $0x12] sm:$0x3] }
 0x549   :  { %v1103_v14 = vsel %vm144_vm12, %v1102_v12, %v1052_v28 }
 0x54a   :  { %v1104_v61 = vsel %vm2819_vm15, %v1103_v14, %v1057_v38 }
 0x54b   :  { %v1105_v51 = vsel %vm843_vm3, %v1104_v61, %v1062_v16 }
 0x54c   :  { %v1106_v19 = vsel %vm994_vm7, %v1105_v51, %v1067_v17 }
 0x54d   :  { %v1107_v20 = vsel %vm2818_vm4, %v1106_v19, %v1072_v18  ;;  %vm2820_vm4 = vcmask 1041408  }
 0x54e   :  { %v1214_v48 = vld.sshfl [vmem:[#allocation1] sm:$0xff pattern:$0x73625140]  ;;  %v1108_v27 = vsel %vm997_vm14, %v1107_v20, %v1083_v25 }
 0x54f   :  { %1215 = vrot.lane.b32.xlu0 %v1214_v48, %s1971_s11  ;;  %1219 = vst [vmem:[#allocation1] ss:$4 sm:$0xff] %v880_v33  ;;  %v1109_v29 = vsel %vm846_vm1, %v1108_v27, %v1089_v26 }
 0x550   :  { %v1110_v30 = vsel %vm1000_vm6, %v1109_v29, %v1094_v40 }
 0x551   :  { %v1712_v42 = vrot.slane %v1110_v30, 6  ;;  %v1124_v43 = vpop.permute.xlu0 %1123 }
 0x552   :  { %v1199_v48 = vsel %vm849_vm2, %v1198_v47, %v1124_v43 }
 0x553   :  { %v2541_v44 = vsel %vm2820_vm4, %v2509_v1, %v1712_v42  ;;  %vm1226_vm4 = vcmask 48128  }
 0x556   :  { %v1220_v50 = vld.sshfl [vmem:[#allocation1] sm:$0xff pattern:$0x73625140]  ;;  %v1221_v35 = vld.sshfl [vmem:[#allocation1 + $0x8] sm:$0xff pattern:$0x73625140] }
 0x557   :  { %1222 = vrot.lane.b32.xlu1 %v1220_v50, %s2815_s26  ;;  %1230 = vst [vmem:[#allocation1] ss:$4 sm:$0xff] %v881_v34  ;;  %1224 = vrot.lane.b32.xlu2 %v1221_v35, %s2815_s26  ;;  %s1974_s26 = smov 120   ;;  %v1134_v50 = vpop.permute.xlu2 %1133 }
 0x559   :  { %v1129_v33 = vpop.permute.xlu1 %1128 }
 0x55e   :  { %v1231_v13 = vld.sshfl [vmem:[#allocation1] sm:$0xff pattern:$0x73625140] }
 0x55f   :  { %1232 = vrot.lane.b32.xlu0 %v1231_v13, %s2817_s12  ;;  %1235 = vst [vmem:[#allocation1] ss:$4 sm:$0xff] %v881_v34  ;;  %s1975_s12 = smov 110  }
 0x566   :  { %v1236_v41 = vld.sshfl [vmem:[#allocation1] sm:$0xff pattern:$0x73625140] }
 0x567   :  { %1237 = vrot.lane.b32.xlu1 %v1236_v41, %s1929_s28  ;;  %1240 = vst [vmem:[#allocation1] ss:$4 sm:$0xff] %v881_v34  ;;  %s1976_s28 = smov 100  }
 0x569   :  { %v1139_v36 = vpop.permute.xlu0 %1138 }
 0x56e   :  { %v1241_v53 = vld.sshfl [vmem:[#allocation1] sm:$0xff pattern:$0x73625140] }
 0x56f   :  { %1245 = vst [vmem:[#allocation1] ss:$4 sm:$0xff] %v881_v34  ;;  %1242 = vrot.lane.b32.xlu2 %v1241_v53, %s1974_s26 }
 0x571   :  { %v1144_v52 = vpop.permute.xlu1 %1143 }
 0x576   :  { %v1246_v49 = vld.sshfl [vmem:[#allocation1] sm:$0xff pattern:$0x73625140] }
 0x577   :  { %1247 = vrot.lane.b32.xlu0 %v1246_v49, %s1931_s30  ;;  %1250 = vst [vmem:[#allocation1] ss:$4 sm:$0xff] %v881_v34  ;;  %s1977_s30 = smov 90  }
 0x57e   :  { %v1251_v3 = vld.sshfl [vmem:[#allocation1] sm:$0xff pattern:$0x73625140] }
 0x57f   :  { %1252 = vrot.lane.b32.xlu1 %v1251_v3, %s1975_s12  ;;  %1255 = vst [vmem:[#allocation1] ss:$4 sm:$0xff] %v881_v34 }
 0x586   :  { %v1256_v4 = vld.sshfl [vmem:[#allocation1] sm:$0xff pattern:$0x73625140] }
 0x587   :  { %1260 = vst [vmem:[#allocation1] ss:$4 sm:$0xff] %v881_v34  ;;  %1257 = vrot.lane.b32.xlu2 %v1256_v4, %s1933_s4  ;;  %s1978_s4 = smov 70  }
 0x58e   :  { %v1261_v8 = vld.sshfl [vmem:[#allocation1] sm:$0xff pattern:$0x73625140] }
 0x58f   :  { %1262 = vrot.lane.b32.xlu0 %v1261_v8, %s1976_s28  ;;  %1265 = vst [vmem:[#allocation1] ss:$4 sm:$0xff] %v881_v34  ;;  %v2578_v8 = vpop.permute.xlu0 %1152 }
 0x596   :  { %v1266_v21 = vld.sshfl [vmem:[#allocation1] sm:$0xff pattern:$0x73625140] }
 0x597   :  { %1267 = vrot.lane.b32.xlu1 %v1266_v21, %s1935_s6  ;;  %1270 = vst [vmem:[#allocation1] ss:$4 sm:$0xff] %v881_v34  ;;  %v1200_v34 = vsel %vm982_vm9, %v1199_v48, %v1129_v33  ;;  %s1979_s6 = smov 60   ;;  %v2580_v21 = vpop.permute.xlu1 %1160  ;;  %v2584_v10 = vpop.permute.xlu0 %1170 }
 0x598   :  { %v1201_v35 = vsel %vm756_vm0, %v1200_v34, %v1134_v50 }
 0x599   :  { %v1202_v1 = vsel %vm985_vm10, %v1201_v35, %v1139_v36 }
 0x59a   :  { %v2550_v37 = vsel %vm853_vm11, %v1202_v1, %v1144_v52 }
 0x59e   :  { %v1271_v60 = vld.sshfl [vmem:[#allocation1] sm:$0xff pattern:$0x73625140] }
 0x59f   :  { %1276 = vst [vmem:[#allocation1] ss:$4 sm:$0xff] %v882_v9  ;;  %1272 = vrot.lane.b32.xlu2 %v1271_v60, %s1977_s30  ;;  %v1151_v9 = vpop.permute.xlu2 %1150  ;;  %v2586_v28 = vpop.permute.xlu1 %1175 }
 0x5a6   :  { %v1277_v11 = vld.sshfl [vmem:[#allocation1] sm:$0xff pattern:$0x73625140]  ;;  %v1278_v46 = vld.sshfl [vmem:[#allocation1 + $0x8] sm:$0xff pattern:$0x73625140] }
 0x5a7   :  { %1279 = vrot.lane.b32.xlu0 %v1277_v11, %s1937_s8  ;;  %1287 = vst [vmem:[#allocation1] ss:$4 sm:$0xff] %v883_v15  ;;  %1281 = vrot.lane.b32.xlu1 %v1278_v46, %s1937_s8  ;;  %s1981_s8 = smov 40   ;;  %v2588_v12 = vpop.permute.xlu2 %1165 }
 0x5a9   :  { %v2591_v14 = vpop.permute.xlu0 %1185 }
 0x5ae   :  { %v1288_v22 = vld.sshfl [vmem:[#allocation1] sm:$0xff pattern:$0x73625140] }
 0x5af   :  { %1292 = vst [vmem:[#allocation1] ss:$4 sm:$0xff] %v883_v15  ;;  %1289 = vrot.lane.b32.xlu2 %v1288_v22, %s1919_s18  ;;  %v2596_v11 = vpop.permute.xlu2 %1180 }
 0x5b1   :  { %v2593_v61 = vpop.permute.xlu1 %1190 }
 0x5b6   :  { %v1293_v0 = vld.sshfl [vmem:[#allocation1] sm:$0xff pattern:$0x73625140] }
 0x5b7   :  { %1294 = vrot.lane.b32.xlu0 %v1293_v0, %s1939_s10  ;;  %1297 = vst [vmem:[#allocation1] ss:$4 sm:$0xff] %v883_v15  ;;  %s1982_s10 = smov 30   ;;  %v2599_v51 = vpop.permute.xlu2 %1195 }
 0x5be   :  { %v1298_v32 = vld.sshfl [vmem:[#allocation1] sm:$0xff pattern:$0x73625140] }
 0x5bf   :  { %1299 = vrot.lane.b32.xlu1 %v1298_v32, %s1978_s4  ;;  %1302 = vst [vmem:[#allocation1] ss:$4 sm:$0xff] %v883_v15  ;;  %v1225_v22 = vpop.permute.xlu2 %1224 }
 0x5c1   :  { %v1216_v46 = vpop.permute.xlu0 %1215 }
 0x5c6   :  { %v1303_v13 = vld.sshfl [vmem:[#allocation1] sm:$0xff pattern:$0x73625140] }
 0x5c7   :  { %1304 = vrot.lane.b32.xlu2 %v1303_v13, %s1921_s20  ;;  %1322 = vst [vmem:[#allocation1] ss:$4 sm:$0xff] %v883_v15  ;;  %s1980_s20 = smov 50   ;;  %v1155_v13 = vsel %vm1154_vm5, %v1151_v9, %v2578_v8  ;;  %vm2826_vm5 = vcmask 785408  }
 0x5c8   :  { %v1204_v52 = vsel %vm988_vm13, %v2550_v37, %v1155_v13 }
 0x5c9   :  { %v1223_v16 = vpop.permute.xlu1 %1222  ;;  %v1243_v26 = vpop.permute.xlu2 %1242 }
 0x5ca   :  { %v1227_v29 = vsel %vm1226_vm4, %v1223_v16, %v1225_v22  ;;  %vm1283_vm4 = vcmask 687104  }
 0x5cb   :  { %v1307_v30 = vsel %vm979_vm8, %v1216_v46, %v1227_v29 }
 0x5ce   :  { %v1323_v39 = vld.sshfl [vmem:[#allocation1] sm:$0xff pattern:$0x73625140] }
 0x5cf   :  { %1324 = vrot.lane.b32.xlu0 %v1323_v39, %s1979_s6  ;;  %1327 = vst [vmem:[#allocation1] ss:$4 sm:$0xff] %v883_v15 }
 0x5d1   :  { %v1233_v19 = vpop.permute.xlu0 %1232 }
 0x5d2   :  { %v1308_v42 = vsel %vm849_vm2, %v1307_v30, %v1233_v19 }
 0x5d6   :  { %v1328_v41 = vld.sshfl [vmem:[#allocation1] sm:$0xff pattern:$0x73625140] }
 0x5d7   :  { %1329 = vrot.lane.b32.xlu1 %v1328_v41, %s1942_s13  ;;  %1332 = vst [vmem:[#allocation1] ss:$4 sm:$0xff] %v883_v15  ;;  %s1983_s13 = smov 20  }
 0x5d9   :  { %v1238_v20 = vpop.permute.xlu1 %1237 }
 0x5da   :  { %v1309_v32 = vsel %vm982_vm9, %v1308_v42, %v1238_v20  ;;  %v888_v42 = vld [vmem:[#allocation2 + $0x14] sm:$0x3] }
 0x5db   :  { %v1310_v48 = vsel %vm756_vm0, %v1309_v32, %v1243_v26 }
 0x5de   :  { %v1333_v53 = vld.sshfl [vmem:[#allocation1] sm:$0xff pattern:$0x73625140] }
 0x5df   :  { %1337 = vst [vmem:[#allocation1] ss:$4 sm:$0xff] %v883_v15  ;;  %1334 = vrot.lane.b32.xlu2 %v1333_v53, %s1980_s20 }
 0x5e1   :  { %v1258_v47 = vpop.permute.xlu2 %1257 }
 0x5e6   :  { %v1338_v49 = vld.sshfl [vmem:[#allocation1] sm:$0xff pattern:$0x73625140] }
 0x5e7   :  { %1339 = vrot.lane.b32.xlu0 %v1338_v49, %s1943_s14  ;;  %1342 = vst [vmem:[#allocation1] ss:$4 sm:$0xff] %v883_v15  ;;  %s1984_s14 = smov 10   ;;  %v1205_v49 = vsel %vm144_vm12, %v1204_v52, %v2580_v21 }
 0x5e9   :  { %v1248_v24 = vpop.permute.xlu0 %1247 }
 0x5ea   :  { %v1311_v50 = vsel %vm985_vm10, %v1310_v48, %v1248_v24 }
 0x5ee   :  { %v1343_v59 = vld.sshfl [vmem:[#allocation1] sm:$0xff pattern:$0x73625140] }
 0x5ef   :  { %1344 = vrot.lane.b32.xlu1 %v1343_v59, %s1981_s8  ;;  %1348 = vst [vmem:[#allocation1] ss:$4 sm:$0xff] %v2556_v55 }
 0x5f1   :  { %v1253_v25 = vpop.permute.xlu1 %1252 }
 0x5f2   :  { %v1312_v36 = vsel %vm853_vm11, %v1311_v50, %v1253_v25 }
 0x5f3   :  { %v1313_v39 = vsel %vm988_vm13, %v1312_v36, %v1258_v47 }
 0x5f6   :  { %v1349_v54 = vld.sshfl [vmem:[#allocation1] sm:$0xff pattern:$0x73625140] }
 0x5f7   :  { %1353 = vst [vmem:[#allocation1] ss:$4 sm:$0xff] %v2556_v55  ;;  %1350 = vrot.lane.b32.xlu2 %v1349_v54, %s1945_s17  ;;  %s2836_s17 = smov 8  }
 0x5f9   :  { %v1273_v35 = vpop.permute.xlu2 %1272 }
 0x5fe   :  { %v1354_v62 = vld.sshfl [vmem:[#allocation1] sm:$0xff pattern:$0x73625140] }
 0x5ff   :  { %1355 = vrot.lane.b32.xlu0 %v1354_v62, %s1982_s10  ;;  %1358 = vst [vmem:[#allocation1] ss:$4 sm:$0xff] %v2556_v55  ;;  %v1206_v62 = vsel %vm2819_vm15, %v1205_v49, %v2588_v12 }
 0x601   :  { %v1263_v0 = vpop.permute.xlu0 %1262 }
 0x602   :  { %v1314_v59 = vsel %vm144_vm12, %v1313_v39, %v1263_v0 }
 0x606   :  { %v1359_v63 = vld.sshfl [vmem:[#allocation1] sm:$0xff pattern:$0x73625140] }
 0x607   :  { %1360 = vrot.lane.b32.xlu1 %v1359_v63, %s1947_s21  ;;  %1363 = vst [vmem:[#allocation1] ss:$4 sm:$0xff] %v2556_v55  ;;  %s2840_s21 = smov 116  }
 0x609   :  { %v1268_v40 = vpop.permute.xlu1 %1267  ;;  %v1290_v54 = vpop.permute.xlu2 %1289 }
 0x60a   :  { %v1315_v63 = vsel %vm2819_vm15, %v1314_v59, %v1268_v40  ;;  %vm2827_vm15 = vmmov %vm2826_vm5 }
 0x60e   :  { %v1364_v3 = vld.sshfl [vmem:[#allocation1] sm:$0xff pattern:$0x73625140] }
 0x60f   :  { %1368 = vst [vmem:[#allocation1] ss:$4 sm:$0xff] %v2556_v55  ;;  %1365 = vrot.lane.b32.xlu2 %v1364_v3, %s1983_s13 }
 0x616   :  { %v1369_v4 = vld.sshfl [vmem:[#allocation1] sm:$0xff pattern:$0x73625140] }
 0x617   :  { %1370 = vrot.lane.b32.xlu0 %v1369_v4, %s1949_s25  ;;  %1373 = vst [vmem:[#allocation1] ss:$4 sm:$0xff] %v2556_v55  ;;  %s2846_s25 = smov 66  }
 0x619   :  { %v1280_v43 = vpop.permute.xlu0 %1279  ;;  %v1282_v33 = vpop.permute.xlu1 %1281 }
 0x61e   :  { %v1374_v5 = vld.sshfl [vmem:[#allocation1] sm:$0xff pattern:$0x73625140] }
 0x61f   :  { %1375 = vrot.lane.b32.xlu1 %v1374_v5, %s1984_s14  ;;  %1378 = vst [vmem:[#allocation1] ss:$4 sm:$0xff] %v2556_v55  ;;  %v1207_v5 = vsel %vm843_vm3, %v1206_v62, %v2584_v10 }
 0x621   :  { %v1305_v21 = vpop.permute.xlu2 %1304 }
 0x626   :  { %v1379_v56 = vld.sshfl [vmem:[#allocation1] sm:$0xff pattern:$0x73625140] }
 0x627   :  { %1383 = vst [vmem:[#allocation1] ss:$4 sm:$0xff] %v2556_v55  ;;  %1380 = vrot.lane.b32.xlu2 %v1379_v56, %s1951_s19  ;;  %v1316_v56 = vsel %vm843_vm3, %v1315_v63, %v1273_v35  ;;  %s2837_s19 = smov 2  }
 0x629   :  { %v1295_v41 = vpop.permute.xlu0 %1294 }
 0x62e   :  { %v1384_v57 = vld.sshfl [vmem:[#allocation1] sm:$0xff pattern:$0x73625140] }
 0x62f   :  { %1385 = vrot.lane.b32.xlu0 %v1384_v57, %s1953_s23  ;;  %1388 = vst [vmem:[#allocation1] ss:$4 sm:$0xff] %v2556_v55  ;;  %v1284_v57 = vsel %vm1283_vm4, %v1280_v43, %v1282_v33  ;;  %vm2831_vm4 = vcmask 1043456   ;;  %s2841_s23 = smov 106  }
 0x631   :  { %v1300_v53 = vpop.permute.xlu1 %1299 }
 0x636   :  { %v1389_v7 = vld.sshfl [vmem:[#allocation1] sm:$0xff pattern:$0x73625140] }
 0x637   :  { %1390 = vrot.lane.b32.xlu1 %v1389_v7, %s1930_s29  ;;  %1394 = vst [vmem:[#allocation1] ss:$4 sm:$0xff] %v885_v6  ;;  %s2823_s29 = smov 62   ;;  %v1208_v7 = vsel %vm994_vm7, %v1207_v5, %v2586_v28 }
 0x63e   :  { %v1395_v58 = vld.sshfl [vmem:[#allocation1] sm:$0xff pattern:$0x73625140] }
 0x63f   :  { %1414 = vst [vmem:[#allocation1] ss:$4 sm:$0xff] %v885_v6  ;;  %1396 = vrot.lane.b32.xlu2 %v1395_v58, %s1915_s0  ;;  %s2821_s0 = smov 72   ;;  %v1317_v58 = vsel %vm994_vm7, %v1316_v56, %v1284_v57 }
 0x640   :  { %v1318_v8 = vsel %vm2827_vm15, %v1317_v58, %v1290_v54  ;;  %vm2829_vm15 = vcmask 1045508  }
 0x641   :  { %v1325_v3 = vpop.permute.xlu0 %1324  ;;  %v1319_v10 = vsel %vm997_vm14, %v1318_v8, %v1295_v41 }
 0x642   :  { %v1320_v12 = vsel %vm846_vm1, %v1319_v10, %v1300_v53 }
 0x643   :  { %v1321_v46 = vsel %vm1000_vm6, %v1320_v12, %v1305_v21 }
 0x644   :  { %v1714_v20 = vrot.slane %v1321_v46, 2 }
 0x646   :  { %v1415_v2 = vld.sshfl [vmem:[#allocation1] sm:$0xff pattern:$0x73625140] }
 0x647   :  { %1416 = vrot.lane.b32.xlu0 %v1415_v2, %s1932_s3  ;;  %1419 = vst [vmem:[#allocation1] ss:$4 sm:$0xff] %v885_v6  ;;  %s2824_s3 = smov 58   ;;  %v1209_v2 = vsel %vm2826_vm5, %v1208_v7, %v2596_v11  ;;  %vm2835_vm5 = vcmask 547840  }
 0x649   :  { %v1330_v4 = vpop.permute.xlu1 %1329 }
 0x64e   :  { %v1420_v60 = vld.sshfl [vmem:[#allocation1] sm:$0xff pattern:$0x73625140] }
 0x64f   :  { %1421 = vrot.lane.b32.xlu1 %v1420_v60, %s1956_s15  ;;  %1424 = vst [vmem:[#allocation1] ss:$4 sm:$0xff] %v885_v6  ;;  %v1210_v60 = vsel %vm997_vm14, %v1209_v2, %v2591_v14  ;;  %s2834_s15 = smov 18  }
 0x650   :  { %v1211_v28 = vsel %vm846_vm1, %v1210_v60, %v2593_v61 }
 0x651   :  { %v1212_v11 = vsel %vm1000_vm6, %v1211_v28, %v2599_v51 }
 0x652   :  { %v1713_v19 = vrot.slane %v1212_v11, 4 }
 0x654   :  { %v1719_v22 = vsel %vm2829_vm15, %v1713_v19, %v1714_v20  ;;  %vm2839_vm15 = vcmask 785408  }
 0x655   :  { %v1720_v51 = vsel %vm2831_vm4, %v2541_v44, %v1719_v22  ;;  %v887_v44 = vld [vmem:[#allocation2 + $0x12] sm:$0xf]  ;;  %vm2843_vm4 = vmmov %vm2835_vm5 }
 0x656   :  { %v1425_v38 = vld.sshfl [vmem:[#allocation1] sm:$0xff pattern:$0x73625140]  ;;  %1726 = vst [vmem:[#allocation6] sm:$0xff] %v1720_v51 }
 0x657   :  { %1429 = vst [vmem:[#allocation1] ss:$4 sm:$0xff] %v885_v6  ;;  %1426 = vrot.lane.b32.xlu2 %v1425_v38, %s1934_s5  ;;  %s2825_s5 = smov 52  }
 0x659   :  { %v1340_v16 = vpop.permute.xlu0 %1339 }
 0x65e   :  { %v1430_v15 = vld.sshfl [vmem:[#allocation1] sm:$0xff pattern:$0x73625140] }
 0x65f   :  { %1431 = vrot.lane.b32.xlu0 %v1430_v15, %s1957_s22  ;;  %1434 = vst [vmem:[#allocation1] ss:$4 sm:$0xff] %v885_v6  ;;  %s2822_s22 = smov 68   ;;  %v1335_v15 = vpop.permute.xlu2 %1334 }
 0x666   :  { %v1435_v17 = vld.sshfl [vmem:[#allocation1] sm:$0xff pattern:$0x73625140] }
 0x667   :  { %1436 = vrot.lane.b32.xlu1 %v1435_v17, %s1936_s7  ;;  %1439 = vst [vmem:[#allocation1] ss:$4 sm:$0xff] %v885_v6  ;;  %s2828_s7 = smov 48   ;;  %v1351_v25 = vpop.permute.xlu2 %1350 }
 0x66e   :  { %v1440_v18 = vld.sshfl [vmem:[#allocation1] sm:$0xff pattern:$0x73625140] }
 0x66f   :  { %1444 = vst [vmem:[#allocation1] ss:$4 sm:$0xff] %v885_v6  ;;  %1441 = vrot.lane.b32.xlu2 %v1440_v18, %s1959_s27  ;;  %v1345_v18 = vpop.permute.xlu1 %1344  ;;  %v1366_v33 = vpop.permute.xlu2 %1365  ;;  %s2848_s27 = smov 56  }
 0x676   :  { %v1445_v23 = vld.sshfl [vmem:[#allocation1] sm:$0xff pattern:$0x73625140] }
 0x677   :  { %1446 = vrot.lane.b32.xlu0 %v1445_v23, %s1938_s9  ;;  %1449 = vst [vmem:[#allocation1] ss:$4 sm:$0xff] %v885_v6  ;;  %s2830_s9 = smov 38  }
 0x679   :  { %v1361_v0 = vpop.permute.xlu1 %1360 }
 0x67e   :  { %v1450_v27 = vld.sshfl [vmem:[#allocation1] sm:$0xff pattern:$0x73625140] }
 0x67f   :  { %1451 = vrot.lane.b32.xlu1 %v1450_v27, %s2821_s0  ;;  %1454 = vst [vmem:[#allocation1] ss:$4 sm:$0xff] %v885_v6  ;;  %v1399_v6 = vsel %vm979_vm8, %v1325_v3, %v1330_v4  ;;  %v1356_v27 = vpop.permute.xlu0 %1355  ;;  %s2853_s0 = smov 86  }
 0x680   :  { %v1400_v14 = vsel %vm849_vm2, %v1399_v6, %v1335_v15  ;;  %v889_v6 = vld [vmem:[#allocation2 + $0x16] sm:$0x3] }
 0x681   :  { %v1401_v17 = vsel %vm982_vm9, %v1400_v14, %v1340_v16  ;;  %v1381_v52 = vpop.permute.xlu2 %1380 }
 0x682   :  { %v1402_v61 = vsel %vm756_vm0, %v1401_v17, %v1345_v18 }
 0x683   :  { %v1403_v26 = vsel %vm985_vm10, %v1402_v61, %v1351_v25 }
 0x684   :  { %v1404_v29 = vsel %vm853_vm11, %v1403_v26, %v1356_v27 }
 0x685   :  { %v1405_v40 = vsel %vm988_vm13, %v1404_v29, %v1361_v0 }
 0x686   :  { %v1455_v31 = vld.sshfl [vmem:[#allocation1] sm:$0xff pattern:$0x73625140] }
 0x687   :  { %1460 = vst [vmem:[#allocation1] ss:$4 sm:$0xff] %v2604_v45  ;;  %1456 = vrot.lane.b32.xlu2 %v1455_v31, %s2822_s22 }
 0x689   :  { %v1371_v48 = vpop.permute.xlu0 %1370 }
 0x68e   :  { %v1461_v34 = vld.sshfl [vmem:[#allocation1] sm:$0xff pattern:$0x73625140] }
 0x68f   :  { %1462 = vrot.lane.b32.xlu0 %v1461_v34, %s2823_s29  ;;  %1465 = vst [vmem:[#allocation1] ss:$4 sm:$0xff] %v2604_v45  ;;  %s2854_s29 = smov 6  }
 0x691   :  { %v1376_v50 = vpop.permute.xlu1 %1375 }
 0x696   :  { %v1466_v1 = vld.sshfl [vmem:[#allocation1] sm:$0xff pattern:$0x73625140] }
 0x697   :  { %1467 = vrot.lane.b32.xlu1 %v1466_v1, %s2824_s3  ;;  %1470 = vst [vmem:[#allocation1] ss:$4 sm:$0xff] %v2604_v45 }
 0x69e   :  { %v1471_v37 = vld.sshfl [vmem:[#allocation1] sm:$0xff pattern:$0x73625140] }
 0x69f   :  { %1475 = vst [vmem:[#allocation1] ss:$4 sm:$0xff] %v2604_v45  ;;  %1472 = vrot.lane.b32.xlu2 %v1471_v37, %s2825_s5  ;;  %v1397_v37 = vpop.permute.xlu2 %1396  ;;  %s1746_s5 = sshll.u32 %s2788_s2, 4  ;;  %s1747_s5 = int_to_ptr.hbm [resolvable:$true] %s1746_s5 }
 0x6a1   :  { %v1386_v53 = vpop.permute.xlu0 %1385 }
 0x6a6   :  { %v1476_v9 = vld.sshfl [vmem:[#allocation1] sm:$0xff pattern:$0x73625140] }
 0x6a7   :  { %1477 = vrot.lane.b32.xlu0 %v1476_v9, %s2828_s7  ;;  %1480 = vst [vmem:[#allocation1] ss:$4 sm:$0xff] %v2604_v45 }
 0x6a9   :  { %v1391_v59 = vpop.permute.xlu1 %1390 }
 0x6ae   :  { %v1481_v38 = vld.sshfl [vmem:[#allocation1] sm:$0xff pattern:$0x73625140] }
 0x6af   :  { %1482 = vrot.lane.b32.xlu1 %v1481_v38, %s1967_s16  ;;  %1485 = vst [vmem:[#allocation1] ss:$4 sm:$0xff] %v2604_v45  ;;  %s2832_s16 = smov 28  }
 0x6b1   :  { %v1427_v2 = vpop.permute.xlu2 %1426 }
 0x6b6   :  { %v1486_v23 = vld.sshfl [vmem:[#allocation1] sm:$0xff pattern:$0x73625140] }
 0x6b7   :  { %1490 = vst [vmem:[#allocation1] ss:$4 sm:$0xff] %v2604_v45  ;;  %1487 = vrot.lane.b32.xlu2 %v1486_v23, %s2830_s9 }
 0x6b9   :  { %v1417_v4 = vpop.permute.xlu0 %1416 }
 0x6be   :  { %v1491_v24 = vld.sshfl [vmem:[#allocation1] sm:$0xff pattern:$0x73625140] }
 0x6bf   :  { %1492 = vrot.lane.b32.xlu0 %v1491_v24, %s1925_s24  ;;  %1510 = vst [vmem:[#allocation1] ss:$4 sm:$0xff] %v2604_v45  ;;  %s2833_s24 = smov 22  }
 0x6c6   :  { %v1511_v30 = vld.sshfl [vmem:[#allocation1] sm:$0xff pattern:$0x73625140] }
 0x6c7   :  { %1512 = vrot.lane.b32.xlu1 %v1511_v30, %s2832_s16  ;;  %1515 = vst [vmem:[#allocation1] ss:$4 sm:$0xff] %v2604_v45  ;;  %v1406_v45 = vsel %vm144_vm12, %v1405_v40, %v1366_v33 }
 0x6c8   :  { %v1407_v34 = vsel %vm2835_vm5, %v1406_v45, %v1371_v48  ;;  %vm2845_vm5 = vmmov %vm2839_vm15  ;;  %v2721_v48 = vld [vmem:[#allocation2 + $0x18] sm:$0x3] }
 0x6c9   :  { %v1408_v35 = vsel %vm843_vm3, %v1407_v34, %v1376_v50  ;;  %v1442_v12 = vpop.permute.xlu2 %1441 }
 0x6ca   :  { %v1409_v39 = vsel %vm994_vm7, %v1408_v35, %v1381_v52 }
 0x6cb   :  { %v1410_v41 = vsel %vm2839_vm15, %v1409_v39, %v2556_v55  ;;  %v1422_v55 = vpop.permute.xlu1 %1421  ;;  %vm2847_vm15 = vcmask 1041408  }
 0x6cc   :  { %v1411_v49 = vsel %vm997_vm14, %v1410_v41, %v1386_v53  ;;  %v1495_v5 = vsel %vm979_vm8, %v1417_v4, %v1422_v55 }
 0x6cd   :  { %v1412_v54 = vsel %vm846_vm1, %v1411_v49, %v1391_v59  ;;  %v1496_v21 = vsel %vm849_vm2, %v1495_v5, %v1427_v2 }
 0x6ce   :  { %v1516_v31 = vld.sshfl [vmem:[#allocation1] sm:$0xff pattern:$0x73625140]  ;;  %v2686_v3 = vsel %vm1000_vm6, %v1412_v54, %v1397_v37 }
 0x6cf   :  { %1521 = vst [vmem:[#allocation1] ss:$4 sm:$0xff] %v887_v44  ;;  %1517 = vrot.lane.b32.xlu2 %v1516_v31, %s2833_s24 }
 0x6d1   :  { %v1432_v8 = vpop.permute.xlu0 %1431 }
 0x6d2   :  { %v1497_v60 = vsel %vm982_vm9, %v1496_v21, %v1432_v8 }
 0x6d6   :  { %v1523_v47 = vld.sshfl [vmem:[#allocation1 + $0x8] sm:$0xff pattern:$0x73625140]  ;;  %v1522_v32 = vld.sshfl [vmem:[#allocation1] sm:$0xff pattern:$0x73625140] }
 0x6d7   :  { %1526 = vrot.lane.b32.xlu1 %v1523_v47, %s2834_s15  ;;  %1532 = vst [vmem:[#allocation1] ss:$4 sm:$0xff] %v888_v42  ;;  %1524 = vrot.lane.b32.xlu0 %v1522_v32, %s2834_s15 }
 0x6d9   :  { %v1437_v9 = vpop.permute.xlu1 %1436 }
 0x6da   :  { %v1498_v10 = vsel %vm756_vm0, %v1497_v60, %v1437_v9 }
 0x6db   :  { %v1499_v15 = vsel %vm985_vm10, %v1498_v10, %v1442_v12 }
 0x6de   :  { %v1533_v43 = vld.sshfl [vmem:[#allocation1] sm:$0xff pattern:$0x73625140] }
 0x6df   :  { %1537 = vst [vmem:[#allocation1] ss:$4 sm:$0xff] %v888_v42  ;;  %1534 = vrot.lane.b32.xlu2 %v1533_v43, %s1971_s11  ;;  %s2838_s11 = smov 126  }
 0x6e1   :  { %v1457_v17 = vpop.permute.xlu2 %1456 }
 0x6e6   :  { %v1538_v13 = vld.sshfl [vmem:[#allocation1] sm:$0xff pattern:$0x73625140] }
 0x6e7   :  { %1542 = vst [vmem:[#allocation1] ss:$4 sm:$0xff] %v888_v42  ;;  %1539 = vrot.lane.b32.xlu0 %v1538_v13, %s2836_s17 }
 0x6e9   :  { %v1447_v38 = vpop.permute.xlu0 %1446 }
 0x6ea   :  { %v1500_v11 = vsel %vm853_vm11, %v1499_v15, %v1447_v38 }
 0x6ee   :  { %v1543_v36 = vld.sshfl [vmem:[#allocation1] sm:$0xff pattern:$0x73625140] }
 0x6ef   :  { %1544 = vrot.lane.b32.xlu1 %v1543_v36, %s2837_s19  ;;  %1547 = vst [vmem:[#allocation1] ss:$4 sm:$0xff] %v888_v42 }
 0x6f1   :  { %v1452_v46 = vpop.permute.xlu1 %1451 }
 0x6f2   :  { %v1501_v14 = vsel %vm988_vm13, %v1500_v11, %v1452_v46 }
 0x6f3   :  { %v1502_v18 = vsel %vm144_vm12, %v1501_v14, %v1457_v17 }
 0x6f6   :  { %v1548_v1 = vld.sshfl [vmem:[#allocation1] sm:$0xff pattern:$0x73625140] }
 0x6f7   :  { %1552 = vst [vmem:[#allocation1] ss:$4 sm:$0xff] %v888_v42  ;;  %1549 = vrot.lane.b32.xlu2 %v1548_v1, %s2838_s11 }
 0x6f9   :  { %v1473_v24 = vpop.permute.xlu2 %1472 }
 0x6fe   :  { %v1553_v62 = vld.sshfl [vmem:[#allocation1] sm:$0xff pattern:$0x73625140] }
 0x6ff   :  { %1557 = vst [vmem:[#allocation1] ss:$4 sm:$0xff] %v888_v42  ;;  %1554 = vrot.lane.b32.xlu0 %v1553_v62, %s1974_s26  ;;  %s2842_s26 = smov 96  }
 0x701   :  { %v1463_v61 = vpop.permute.xlu0 %1462 }
 0x702   :  { %v1503_v19 = vsel %vm2843_vm4, %v1502_v18, %v1463_v61  ;;  %vm1528_vm4 = vcmask 146432  }
 0x706   :  { %v1558_v63 = vld.sshfl [vmem:[#allocation1] sm:$0xff pattern:$0x73625140] }
 0x707   :  { %1559 = vrot.lane.b32.xlu1 %v1558_v63, %s2840_s21  ;;  %1562 = vst [vmem:[#allocation1] ss:$4 sm:$0xff] %v888_v42 }
 0x709   :  { %v1468_v23 = vpop.permute.xlu1 %1467 }
 0x70a   :  { %v1504_v51 = vsel %vm843_vm3, %v1503_v19, %v1468_v23 }
 0x70b   :  { %v1505_v25 = vsel %vm994_vm7, %v1504_v51, %v1473_v24 }
 0x70e   :  { %v1563_v56 = vld.sshfl [vmem:[#allocation1] sm:$0xff pattern:$0x73625140] }
 0x70f   :  { %1567 = vst [vmem:[#allocation1] ss:$4 sm:$0xff] %v888_v42  ;;  %1564 = vrot.lane.b32.xlu2 %v1563_v56, %s1975_s12  ;;  %s2844_s12 = smov 76  }
 0x711   :  { %v1488_v44 = vpop.permute.xlu2 %1487 }
 0x716   :  { %v1568_v57 = vld.sshfl [vmem:[#allocation1] sm:$0xff pattern:$0x73625140] }
 0x717   :  { %1572 = vst [vmem:[#allocation1] ss:$4 sm:$0xff] %v888_v42  ;;  %1569 = vrot.lane.b32.xlu0 %v1568_v57, %s2841_s23 }
 0x719   :  { %v1478_v26 = vpop.permute.xlu0 %1477 }
 0x71a   :  { %v1506_v27 = vsel %vm2845_vm5, %v1505_v25, %v1478_v26 }
 0x71e   :  { %v1573_v7 = vld.sshfl [vmem:[#allocation1] sm:$0xff pattern:$0x73625140] }
 0x71f   :  { %1574 = vrot.lane.b32.xlu1 %v1573_v7, %s1976_s28  ;;  %1578 = vst [vmem:[#allocation1] ss:$4 sm:$0xff] %v889_v6  ;;  %s2849_s28 = smov 46  }
 0x721   :  { %v1483_v30 = vpop.permute.xlu1 %1482 }
 0x722   :  { %v1507_v31 = vsel %vm997_vm14, %v1506_v27, %v1483_v30 }
 0x723   :  { %v1508_v47 = vsel %vm846_vm1, %v1507_v31, %v1488_v44 }
 0x726   :  { %v1579_v58 = vld.sshfl [vmem:[#allocation1] sm:$0xff pattern:$0x73625140] }
 0x727   :  { %1583 = vst [vmem:[#allocation1] ss:$4 sm:$0xff] %v889_v6  ;;  %1580 = vrot.lane.b32.xlu2 %v1579_v58, %s2842_s26 }
 0x729   :  { %v1518_v39 = vpop.permute.xlu2 %1517 }
 0x72e   :  { %v1584_v28 = vld.sshfl [vmem:[#allocation1] sm:$0xff pattern:$0x73625140] }
 0x72f   :  { %1585 = vrot.lane.b32.xlu1 %v1584_v28, %s1977_s30  ;;  %1588 = vst [vmem:[#allocation1] ss:$4 sm:$0xff] %v889_v6  ;;  %s2850_s30 = smov 36  }
 0x731   :  { %v1493_v42 = vpop.permute.xlu0 %1492 }
 0x732   :  { %v1509_v32 = vsel %vm1000_vm6, %v1508_v47, %v1493_v42 }
 0x733   :  { %v1715_v43 = vrot.slane %v1509_v32, 6 }
 0x735   :  { %v2718_v33 = vsel %vm2847_vm15, %v2686_v3, %v1715_v43 }
 0x736   :  { %v2700_v16 = vld.sshfl [vmem:[#allocation1] sm:$0xff pattern:$0x73625140] }
 0x737   :  { %1593 = vst [vmem:[#allocation1] ss:$4 sm:$0xff] %v889_v6 }
 0x739   :  { %v1513_v52 = vpop.permute.xlu1 %1512  ;;  %v1535_v63 = vpop.permute.xlu2 %1534 }
 0x73a   :  { %v1598_v41 = vsel %vm979_vm8, %v1513_v52, %v1518_v39 }
 0x73e   :  { %v2704_v20 = vld.sshfl [vmem:[#allocation1] sm:$0xff pattern:$0x73625140] }
 0x73f   :  { %1613 = vst [vmem:[#allocation1] ss:$4 sm:$0xff] %v889_v6 }
 0x746   :  { %v1614_v22 = vld.sshfl [vmem:[#allocation1] sm:$0xff pattern:$0x73625140] }
 0x747   :  { %1618 = vst [vmem:[#allocation1] ss:$4 sm:$0xff] %v889_v6  ;;  %1615 = vrot.lane.b32.xlu2 %v1614_v22, %s2844_s12 }
 0x749   :  { %v1525_v62 = vpop.permute.xlu0 %1524  ;;  %v1527_v37 = vpop.permute.xlu1 %1526 }
 0x74a   :  { %v1529_v10 = vsel %vm1528_vm4, %v1525_v62, %v1527_v37 }
 0x74b   :  { %v1599_v12 = vsel %vm849_vm2, %v1598_v41, %v1529_v10 }
 0x74c   :  { %v1600_v38 = vsel %vm982_vm9, %v1599_v12, %v1535_v63 }
 0x74e   :  { %v1619_v29 = vld.sshfl [vmem:[#allocation1] sm:$0xff pattern:$0x73625140] }
 0x74f   :  { %1620 = vrot.lane.b32.xlu0 %v1619_v29, %s1978_s4  ;;  %1623 = vst [vmem:[#allocation1] ss:$4 sm:$0xff] %v889_v6  ;;  %s2851_s4 = smov 26  }
 0x751   :  { %v1550_v4 = vpop.permute.xlu2 %1549 }
 0x756   :  { %v1624_v0 = vld.sshfl [vmem:[#allocation1] sm:$0xff pattern:$0x73625140] }
 0x757   :  { %1625 = vrot.lane.b32.xlu1 %v1624_v0, %s2846_s25  ;;  %1628 = vst [vmem:[#allocation1] ss:$4 sm:$0xff] %v889_v6 }
 0x759   :  { %v1540_v3 = vpop.permute.xlu0 %1539 }
 0x75a   :  { %v1601_v46 = vsel %vm756_vm0, %v1600_v38, %v1540_v3 }
 0x75e   :  { %v1629_v40 = vld.sshfl [vmem:[#allocation1] sm:$0xff pattern:$0x73625140] }
 0x75f   :  { %1633 = vst [vmem:[#allocation1] ss:$4 sm:$0xff] %v889_v6  ;;  %1630 = vrot.lane.b32.xlu2 %v1629_v40, %s1979_s6  ;;  %s2852_s6 = smov 16  }
 0x761   :  { %v1545_v55 = vpop.permute.xlu1 %1544 }
 0x762   :  { %v1602_v17 = vsel %vm985_vm10, %v1601_v46, %v1545_v55 }
 0x763   :  { %v1603_v19 = vsel %vm853_vm11, %v1602_v17, %v1550_v4 }
 0x766   :  { %v1634_v45 = vld.sshfl [vmem:[#allocation1] sm:$0xff pattern:$0x73625140] }
 0x767   :  { %1635 = vrot.lane.b32.xlu0 %v1634_v45, %s2848_s27  ;;  %1638 = vst [vmem:[#allocation1] ss:$4 sm:$0xff] %v889_v6 }
 0x769   :  { %v1565_v56 = vpop.permute.xlu2 %1564 }
 0x76e   :  { %v1639_v34 = vld.sshfl [vmem:[#allocation1] sm:$0xff pattern:$0x73625140] }
 0x76f   :  { %1640 = vrot.lane.b32.xlu1 %v1639_v34, %s1980_s20  ;;  %1644 = vst [vmem:[#allocation1] ss:$4 sm:$0xff] %v2721_v48 }
 0x771   :  { %v1555_v5 = vpop.permute.xlu0 %1554 }
 0x772   :  { %v1604_v23 = vsel %vm988_vm13, %v1603_v19, %v1555_v5 }
 0x776   :  { %v1645_v50 = vld.sshfl [vmem:[#allocation1] sm:$0xff pattern:$0x73625140] }
 0x777   :  { %1649 = vst [vmem:[#allocation1] ss:$4 sm:$0xff] %v2721_v48  ;;  %1646 = vrot.lane.b32.xlu2 %v1645_v50, %s2849_s28 }
 0x779   :  { %v1560_v57 = vpop.permute.xlu1 %1559 }
 0x77a   :  { %v1605_v25 = vsel %vm144_vm12, %v1604_v23, %v1560_v57 }
 0x77e   :  { %v1650_v35 = vld.sshfl [vmem:[#allocation1] sm:$0xff pattern:$0x73625140] }
 0x77f   :  { %1651 = vrot.lane.b32.xlu0 %v1650_v35, %s1981_s8  ;;  %1654 = vst [vmem:[#allocation1] ss:$4 sm:$0xff] %v2721_v48 }
 0x781   :  { %v1581_v7 = vpop.permute.xlu2 %1580 }
 0x786   :  { %v1655_v13 = vld.sshfl [vmem:[#allocation1] sm:$0xff pattern:$0x73625140] }
 0x787   :  { %1656 = vrot.lane.b32.xlu1 %v1655_v13, %s2850_s30  ;;  %1659 = vst [vmem:[#allocation1] ss:$4 sm:$0xff] %v2721_v48 }
 0x789   :  { %v1570_v6 = vpop.permute.xlu0 %1569 }
 0x78e   :  { %v1660_v36 = vld.sshfl [vmem:[#allocation1] sm:$0xff pattern:$0x73625140] }
 0x78f   :  { %1664 = vst [vmem:[#allocation1] ss:$4 sm:$0xff] %v2721_v48  ;;  %1661 = vrot.lane.b32.xlu2 %v1660_v36, %s1982_s10  ;;  %s1735_s10 = sshll.u32 %s2787_s1, 4  ;;  %s1986_s1 = smov [#allocation6]   ;;  %s1736_s10 = int_to_ptr.hbm [resolvable:$true] %s1735_s10 }
 0x791   :  { %v1575_v58 = vpop.permute.xlu1 %1574 }
 0x796   :  { %v1665_v1 = vld.sshfl [vmem:[#allocation1] sm:$0xff pattern:$0x73625140] }
 0x797   :  { %1666 = vrot.lane.b32.xlu0 %v1665_v1, %s2851_s4  ;;  %1669 = vst [vmem:[#allocation1] ss:$4 sm:$0xff] %v2721_v48 }
 0x79e   :  { %v1670_v53 = vld.sshfl [vmem:[#allocation1] sm:$0xff pattern:$0x73625140] }
 0x79f   :  { %1671 = vrot.lane.b32.xlu1 %v1670_v53, %s1983_s13  ;;  %1674 = vst [vmem:[#allocation1] ss:$4 sm:$0xff] %v2721_v48  ;;  %s1985_s13 = smov [#allocation5]  }
 0x7a0   :  { %s1733_s22 = sshll.u32 %s1985_s13, 4  ;;  %s1734_s22 = int_to_ptr.vmem [resolvable:$true] %s1733_s22 }
 0x7a1   :  { %1738 = dma.vmem_to_hbm [thread:$0]  %s1734_s22, 160, %s1736_s10, [#allocation4]   ;;  %v1616_v8 = vpop.permute.xlu2 %1615  ;;  %v1586_v21 = vpop.permute.xlu1 %1585 }
 0x7a6   :  { %v1675_v49 = vld.sshfl [vmem:[#allocation1] sm:$0xff pattern:$0x73625140] }
 0x7a7   :  { %1676 = vrot.lane.b32.xlu0 %v1675_v49, %s2852_s6  ;;  %1679 = vst [vmem:[#allocation1] ss:$4 sm:$0xff] %v2721_v48 }
 0x7ae   :  { %v1680_v59 = vld.sshfl [vmem:[#allocation1] sm:$0xff pattern:$0x73625140] }
 0x7af   :  { %1590 = vrot.lane.b32.xlu0 %v2700_v16, %s2853_s0  ;;  %1684 = vst [vmem:[#allocation1] ss:$4 sm:$0xff] %v2721_v48  ;;  %1681 = vrot.lane.b32.xlu2 %v1680_v59, %s1984_s14 }
 0x7b6   :  { %v1685_v54 = vld.sshfl [vmem:[#allocation1] sm:$0xff pattern:$0x73625140] }
 0x7b7   :  { %1686 = vrot.lane.b32.xlu1 %v1685_v54, %s2854_s29  ;;  %1595 = vrot.lane.b32.xlu2 %v2704_v20, %s1919_s18  ;;  %s1744_s18 = sshll.u32 %s1986_s1, 4  ;;  %s1745_s18 = int_to_ptr.vmem [resolvable:$true] %s1744_s18 }
 0x7b9   :  { %v1631_v60 = vpop.permute.xlu2 %1630 }
 0x7c1   :  { %v1621_v2 = vpop.permute.xlu0 %1620 }
 0x7c2   :  { %v1689_v11 = vsel %vm979_vm8, %v1616_v8, %v1621_v2  ;;  %vm2857_vm8 = vmmov %vm2845_vm5 }
 0x7c9   :  { %v1626_v28 = vpop.permute.xlu1 %1625 }
 0x7ca   :  { %v1690_v16 = vsel %vm849_vm2, %v1689_v11, %v1626_v28  ;;  %vm2855_vm2 = vcmask 547840  }
 0x7cb   :  { %v1691_v61 = vsel %vm982_vm9, %v1690_v16, %v1631_v60  ;;  %v1606_v29 = vsel %vm2855_vm2, %v1605_v25, %v1565_v56  ;;  %vm2858_vm9 = vmmov %vm2845_vm5 }
 0x7cc   :  { %v1607_v30 = vsel %vm843_vm3, %v1606_v29, %v1570_v6 }
 0x7cd   :  { %v1608_v42 = vsel %vm994_vm7, %v1607_v30, %v1575_v58 }
 0x7ce   :  { %v1609_v43 = vsel %vm2857_vm8, %v1608_v42, %v1581_v7 }
 0x7cf   :  { %v1610_v50 = vsel %vm997_vm14, %v1609_v43, %v1586_v21 }
 0x7d1   :  { %v1647_v14 = vpop.permute.xlu2 %1646 }
 0x7d9   :  { %v1636_v9 = vpop.permute.xlu0 %1635 }
 0x7da   :  { %v1692_v22 = vsel %vm756_vm0, %v1691_v61, %v1636_v9  ;;  %vm2856_vm0 = vmmov %vm2855_vm2 }
 0x7e1   :  { %v1641_v18 = vpop.permute.xlu1 %1640 }
 0x7e2   :  { %v1693_v24 = vsel %vm985_vm10, %v1692_v22, %v1641_v18 }
 0x7e3   :  { %v1694_v27 = vsel %vm853_vm11, %v1693_v24, %v1647_v14 }
 0x7e9   :  { %v1662_v51 = vpop.permute.xlu2 %1661 }
 0x7f1   :  { %v1652_v15 = vpop.permute.xlu0 %1651 }
 0x7f2   :  { %v1695_v40 = vsel %vm988_vm13, %v1694_v27, %v1652_v15 }
 0x7f9   :  { %v1657_v26 = vpop.permute.xlu1 %1656 }
 0x7fa   :  { %v1696_v31 = vsel %vm144_vm12, %v1695_v40, %v1657_v26  ;;  %vm2859_vm12 = vcmask 1045508  }
 0x7fb   :  { %v1697_v47 = vsel %vm2856_vm0, %v1696_v31, %v1662_v51 }
 0x809   :  { %v1667_v20 = vpop.permute.xlu0 %1666  ;;  %v1682_v44 = vpop.permute.xlu2 %1681 }
 0x80a   :  { %v1698_v34 = vsel %vm843_vm3, %v1697_v47, %v1667_v20  ;;  %vm2860_vm3 = vcmask 1043456  }
 0x811   :  { %v1672_v32 = vpop.permute.xlu1 %1671  ;;  %v1596_v1 = vpop.permute.xlu2 %1595 }
 0x812   :  { %v1699_v35 = vsel %vm994_vm7, %v1698_v34, %v1672_v32 }
 0x819   :  { %v1677_v0 = vpop.permute.xlu0 %1676 }
 0x81a   :  { %v1700_v13 = vsel %vm2858_vm9, %v1699_v35, %v1677_v0 }
 0x81b   :  { %v1701_v52 = vsel %vm997_vm14, %v1700_v13, %v1682_v44 }
 0x821   :  { %v1591_v45 = vpop.permute.xlu0 %1590 }
 0x822   :  { %v1611_v36 = vsel %vm846_vm1, %v1610_v50, %v1591_v45 }
 0x823   :  { %v1612_v39 = vsel %vm1000_vm6, %v1611_v36, %v1596_v1 }
 0x824   :  { %v1716_v59 = vrot.slane %v1612_v39, 4 }
 0x829   :  { %v1687_v41 = vpop.permute.xlu1 %1686 }
 0x82a   :  { %v1702_v53 = vsel %vm846_vm1, %v1701_v52, %v1687_v41 }
 0x82b   :  { %v1703_v49 = vsel %vm1000_vm6, %v1702_v53, %v2721_v48 }
 0x82c   :  { %v1717_v54 = vrot.slane %v1703_v49, 2 }
 0x82e   :  { %v1722_v62 = vsel %vm2859_vm12, %v1716_v59, %v1717_v54 }
 0x82f   :  { %v1723_v63 = vsel %vm2860_vm3, %v2718_v33, %v1722_v62 }
 0x830   :  { %1727 = vst [vmem:[#allocation6 + $0x8] sm:$0xff] %v1723_v63 }
 0x831   :  { %1749 = dma.vmem_to_hbm [thread:$0]  %s1745_s18, 256, %s1747_s5, [#allocation7]  }
 0x832   :  { %1909 = dma.done.wait [#allocation4], 160  }
 0x833   :  { %1910 = vsyncadd [#allocation4], 4294967136 }
 0x834   :  { %1911 = dma.done.wait [#allocation7], 256  }
 0x835   :  { %1912 = vsyncadd [#allocation7], 4294967040 }
 0x836   :  { %1758 = vsyncpa [#allocation3], 1 }
 0x837   :  { %1759 = vsyncpa [#allocation4], 1 }
 0x838   :  { %1760 = vsyncpa [#allocation7], 1 }

</bundles_post_ra>
